<compile_context>
chip_gen: v6e
topology: v6e:2x2x1
jax: 0.10.0
libtpu: 0.0.40
codegen_flags: <defaults>
</compile_context>

<pallas_src>
import math

import numpy as np

import jax
import jax.numpy as jnp
from jax.experimental import pallas as pl
from jax.experimental.pallas import tpu as pltpu

BN_EPS = 1e-5
LANE_PAD = 128        # lane block used to pad the attention-stage column groups
HID = 64              # LSTM hidden size (fixed by the PyTorch module)


# ----------------------------------------------------------------------------
# Fused kernel
# ----------------------------------------------------------------------------
def _ablstm_kernel(scal_ref, xflat_ref, ident_ref,
                   w1_ref, b1_ref, w2_ref, b2_ref,
                   w0f_ref, w0b_ref, b0_ref, u0_ref,
                   w1in_ref, b1in_ref, u1_ref,
                   wo_ref, bo_ref,
                   out_ref, ss_ref):
    B = xflat_ref.shape[0]              # padded batch (multiple of 8)
    Hh = u0_ref.shape[0] // 2           # LSTM hidden size
    H2, H4, H6 = 2 * Hh, 4 * Hh, 6 * Hh
    T = ss_ref.shape[0] // B            # LSTM sequence length (= in_chans)
    LP = w1_ref.shape[1] // 4           # 128-lane pool-position block

    def prelu(v, a):
        return jnp.where(v >= 0, v, a * v)

    # ---------------- SpatialAttention: 2 GEMMs + whole-vreg max-pools --------
    a1 = scal_ref[0]
    a2 = scal_ref[1]
    # conv1 (3x3 s2 p1) + folded bn1, restricted to the 4x4 region pool1 reads.
    c1 = jnp.dot(xflat_ref[...], w1_ref[...],
                 preferred_element_type=jnp.float32) + b1_ref[...]       # (B, 4*LP)
    # maxpool1 2x2 s2: the 4 pool-position blocks are 128-lane aligned slices.
    p1 = jnp.maximum(jnp.maximum(c1[:, 0 * LP:1 * LP], c1[:, 1 * LP:2 * LP]),
                     jnp.maximum(c1[:, 2 * LP:3 * LP], c1[:, 3 * LP:4 * LP]))
    p1 = prelu(p1, a1)                                                   # (B, LP)
    # conv2 (3x3 s1 p1) + folded bn2 on the 2x2 map, one GEMM for all 4 outputs.
    c2 = jnp.dot(p1.astype(jnp.bfloat16), w2_ref[...],
                 preferred_element_type=jnp.float32) + b2_ref[...]       # (B, 4*LP)
    # maxpool2 2x2 -> 1x1, again 128-lane aligned slices.
    v = jnp.maximum(jnp.maximum(c2[:, 0 * LP:1 * LP], c2[:, 1 * LP:2 * LP]),
                    jnp.maximum(c2[:, 2 * LP:3 * LP], c2[:, 3 * LP:4 * LP]))
    out_sp = prelu(v, a2)                                                # (B, LP)
    ident = ident_ref[...]                                               # (B, LP); lanes >= C are 0
    sp = ident * out_sp + ident

    # ---------------- SpectralAttention (k=1 conv + BN folded) ----------------
    o = prelu(sp * scal_ref[2] + scal_ref[3], scal_ref[4])
    o = prelu(o * scal_ref[5] + scal_ref[6], scal_ref[7])
    seq = o * sp + sp                             # (B, LP); lane t in [0, T) is timestep t

    # ---------------- fused bidirectional LSTM cell ---------------------------
    # Gate lanes: [i_f,i_b,f_f,f_b,o_f,o_b,g_f,g_b]; h/c lanes: [fwd | bwd].
    def bistep(z, h, c, u):
        g = z + jnp.dot(h.astype(jnp.bfloat16), u,
                        preferred_element_type=jnp.float32)              # (B, 8H)
        s = jax.nn.sigmoid(g[:, :H6])
        gg = jnp.tanh(g[:, H6:])
        c_new = s[:, H2:H4] * c + s[:, :H2] * gg
        h_new = s[:, H4:H6] * jnp.tanh(c_new)
        return h_new, c_new

    # ---------------- BiLSTM layer 0 -------------------------------------------
    u0 = u0_ref[...]
    w0f = w0f_ref[...]
    w0b = w0b_ref[...]
    b0 = b0_ref[...]
    h = jnp.zeros((B, H2), jnp.float32)
    c = jnp.zeros((B, H2), jnp.float32)
    for s in range(T):                   # fully unrolled (T = in_chans, static)
        tb = T - 1 - s
        # h-independent input contribution (off the serial critical path):
        # forward direction reads time s, backward reads time T-1-s.
        z = seq[:, s:s + 1] * w0f + seq[:, tb:tb + 1] * w0b + b0         # (B, 8H)
        h, c = bistep(z, h, c, u0)
        # h = [h_f(s) | h_b(T-1-s)]: scatter into the layer-1 input scratch with
        # two full (8,128)-tile-aligned stores.  Row block t of ss ends up as
        # [h_f(t), h_b(T-1-t), h_f(T-1-t), h_b(t)].
        ss_ref[s * B:(s + 1) * B, 0:H2] = h
        ss_ref[tb * B:(tb + 1) * B, H2:2 * H2] = h
    # TODO(synk): inter-layer LSTM dropout (p=0.5) is identity in eval mode; omitted.

    # ---------------- BiLSTM layer 1 -------------------------------------------
    # One K=256 GEMM produces BOTH directions' hoisted input projections in
    # step-major order (forward at time s, backward at time T-1-s per row block).
    z1 = jnp.dot(ss_ref[...].astype(jnp.bfloat16), w1in_ref[...],
                 preferred_element_type=jnp.float32) + b1in_ref[...]     # (T*B, 8H)
    u1 = u1_ref[...]
    h = jnp.zeros((B, H2), jnp.float32)
    c = jnp.zeros((B, H2), jnp.float32)
    for s in range(T):
        h, c = bistep(z1[s * B:(s + 1) * B, :], h, c, u1)

    # final h = [h_f^1(T-1) | h_b^1(0)] = cat(h_n[-2], h_n[-1]) -> output Linear.
    out_ref[...] = (jnp.dot(h.astype(jnp.bfloat16), wo_ref[...],
                            preferred_element_type=jnp.float32) + bo_ref[...])


# ----------------------------------------------------------------------------
# Wrapper (layout plumbing only: NCHW -> flat bf16, identity pixel, batch pad)
# ----------------------------------------------------------------------------
def ablstm_forward(x, params):
    # x: (B, 1, in_chans, patch, patch) -- same as the PyTorch module input.
    B, _, C, Hp, Wp = x.shape
    xs = jnp.squeeze(x, axis=1).astype(jnp.float32)                      # (B, C, H, W)
    dx = Hp // 2
    ident = xs[:, :, dx, dx]                                             # (B, C)
    xflat = jnp.transpose(xs, (0, 2, 3, 1)).reshape(B, Hp * Wp * C)

    # Pad batch to the 8-row f32 sublane tile; pad identity lanes to 128.
    Bp = ((B + 7) // 8) * 8
    xflat_p = jnp.zeros((Bp, Hp * Wp * C), jnp.bfloat16)
    xflat_p = xflat_p.at[:B].set(xflat.astype(jnp.bfloat16))
    ident_p = jnp.zeros((Bp, LANE_PAD), jnp.float32).at[:B, :C].set(ident)

    T = C
    Hh = params['u0'].shape[0] // 2
    n_class = params['bo'].shape[1]

    args = (params['scal'], xflat_p, ident_p,
            params['w1'], params['b1'], params['w2'], params['b2'],
            params['w0f'], params['w0b'], params['b0'], params['u0'],
            params['w1in'], params['b1in'], params['u1'],
            params['wo'], params['bo'])
    smem = pl.BlockSpec(memory_space=pltpu.MemorySpace.SMEM)
    vmem = pl.BlockSpec(memory_space=pltpu.MemorySpace.VMEM)
    # Single-invocation kernel (no grid): ~1.5 MiB of weights + 64 KiB scratch,
    # far below VMEM limits on v5e/v6e/v7x.  For a non-toy batch, add a batch
    # grid with dimension_semantics=("parallel",) (weights index-mapped to
    # block 0 so they stay resident) to occupy the second v7x TensorCore.
    out_p = pl.pallas_call(
        _ablstm_kernel,
        out_shape=jax.ShapeDtypeStruct((Bp, n_class), jnp.float32),
        in_specs=[smem] + [vmem] * (len(args) - 1),
        out_specs=vmem,
        scratch_shapes=[pltpu.VMEM((T * Bp, 4 * Hh), jnp.float32)],
    )(*args)
    return out_p[:B]


# ----------------------------------------------------------------------------
# Parameter init (matches the module's init style; eval-mode BN folded; convs
# rearranged into the two lane-padded GEMM weights; BiLSTM weights merged into
# the combined-lane block-diagonal layout the kernel expects).
# ----------------------------------------------------------------------------
def init_params(key, in_chans, patch_size, n_classes, hidden=HID):
    C, P, H = in_chans, patch_size, hidden
    C2, H8, LP = 2 * C, 8 * hidden, LANE_PAD
    conv1_out = (P - 1) // 2 + 1
    assert conv1_out // 2 == 2, "patch_size must reduce to 1x1 after the two max-pools"
    assert 4 * C2 <= LP and C <= LP

    bn_s = 1.0 / math.sqrt(1.0 + BN_EPS)   # eval-mode BN with fresh running stats
    ks = iter(jax.random.split(key, 16))

    def xavier(k, fan_out, fan_in):
        std = math.sqrt(2.0 / (fan_out + fan_in))
        return np.asarray(std * jax.random.normal(k, (fan_out, fan_in)), np.float32)

    def kaiming(k, shape, fan_in):
        std = math.sqrt(2.0 / fan_in)
        return np.asarray(std * jax.random.normal(k, shape), np.float32)

    p = {}

    # --- SpatialAttention conv1 (+bn1 folded).  Column layout: 4 pool-position
    #     blocks of 128 lanes; inside a block, (pool-window g, out-channel).
    w1 = kaiming(next(ks), (3, 3, C, C2), C * 9) * bn_s                  # HWIO
    W1 = np.zeros((P * P * C, 4 * LP), np.float32)
    for kpos in range(4):                    # position inside the 2x2 pool window
        dy, dxw = kpos // 2, kpos % 2
        for g in range(4):                   # pool window
            py, px = g // 2, g % 2
            oy, ox = 2 * py + dy, 2 * px + dxw
            col = kpos * LP + g * C2
            for ky in range(3):
                iy = 2 * oy + ky - 1
                if not 0 <= iy < P:
                    continue
                for kx in range(3):
                    ix = 2 * ox + kx - 1
                    if not 0 <= ix < P:
                        continue
                    row = (iy * P + ix) * C
                    W1[row:row + C, col:col + C2] = w1[ky, kx]
    p['w1'] = jnp.asarray(W1, jnp.bfloat16)
    p['b1'] = jnp.zeros((1, 4 * LP), jnp.float32)     # conv bias 0, BN shift 0

    # --- conv2 (+bn2 folded): rows indexed by the padded p1 lanes, 4 output-
    #     position blocks padded to 128 lanes each.
    w2 = kaiming(next(ks), (3, 3, C2, C), C2 * 9) * bn_s
    W2 = np.zeros((LP, 4 * LP), np.float32)
    for g in range(4):                        # p1 position
        py, px = g // 2, g % 2
        for j in range(4):                    # conv2 output position
            oy, ox = j // 2, j % 2
            W2[g * C2:(g + 1) * C2, j * LP:j * LP + C] = w2[py - oy + 1, px - ox + 1]
    p['w2'] = jnp.asarray(W2, jnp.bfloat16)
    p['b2'] = jnp.zeros((1, 4 * LP), jnp.float32)

    # --- SpectralAttention (k=1 conv + BN folded) + the two spatial PReLU alphas.
    wc1 = float(kaiming(next(ks), (), 1))
    wc2 = float(kaiming(next(ks), (), 1))
    p['scal'] = jnp.asarray([0.25, 0.25,                 # spatial PReLU a1, a2
                             wc1 * bn_s, 0.0, 0.25,      # spectral affine1 + PReLU
                             wc2 * bn_s, 0.0, 0.25],     # spectral affine2 + PReLU
                            jnp.float32)

    # --- BiLSTM weights in the fused combined-lane layout.
    #     Gate lanes (per H block): i_f,i_b,f_f,f_b,o_f,o_b,g_f,g_b.
    pair = {'i': 0, 'f': 1, 'o': 2, 'g': 3}
    pt_row = {'i': 0, 'f': 1, 'g': 2, 'o': 3}            # PyTorch gate row order

    def place(dst, rows, w_pt, cols, direction):
        d = 0 if direction == 'f' else 1
        for gname in 'ifog':
            blk = w_pt[pt_row[gname] * H:(pt_row[gname] + 1) * H, cols]  # (H, n_in)
            lane0 = (2 * pair[gname] + d) * H
            dst[rows, lane0:lane0 + H] = blk.T

    # layer 0 (input_size = 1)
    wih0f = xavier(next(ks), 4 * H, 1); whh0f = xavier(next(ks), 4 * H, H)
    wih0b = xavier(next(ks), 4 * H, 1); whh0b = xavier(next(ks), 4 * H, H)
    w0f = np.zeros((1, H8), np.float32); place(w0f, slice(0, 1), wih0f, slice(0, 1), 'f')
    w0b = np.zeros((1, H8), np.float32); place(w0b, slice(0, 1), wih0b, slice(0, 1), 'b')
    U0 = np.zeros((2 * H, H8), np.float32)               # block-diagonal recurrent
    place(U0, slice(0, H), whh0f, slice(0, H), 'f')
    place(U0, slice(H, 2 * H), whh0b, slice(0, H), 'b')
    p['w0f'] = jnp.asarray(w0f)
    p['w0b'] = jnp.asarray(w0b)
    p['b0'] = jnp.zeros((1, H8), jnp.float32)            # bias_ih + bias_hh (zero init)
    p['u0'] = jnp.asarray(U0, jnp.bfloat16)

    # layer 1 (input = [h_f^0(t) | h_b^0(t)]); rows match the kernel's ss layout
    # [h_f(t), h_b(T-1-t), h_f(T-1-t), h_b(t)] so one GEMM yields step-major z1.
    wih1f = xavier(next(ks), 4 * H, 2 * H); whh1f = xavier(next(ks), 4 * H, H)
    wih1b = xavier(next(ks), 4 * H, 2 * H); whh1b = xavier(next(ks), 4 * H, H)
    W1in = np.zeros((4 * H, H8), np.float32)
    place(W1in, slice(0, H),         wih1f, slice(0, H),     'f')   # h_f(t)     -> fwd gates
    place(W1in, slice(H, 2 * H),     wih1b, slice(H, 2 * H), 'b')   # h_b(T-1-t) -> bwd gates
    place(W1in, slice(2 * H, 3 * H), wih1b, slice(0, H),     'b')   # h_f(T-1-t) -> bwd gates
    place(W1in, slice(3 * H, 4 * H), wih1f, slice(H, 2 * H), 'f')   # h_b(t)     -> fwd gates
    U1 = np.zeros((2 * H, H8), np.float32)
    place(U1, slice(0, H), whh1f, slice(0, H), 'f')
    place(U1, slice(H, 2 * H), whh1b, slice(0, H), 'b')
    p['w1in'] = jnp.asarray(W1in, jnp.bfloat16)
    p['b1in'] = jnp.zeros((1, H8), jnp.float32)
    p['u1'] = jnp.asarray(U1, jnp.bfloat16)

    # --- output Linear(2*hidden, n_classes)
    p['wo'] = jnp.asarray(xavier(next(ks), n_classes, 2 * H).T, jnp.bfloat16)
    p['bo'] = jnp.zeros((1, n_classes), jnp.float32)
    return p


if __name__ == "__main__":
    model_config = {'in_chans': 8, 'patch_size': 9, 'n_classes': 6}
    B = 2

    key = jax.random.PRNGKey(0)
    kx, kp = jax.random.split(key)
    x = jax.random.normal(
        kx,
        (B, 1, model_config['in_chans'],
         model_config['patch_size'], model_config['patch_size']),
        dtype=jnp.float32)
    params = init_params(kp, model_config['in_chans'],
                         model_config['patch_size'],
                         model_config['n_classes'])

    fwd = jax.jit(ablstm_forward)
    out = jax.block_until_ready(fwd(x, params))

    assert out.shape == (B, model_config['n_classes'])
    assert bool(jnp.all(jnp.isfinite(out)))
    print("KERNEL_OK")
</pallas_src>

<mosaic_0001>
module attributes {stable_mosaic.version = 11 : i64} {
  func.func @_ablstm_kernel(%arg0: memref<8xf32, #tpu.memory_space<smem>>, %arg1: memref<8x648xbf16, #tpu.memory_space<vmem>>, %arg2: memref<8x128xf32, #tpu.memory_space<vmem>>, %arg3: memref<648x512xbf16, #tpu.memory_space<vmem>>, %arg4: memref<1x512xf32, #tpu.memory_space<vmem>>, %arg5: memref<128x512xbf16, #tpu.memory_space<vmem>>, %arg6: memref<1x512xf32, #tpu.memory_space<vmem>>, %arg7: memref<1x512xf32, #tpu.memory_space<vmem>>, %arg8: memref<1x512xf32, #tpu.memory_space<vmem>>, %arg9: memref<1x512xf32, #tpu.memory_space<vmem>>, %arg10: memref<128x512xbf16, #tpu.memory_space<vmem>>, %arg11: memref<256x512xbf16, #tpu.memory_space<vmem>>, %arg12: memref<1x512xf32, #tpu.memory_space<vmem>>, %arg13: memref<128x512xbf16, #tpu.memory_space<vmem>>, %arg14: memref<128x6xbf16, #tpu.memory_space<vmem>>, %arg15: memref<1x6xf32, #tpu.memory_space<vmem>>, %arg16: memref<8x6xf32, #tpu.memory_space<vmem>>, %arg17: memref<64x256xf32, #tpu.memory_space<vmem>>) attributes {dimension_semantics = [], scalar_prefetch = 0 : i64, scratch_operands = 1 : i64, tpu.core_type = #tpu.core_type<tc>} {
    %c0 = arith.constant 0 : index
    %0 = memref.load %arg0[%c0] : memref<8xf32, #tpu.memory_space<smem>>
    %c1 = arith.constant 1 : index
    %1 = memref.load %arg0[%c1] : memref<8xf32, #tpu.memory_space<smem>>
    %c0_0 = arith.constant 0 : index
    %c0_1 = arith.constant 0 : index
    %2 = vector.load %arg1[%c0_0, %c0_1] : memref<8x648xbf16, #tpu.memory_space<vmem>>, vector<8x648xbf16>
    %c0_2 = arith.constant 0 : index
    %c0_3 = arith.constant 0 : index
    %3 = vector.load %arg3[%c0_2, %c0_3] : memref<648x512xbf16, #tpu.memory_space<vmem>>, vector<648x512xbf16>
    %cst = arith.constant dense<0.000000e+00> : vector<8x512xf32>
    %4 = tpu.matmul %2, %3, %cst {dimension_numbers = #tpu.dot_dimension_numbers<[1], [0], [0], [1], [0, 0, 1, 1], [], []>} : vector<8x648xbf16>, vector<648x512xbf16>, vector<8x512xf32> -> vector<8x512xf32>
    %c0_4 = arith.constant 0 : index
    %c0_5 = arith.constant 0 : index
    %5 = vector.load %arg4[%c0_4, %c0_5] : memref<1x512xf32, #tpu.memory_space<vmem>>, vector<1x512xf32>
    %6 = vector.broadcast %5 : vector<1x512xf32> to vector<8x512xf32>
    %7 = arith.addf %4, %6 : vector<8x512xf32>
    %8 = vector.extract_strided_slice %7 {offsets = [0, 0], sizes = [8, 128], strides = [1, 1]} : vector<8x512xf32> to vector<8x128xf32>
    %9 = vector.extract_strided_slice %7 {offsets = [0, 128], sizes = [8, 128], strides = [1, 1]} : vector<8x512xf32> to vector<8x128xf32>
    %10 = arith.maximumf %8, %9 : vector<8x128xf32>
    %11 = vector.extract_strided_slice %7 {offsets = [0, 256], sizes = [8, 128], strides = [1, 1]} : vector<8x512xf32> to vector<8x128xf32>
    %12 = vector.extract_strided_slice %7 {offsets = [0, 384], sizes = [8, 128], strides = [1, 1]} : vector<8x512xf32> to vector<8x128xf32>
    %13 = arith.maximumf %11, %12 : vector<8x128xf32>
    %14 = arith.maximumf %10, %13 : vector<8x128xf32>
    %cst_6 = arith.constant 0.000000e+00 : f32
    %15 = vector.broadcast %cst_6 : f32 to vector<8x128xf32>
    %16 = arith.cmpf oge, %14, %15 : vector<8x128xf32>
    %17 = vector.broadcast %0 : f32 to vector<8x128xf32>
    %18 = arith.mulf %17, %14 : vector<8x128xf32>
    %19 = arith.select %16, %14, %18 : vector<8x128xi1>, vector<8x128xf32>
    %20 = arith.truncf %19 : vector<8x128xf32> to vector<8x128xbf16>
    %c0_7 = arith.constant 0 : index
    %c0_8 = arith.constant 0 : index
    %21 = vector.load %arg5[%c0_7, %c0_8] : memref<128x512xbf16, #tpu.memory_space<vmem>>, vector<128x512xbf16>
    %cst_9 = arith.constant dense<0.000000e+00> : vector<8x512xf32>
    %22 = tpu.matmul %20, %21, %cst_9 {dimension_numbers = #tpu.dot_dimension_numbers<[1], [0], [0], [1], [0, 0, 1, 1], [], []>} : vector<8x128xbf16>, vector<128x512xbf16>, vector<8x512xf32> -> vector<8x512xf32>
    %c0_10 = arith.constant 0 : index
    %c0_11 = arith.constant 0 : index
    %23 = vector.load %arg6[%c0_10, %c0_11] : memref<1x512xf32, #tpu.memory_space<vmem>>, vector<1x512xf32>
    %24 = vector.broadcast %23 : vector<1x512xf32> to vector<8x512xf32>
    %25 = arith.addf %22, %24 : vector<8x512xf32>
    %26 = vector.extract_strided_slice %25 {offsets = [0, 0], sizes = [8, 128], strides = [1, 1]} : vector<8x512xf32> to vector<8x128xf32>
    %27 = vector.extract_strided_slice %25 {offsets = [0, 128], sizes = [8, 128], strides = [1, 1]} : vector<8x512xf32> to vector<8x128xf32>
    %28 = arith.maximumf %26, %27 : vector<8x128xf32>
    %29 = vector.extract_strided_slice %25 {offsets = [0, 256], sizes = [8, 128], strides = [1, 1]} : vector<8x512xf32> to vector<8x128xf32>
    %30 = vector.extract_strided_slice %25 {offsets = [0, 384], sizes = [8, 128], strides = [1, 1]} : vector<8x512xf32> to vector<8x128xf32>
    %31 = arith.maximumf %29, %30 : vector<8x128xf32>
    %32 = arith.maximumf %28, %31 : vector<8x128xf32>
    %cst_12 = arith.constant 0.000000e+00 : f32
    %33 = vector.broadcast %cst_12 : f32 to vector<8x128xf32>
    %34 = arith.cmpf oge, %32, %33 : vector<8x128xf32>
    %35 = vector.broadcast %1 : f32 to vector<8x128xf32>
    %36 = arith.mulf %35, %32 : vector<8x128xf32>
    %37 = arith.select %34, %32, %36 : vector<8x128xi1>, vector<8x128xf32>
    %c0_13 = arith.constant 0 : index
    %c0_14 = arith.constant 0 : index
    %38 = vector.load %arg2[%c0_13, %c0_14] : memref<8x128xf32, #tpu.memory_space<vmem>>, vector<8x128xf32>
    %39 = arith.mulf %38, %37 : vector<8x128xf32>
    %40 = arith.addf %39, %38 : vector<8x128xf32>
    %c2 = arith.constant 2 : index
    %41 = memref.load %arg0[%c2] : memref<8xf32, #tpu.memory_space<smem>>
    %42 = vector.broadcast %41 : f32 to vector<8x128xf32>
    %43 = arith.mulf %40, %42 : vector<8x128xf32>
    %c3 = arith.constant 3 : index
    %44 = memref.load %arg0[%c3] : memref<8xf32, #tpu.memory_space<smem>>
    %45 = vector.broadcast %44 : f32 to vector<8x128xf32>
    %46 = arith.addf %43, %45 : vector<8x128xf32>
    %c4 = arith.constant 4 : index
    %47 = memref.load %arg0[%c4] : memref<8xf32, #tpu.memory_space<smem>>
    %cst_15 = arith.constant 0.000000e+00 : f32
    %48 = vector.broadcast %cst_15 : f32 to vector<8x128xf32>
    %49 = arith.cmpf oge, %46, %48 : vector<8x128xf32>
    %50 = vector.broadcast %47 : f32 to vector<8x128xf32>
    %51 = arith.mulf %50, %46 : vector<8x128xf32>
    %52 = arith.select %49, %46, %51 : vector<8x128xi1>, vector<8x128xf32>
    %c5 = arith.constant 5 : index
    %53 = memref.load %arg0[%c5] : memref<8xf32, #tpu.memory_space<smem>>
    %54 = vector.broadcast %53 : f32 to vector<8x128xf32>
    %55 = arith.mulf %52, %54 : vector<8x128xf32>
    %c6 = arith.constant 6 : index
    %56 = memref.load %arg0[%c6] : memref<8xf32, #tpu.memory_space<smem>>
    %57 = vector.broadcast %56 : f32 to vector<8x128xf32>
    %58 = arith.addf %55, %57 : vector<8x128xf32>
    %c7 = arith.constant 7 : index
    %59 = memref.load %arg0[%c7] : memref<8xf32, #tpu.memory_space<smem>>
    %cst_16 = arith.constant 0.000000e+00 : f32
    %60 = vector.broadcast %cst_16 : f32 to vector<8x128xf32>
    %61 = arith.cmpf oge, %58, %60 : vector<8x128xf32>
    %62 = vector.broadcast %59 : f32 to vector<8x128xf32>
    %63 = arith.mulf %62, %58 : vector<8x128xf32>
    %64 = arith.select %61, %58, %63 : vector<8x128xi1>, vector<8x128xf32>
    %65 = arith.mulf %64, %40 : vector<8x128xf32>
    %66 = arith.addf %65, %40 : vector<8x128xf32>
    %c0_17 = arith.constant 0 : index
    %c0_18 = arith.constant 0 : index
    %67 = vector.load %arg10[%c0_17, %c0_18] : memref<128x512xbf16, #tpu.memory_space<vmem>>, vector<128x512xbf16>
    %c0_19 = arith.constant 0 : index
    %c0_20 = arith.constant 0 : index
    %68 = vector.load %arg7[%c0_19, %c0_20] : memref<1x512xf32, #tpu.memory_space<vmem>>, vector<1x512xf32>
    %c0_21 = arith.constant 0 : index
    %c0_22 = arith.constant 0 : index
    %69 = vector.load %arg8[%c0_21, %c0_22] : memref<1x512xf32, #tpu.memory_space<vmem>>, vector<1x512xf32>
    %c0_23 = arith.constant 0 : index
    %c0_24 = arith.constant 0 : index
    %70 = vector.load %arg9[%c0_23, %c0_24] : memref<1x512xf32, #tpu.memory_space<vmem>>, vector<1x512xf32>
    %cst_25 = arith.constant 0.000000e+00 : f32
    %71 = vector.broadcast %cst_25 : f32 to vector<8x128xf32>
    %cst_26 = arith.constant 0.000000e+00 : f32
    %72 = vector.broadcast %cst_26 : f32 to vector<8x128xf32>
    %73 = vector.extract_strided_slice %66 {offsets = [0, 0], sizes = [8, 1], strides = [1, 1]} : vector<8x128xf32> to vector<8x1xf32>
    %74 = vector.broadcast %73 : vector<8x1xf32> to vector<8x512xf32>
    %75 = vector.broadcast %68 : vector<1x512xf32> to vector<8x512xf32>
    %76 = arith.mulf %74, %75 : vector<8x512xf32>
    %77 = vector.extract_strided_slice %66 {offsets = [0, 7], sizes = [8, 1], strides = [1, 1]} : vector<8x128xf32> to vector<8x1xf32>
    %78 = vector.broadcast %77 : vector<8x1xf32> to vector<8x512xf32>
    %79 = vector.broadcast %69 : vector<1x512xf32> to vector<8x512xf32>
    %80 = arith.mulf %78, %79 : vector<8x512xf32>
    %81 = arith.addf %76, %80 : vector<8x512xf32>
    %82 = vector.broadcast %70 : vector<1x512xf32> to vector<8x512xf32>
    %83 = arith.addf %81, %82 : vector<8x512xf32>
    %84 = arith.truncf %71 : vector<8x128xf32> to vector<8x128xbf16>
    %cst_27 = arith.constant dense<0.000000e+00> : vector<8x512xf32>
    %85 = tpu.matmul %84, %67, %cst_27 {dimension_numbers = #tpu.dot_dimension_numbers<[1], [0], [0], [1], [0, 0, 1, 1], [], []>} : vector<8x128xbf16>, vector<128x512xbf16>, vector<8x512xf32> -> vector<8x512xf32>
    %86 = arith.addf %83, %85 : vector<8x512xf32>
    %87 = vector.extract_strided_slice %86 {offsets = [0, 0], sizes = [8, 384], strides = [1, 1]} : vector<8x512xf32> to vector<8x384xf32>
    %88 = arith.negf %87 : vector<8x384xf32>
    %89 = math.exp %88 : vector<8x384xf32>
    %cst_28 = arith.constant 1.000000e+00 : f32
    %90 = vector.broadcast %cst_28 : f32 to vector<8x384xf32>
    %91 = arith.addf %90, %89 : vector<8x384xf32>
    %92 = arith.divf %90, %91 : vector<8x384xf32>
    %93 = vector.extract_strided_slice %86 {offsets = [0, 384], sizes = [8, 128], strides = [1, 1]} : vector<8x512xf32> to vector<8x128xf32>
    %94 = math.tanh %93 : vector<8x128xf32>
    %95 = vector.extract_strided_slice %92 {offsets = [0, 128], sizes = [8, 128], strides = [1, 1]} : vector<8x384xf32> to vector<8x128xf32>
    %96 = arith.mulf %95, %72 : vector<8x128xf32>
    %97 = vector.extract_strided_slice %92 {offsets = [0, 0], sizes = [8, 128], strides = [1, 1]} : vector<8x384xf32> to vector<8x128xf32>
    %98 = arith.mulf %97, %94 : vector<8x128xf32>
    %99 = arith.addf %96, %98 : vector<8x128xf32>
    %100 = vector.extract_strided_slice %92 {offsets = [0, 256], sizes = [8, 128], strides = [1, 1]} : vector<8x384xf32> to vector<8x128xf32>
    %101 = math.tanh %99 : vector<8x128xf32>
    %102 = arith.mulf %100, %101 : vector<8x128xf32>
    %c0_29 = arith.constant 0 : index
    %c0_30 = arith.constant 0 : index
    %103 = vector.load %arg17[%c0_29, %c0_30] : memref<64x256xf32, #tpu.memory_space<vmem>>, vector<8x128xf32>
    tpu.vector_store %arg17[%c0_29, %c0_30], %102 {strides = array<i32>} : memref<64x256xf32, #tpu.memory_space<vmem>>, vector<8x128xf32>,
    %c56 = arith.constant 56 : index
    %c128 = arith.constant 128 : index
    %104 = vector.load %arg17[%c56, %c128] : memref<64x256xf32, #tpu.memory_space<vmem>>, vector<8x128xf32>
    tpu.vector_store %arg17[%c56, %c128], %102 {strides = array<i32>} : memref<64x256xf32, #tpu.memory_space<vmem>>, vector<8x128xf32>,
    %105 = vector.extract_strided_slice %66 {offsets = [0, 1], sizes = [8, 1], strides = [1, 1]} : vector<8x128xf32> to vector<8x1xf32>
    %106 = vector.broadcast %105 : vector<8x1xf32> to vector<8x512xf32>
    %107 = vector.broadcast %68 : vector<1x512xf32> to vector<8x512xf32>
    %108 = arith.mulf %106, %107 : vector<8x512xf32>
    %109 = vector.extract_strided_slice %66 {offsets = [0, 6], sizes = [8, 1], strides = [1, 1]} : vector<8x128xf32> to vector<8x1xf32>
    %110 = vector.broadcast %109 : vector<8x1xf32> to vector<8x512xf32>
    %111 = vector.broadcast %69 : vector<1x512xf32> to vector<8x512xf32>
    %112 = arith.mulf %110, %111 : vector<8x512xf32>
    %113 = arith.addf %108, %112 : vector<8x512xf32>
    %114 = vector.broadcast %70 : vector<1x512xf32> to vector<8x512xf32>
    %115 = arith.addf %113, %114 : vector<8x512xf32>
    %116 = arith.truncf %102 : vector<8x128xf32> to vector<8x128xbf16>
    %cst_31 = arith.constant dense<0.000000e+00> : vector<8x512xf32>
    %117 = tpu.matmul %116, %67, %cst_31 {dimension_numbers = #tpu.dot_dimension_numbers<[1], [0], [0], [1], [0, 0, 1, 1], [], []>} : vector<8x128xbf16>, vector<128x512xbf16>, vector<8x512xf32> -> vector<8x512xf32>
    %118 = arith.addf %115, %117 : vector<8x512xf32>
    %119 = vector.extract_strided_slice %118 {offsets = [0, 0], sizes = [8, 384], strides = [1, 1]} : vector<8x512xf32> to vector<8x384xf32>
    %120 = arith.negf %119 : vector<8x384xf32>
    %121 = math.exp %120 : vector<8x384xf32>
    %cst_32 = arith.constant 1.000000e+00 : f32
    %122 = vector.broadcast %cst_32 : f32 to vector<8x384xf32>
    %123 = arith.addf %122, %121 : vector<8x384xf32>
    %124 = arith.divf %122, %123 : vector<8x384xf32>
    %125 = vector.extract_strided_slice %118 {offsets = [0, 384], sizes = [8, 128], strides = [1, 1]} : vector<8x512xf32> to vector<8x128xf32>
    %126 = math.tanh %125 : vector<8x128xf32>
    %127 = vector.extract_strided_slice %124 {offsets = [0, 128], sizes = [8, 128], strides = [1, 1]} : vector<8x384xf32> to vector<8x128xf32>
    %128 = arith.mulf %127, %99 : vector<8x128xf32>
    %129 = vector.extract_strided_slice %124 {offsets = [0, 0], sizes = [8, 128], strides = [1, 1]} : vector<8x384xf32> to vector<8x128xf32>
    %130 = arith.mulf %129, %126 : vector<8x128xf32>
    %131 = arith.addf %128, %130 : vector<8x128xf32>
    %132 = vector.extract_strided_slice %124 {offsets = [0, 256], sizes = [8, 128], strides = [1, 1]} : vector<8x384xf32> to vector<8x128xf32>
    %133 = math.tanh %131 : vector<8x128xf32>
    %134 = arith.mulf %132, %133 : vector<8x128xf32>
    %c8 = arith.constant 8 : index
    %c0_33 = arith.constant 0 : index
    %135 = vector.load %arg17[%c8, %c0_33] : memref<64x256xf32, #tpu.memory_space<vmem>>, vector<8x128xf32>
    tpu.vector_store %arg17[%c8, %c0_33], %134 {strides = array<i32>} : memref<64x256xf32, #tpu.memory_space<vmem>>, vector<8x128xf32>,
    %c48 = arith.constant 48 : index
    %c128_34 = arith.constant 128 : index
    %136 = vector.load %arg17[%c48, %c128_34] : memref<64x256xf32, #tpu.memory_space<vmem>>, vector<8x128xf32>
    tpu.vector_store %arg17[%c48, %c128_34], %134 {strides = array<i32>} : memref<64x256xf32, #tpu.memory_space<vmem>>, vector<8x128xf32>,
    %137 = vector.extract_strided_slice %66 {offsets = [0, 2], sizes = [8, 1], strides = [1, 1]} : vector<8x128xf32> to vector<8x1xf32>
    %138 = vector.broadcast %137 : vector<8x1xf32> to vector<8x512xf32>
    %139 = vector.broadcast %68 : vector<1x512xf32> to vector<8x512xf32>
    %140 = arith.mulf %138, %139 : vector<8x512xf32>
    %141 = vector.extract_strided_slice %66 {offsets = [0, 5], sizes = [8, 1], strides = [1, 1]} : vector<8x128xf32> to vector<8x1xf32>
    %142 = vector.broadcast %141 : vector<8x1xf32> to vector<8x512xf32>
    %143 = vector.broadcast %69 : vector<1x512xf32> to vector<8x512xf32>
    %144 = arith.mulf %142, %143 : vector<8x512xf32>
    %145 = arith.addf %140, %144 : vector<8x512xf32>
    %146 = vector.broadcast %70 : vector<1x512xf32> to vector<8x512xf32>
    %147 = arith.addf %145, %146 : vector<8x512xf32>
    %148 = arith.truncf %134 : vector<8x128xf32> to vector<8x128xbf16>
    %cst_35 = arith.constant dense<0.000000e+00> : vector<8x512xf32>
    %149 = tpu.matmul %148, %67, %cst_35 {dimension_numbers = #tpu.dot_dimension_numbers<[1], [0], [0], [1], [0, 0, 1, 1], [], []>} : vector<8x128xbf16>, vector<128x512xbf16>, vector<8x512xf32> -> vector<8x512xf32>
    %150 = arith.addf %147, %149 : vector<8x512xf32>
    %151 = vector.extract_strided_slice %150 {offsets = [0, 0], sizes = [8, 384], strides = [1, 1]} : vector<8x512xf32> to vector<8x384xf32>
    %152 = arith.negf %151 : vector<8x384xf32>
    %153 = math.exp %152 : vector<8x384xf32>
    %cst_36 = arith.constant 1.000000e+00 : f32
    %154 = vector.broadcast %cst_36 : f32 to vector<8x384xf32>
    %155 = arith.addf %154, %153 : vector<8x384xf32>
    %156 = arith.divf %154, %155 : vector<8x384xf32>
    %157 = vector.extract_strided_slice %150 {offsets = [0, 384], sizes = [8, 128], strides = [1, 1]} : vector<8x512xf32> to vector<8x128xf32>
    %158 = math.tanh %157 : vector<8x128xf32>
    %159 = vector.extract_strided_slice %156 {offsets = [0, 128], sizes = [8, 128], strides = [1, 1]} : vector<8x384xf32> to vector<8x128xf32>
    %160 = arith.mulf %159, %131 : vector<8x128xf32>
    %161 = vector.extract_strided_slice %156 {offsets = [0, 0], sizes = [8, 128], strides = [1, 1]} : vector<8x384xf32> to vector<8x128xf32>
    %162 = arith.mulf %161, %158 : vector<8x128xf32>
    %163 = arith.addf %160, %162 : vector<8x128xf32>
    %164 = vector.extract_strided_slice %156 {offsets = [0, 256], sizes = [8, 128], strides = [1, 1]} : vector<8x384xf32> to vector<8x128xf32>
    %165 = math.tanh %163 : vector<8x128xf32>
    %166 = arith.mulf %164, %165 : vector<8x128xf32>
    %c16 = arith.constant 16 : index
    %c0_37 = arith.constant 0 : index
    %167 = vector.load %arg17[%c16, %c0_37] : memref<64x256xf32, #tpu.memory_space<vmem>>, vector<8x128xf32>
    tpu.vector_store %arg17[%c16, %c0_37], %166 {strides = array<i32>} : memref<64x256xf32, #tpu.memory_space<vmem>>, vector<8x128xf32>,
    %c40 = arith.constant 40 : index
    %c128_38 = arith.constant 128 : index
    %168 = vector.load %arg17[%c40, %c128_38] : memref<64x256xf32, #tpu.memory_space<vmem>>, vector<8x128xf32>
    tpu.vector_store %arg17[%c40, %c128_38], %166 {strides = array<i32>} : memref<64x256xf32, #tpu.memory_space<vmem>>, vector<8x128xf32>,
    %169 = vector.extract_strided_slice %66 {offsets = [0, 3], sizes = [8, 1], strides = [1, 1]} : vector<8x128xf32> to vector<8x1xf32>
    %170 = vector.broadcast %169 : vector<8x1xf32> to vector<8x512xf32>
    %171 = vector.broadcast %68 : vector<1x512xf32> to vector<8x512xf32>
    %172 = arith.mulf %170, %171 : vector<8x512xf32>
    %173 = vector.extract_strided_slice %66 {offsets = [0, 4], sizes = [8, 1], strides = [1, 1]} : vector<8x128xf32> to vector<8x1xf32>
    %174 = vector.broadcast %173 : vector<8x1xf32> to vector<8x512xf32>
    %175 = vector.broadcast %69 : vector<1x512xf32> to vector<8x512xf32>
    %176 = arith.mulf %174, %175 : vector<8x512xf32>
    %177 = arith.addf %172, %176 : vector<8x512xf32>
    %178 = vector.broadcast %70 : vector<1x512xf32> to vector<8x512xf32>
    %179 = arith.addf %177, %178 : vector<8x512xf32>
    %180 = arith.truncf %166 : vector<8x128xf32> to vector<8x128xbf16>
    %cst_39 = arith.constant dense<0.000000e+00> : vector<8x512xf32>
    %181 = tpu.matmul %180, %67, %cst_39 {dimension_numbers = #tpu.dot_dimension_numbers<[1], [0], [0], [1], [0, 0, 1, 1], [], []>} : vector<8x128xbf16>, vector<128x512xbf16>, vector<8x512xf32> -> vector<8x512xf32>
    %182 = arith.addf %179, %181 : vector<8x512xf32>
    %183 = vector.extract_strided_slice %182 {offsets = [0, 0], sizes = [8, 384], strides = [1, 1]} : vector<8x512xf32> to vector<8x384xf32>
    %184 = arith.negf %183 : vector<8x384xf32>
    %185 = math.exp %184 : vector<8x384xf32>
    %cst_40 = arith.constant 1.000000e+00 : f32
    %186 = vector.broadcast %cst_40 : f32 to vector<8x384xf32>
    %187 = arith.addf %186, %185 : vector<8x384xf32>
    %188 = arith.divf %186, %187 : vector<8x384xf32>
    %189 = vector.extract_strided_slice %182 {offsets = [0, 384], sizes = [8, 128], strides = [1, 1]} : vector<8x512xf32> to vector<8x128xf32>
    %190 = math.tanh %189 : vector<8x128xf32>
    %191 = vector.extract_strided_slice %188 {offsets = [0, 128], sizes = [8, 128], strides = [1, 1]} : vector<8x384xf32> to vector<8x128xf32>
    %192 = arith.mulf %191, %163 : vector<8x128xf32>
    %193 = vector.extract_strided_slice %188 {offsets = [0, 0], sizes = [8, 128], strides = [1, 1]} : vector<8x384xf32> to vector<8x128xf32>
    %194 = arith.mulf %193, %190 : vector<8x128xf32>
    %195 = arith.addf %192, %194 : vector<8x128xf32>
    %196 = vector.extract_strided_slice %188 {offsets = [0, 256], sizes = [8, 128], strides = [1, 1]} : vector<8x384xf32> to vector<8x128xf32>
    %197 = math.tanh %195 : vector<8x128xf32>
    %198 = arith.mulf %196, %197 : vector<8x128xf32>
    %c24 = arith.constant 24 : index
    %c0_41 = arith.constant 0 : index
    %199 = vector.load %arg17[%c24, %c0_41] : memref<64x256xf32, #tpu.memory_space<vmem>>, vector<8x128xf32>
    tpu.vector_store %arg17[%c24, %c0_41], %198 {strides = array<i32>} : memref<64x256xf32, #tpu.memory_space<vmem>>, vector<8x128xf32>,
    %c32 = arith.constant 32 : index
    %c128_42 = arith.constant 128 : index
    %200 = vector.load %arg17[%c32, %c128_42] : memref<64x256xf32, #tpu.memory_space<vmem>>, vector<8x128xf32>
    tpu.vector_store %arg17[%c32, %c128_42], %198 {strides = array<i32>} : memref<64x256xf32, #tpu.memory_space<vmem>>, vector<8x128xf32>,
    %201 = vector.extract_strided_slice %66 {offsets = [0, 4], sizes = [8, 1], strides = [1, 1]} : vector<8x128xf32> to vector<8x1xf32>
    %202 = vector.broadcast %201 : vector<8x1xf32> to vector<8x512xf32>
    %203 = vector.broadcast %68 : vector<1x512xf32> to vector<8x512xf32>
    %204 = arith.mulf %202, %203 : vector<8x512xf32>
    %205 = vector.extract_strided_slice %66 {offsets = [0, 3], sizes = [8, 1], strides = [1, 1]} : vector<8x128xf32> to vector<8x1xf32>
    %206 = vector.broadcast %205 : vector<8x1xf32> to vector<8x512xf32>
    %207 = vector.broadcast %69 : vector<1x512xf32> to vector<8x512xf32>
    %208 = arith.mulf %206, %207 : vector<8x512xf32>
    %209 = arith.addf %204, %208 : vector<8x512xf32>
    %210 = vector.broadcast %70 : vector<1x512xf32> to vector<8x512xf32>
    %211 = arith.addf %209, %210 : vector<8x512xf32>
    %212 = arith.truncf %198 : vector<8x128xf32> to vector<8x128xbf16>
    %cst_43 = arith.constant dense<0.000000e+00> : vector<8x512xf32>
    %213 = tpu.matmul %212, %67, %cst_43 {dimension_numbers = #tpu.dot_dimension_numbers<[1], [0], [0], [1], [0, 0, 1, 1], [], []>} : vector<8x128xbf16>, vector<128x512xbf16>, vector<8x512xf32> -> vector<8x512xf32>
    %214 = arith.addf %211, %213 : vector<8x512xf32>
    %215 = vector.extract_strided_slice %214 {offsets = [0, 0], sizes = [8, 384], strides = [1, 1]} : vector<8x512xf32> to vector<8x384xf32>
    %216 = arith.negf %215 : vector<8x384xf32>
    %217 = math.exp %216 : vector<8x384xf32>
    %cst_44 = arith.constant 1.000000e+00 : f32
    %218 = vector.broadcast %cst_44 : f32 to vector<8x384xf32>
    %219 = arith.addf %218, %217 : vector<8x384xf32>
    %220 = arith.divf %218, %219 : vector<8x384xf32>
    %221 = vector.extract_strided_slice %214 {offsets = [0, 384], sizes = [8, 128], strides = [1, 1]} : vector<8x512xf32> to vector<8x128xf32>
    %222 = math.tanh %221 : vector<8x128xf32>
    %223 = vector.extract_strided_slice %220 {offsets = [0, 128], sizes = [8, 128], strides = [1, 1]} : vector<8x384xf32> to vector<8x128xf32>
    %224 = arith.mulf %223, %195 : vector<8x128xf32>
    %225 = vector.extract_strided_slice %220 {offsets = [0, 0], sizes = [8, 128], strides = [1, 1]} : vector<8x384xf32> to vector<8x128xf32>
    %226 = arith.mulf %225, %222 : vector<8x128xf32>
    %227 = arith.addf %224, %226 : vector<8x128xf32>
    %228 = vector.extract_strided_slice %220 {offsets = [0, 256], sizes = [8, 128], strides = [1, 1]} : vector<8x384xf32> to vector<8x128xf32>
    %229 = math.tanh %227 : vector<8x128xf32>
    %230 = arith.mulf %228, %229 : vector<8x128xf32>
    %c32_45 = arith.constant 32 : index
    %c0_46 = arith.constant 0 : index
    %231 = vector.load %arg17[%c32_45, %c0_46] : memref<64x256xf32, #tpu.memory_space<vmem>>, vector<8x128xf32>
    tpu.vector_store %arg17[%c32_45, %c0_46], %230 {strides = array<i32>} : memref<64x256xf32, #tpu.memory_space<vmem>>, vector<8x128xf32>,
    %c24_47 = arith.constant 24 : index
    %c128_48 = arith.constant 128 : index
    %232 = vector.load %arg17[%c24_47, %c128_48] : memref<64x256xf32, #tpu.memory_space<vmem>>, vector<8x128xf32>
    tpu.vector_store %arg17[%c24_47, %c128_48], %230 {strides = array<i32>} : memref<64x256xf32, #tpu.memory_space<vmem>>, vector<8x128xf32>,
    %233 = vector.extract_strided_slice %66 {offsets = [0, 5], sizes = [8, 1], strides = [1, 1]} : vector<8x128xf32> to vector<8x1xf32>
    %234 = vector.broadcast %233 : vector<8x1xf32> to vector<8x512xf32>
    %235 = vector.broadcast %68 : vector<1x512xf32> to vector<8x512xf32>
    %236 = arith.mulf %234, %235 : vector<8x512xf32>
    %237 = vector.extract_strided_slice %66 {offsets = [0, 2], sizes = [8, 1], strides = [1, 1]} : vector<8x128xf32> to vector<8x1xf32>
    %238 = vector.broadcast %237 : vector<8x1xf32> to vector<8x512xf32>
    %239 = vector.broadcast %69 : vector<1x512xf32> to vector<8x512xf32>
    %240 = arith.mulf %238, %239 : vector<8x512xf32>
    %241 = arith.addf %236, %240 : vector<8x512xf32>
    %242 = vector.broadcast %70 : vector<1x512xf32> to vector<8x512xf32>
    %243 = arith.addf %241, %242 : vector<8x512xf32>
    %244 = arith.truncf %230 : vector<8x128xf32> to vector<8x128xbf16>
    %cst_49 = arith.constant dense<0.000000e+00> : vector<8x512xf32>
    %245 = tpu.matmul %244, %67, %cst_49 {dimension_numbers = #tpu.dot_dimension_numbers<[1], [0], [0], [1], [0, 0, 1, 1], [], []>} : vector<8x128xbf16>, vector<128x512xbf16>, vector<8x512xf32> -> vector<8x512xf32>
    %246 = arith.addf %243, %245 : vector<8x512xf32>
    %247 = vector.extract_strided_slice %246 {offsets = [0, 0], sizes = [8, 384], strides = [1, 1]} : vector<8x512xf32> to vector<8x384xf32>
    %248 = arith.negf %247 : vector<8x384xf32>
    %249 = math.exp %248 : vector<8x384xf32>
    %cst_50 = arith.constant 1.000000e+00 : f32
    %250 = vector.broadcast %cst_50 : f32 to vector<8x384xf32>
    %251 = arith.addf %250, %249 : vector<8x384xf32>
    %252 = arith.divf %250, %251 : vector<8x384xf32>
    %253 = vector.extract_strided_slice %246 {offsets = [0, 384], sizes = [8, 128], strides = [1, 1]} : vector<8x512xf32> to vector<8x128xf32>
    %254 = math.tanh %253 : vector<8x128xf32>
    %255 = vector.extract_strided_slice %252 {offsets = [0, 128], sizes = [8, 128], strides = [1, 1]} : vector<8x384xf32> to vector<8x128xf32>
    %256 = arith.mulf %255, %227 : vector<8x128xf32>
    %257 = vector.extract_strided_slice %252 {offsets = [0, 0], sizes = [8, 128], strides = [1, 1]} : vector<8x384xf32> to vector<8x128xf32>
    %258 = arith.mulf %257, %254 : vector<8x128xf32>
    %259 = arith.addf %256, %258 : vector<8x128xf32>
    %260 = vector.extract_strided_slice %252 {offsets = [0, 256], sizes = [8, 128], strides = [1, 1]} : vector<8x384xf32> to vector<8x128xf32>
    %261 = math.tanh %259 : vector<8x128xf32>
    %262 = arith.mulf %260, %261 : vector<8x128xf32>
    %c40_51 = arith.constant 40 : index
    %c0_52 = arith.constant 0 : index
    %263 = vector.load %arg17[%c40_51, %c0_52] : memref<64x256xf32, #tpu.memory_space<vmem>>, vector<8x128xf32>
    tpu.vector_store %arg17[%c40_51, %c0_52], %262 {strides = array<i32>} : memref<64x256xf32, #tpu.memory_space<vmem>>, vector<8x128xf32>,
    %c16_53 = arith.constant 16 : index
    %c128_54 = arith.constant 128 : index
    %264 = vector.load %arg17[%c16_53, %c128_54] : memref<64x256xf32, #tpu.memory_space<vmem>>, vector<8x128xf32>
    tpu.vector_store %arg17[%c16_53, %c128_54], %262 {strides = array<i32>} : memref<64x256xf32, #tpu.memory_space<vmem>>, vector<8x128xf32>,
    %265 = vector.extract_strided_slice %66 {offsets = [0, 6], sizes = [8, 1], strides = [1, 1]} : vector<8x128xf32> to vector<8x1xf32>
    %266 = vector.broadcast %265 : vector<8x1xf32> to vector<8x512xf32>
    %267 = vector.broadcast %68 : vector<1x512xf32> to vector<8x512xf32>
    %268 = arith.mulf %266, %267 : vector<8x512xf32>
    %269 = vector.extract_strided_slice %66 {offsets = [0, 1], sizes = [8, 1], strides = [1, 1]} : vector<8x128xf32> to vector<8x1xf32>
    %270 = vector.broadcast %269 : vector<8x1xf32> to vector<8x512xf32>
    %271 = vector.broadcast %69 : vector<1x512xf32> to vector<8x512xf32>
    %272 = arith.mulf %270, %271 : vector<8x512xf32>
    %273 = arith.addf %268, %272 : vector<8x512xf32>
    %274 = vector.broadcast %70 : vector<1x512xf32> to vector<8x512xf32>
    %275 = arith.addf %273, %274 : vector<8x512xf32>
    %276 = arith.truncf %262 : vector<8x128xf32> to vector<8x128xbf16>
    %cst_55 = arith.constant dense<0.000000e+00> : vector<8x512xf32>
    %277 = tpu.matmul %276, %67, %cst_55 {dimension_numbers = #tpu.dot_dimension_numbers<[1], [0], [0], [1], [0, 0, 1, 1], [], []>} : vector<8x128xbf16>, vector<128x512xbf16>, vector<8x512xf32> -> vector<8x512xf32>
    %278 = arith.addf %275, %277 : vector<8x512xf32>
    %279 = vector.extract_strided_slice %278 {offsets = [0, 0], sizes = [8, 384], strides = [1, 1]} : vector<8x512xf32> to vector<8x384xf32>
    %280 = arith.negf %279 : vector<8x384xf32>
    %281 = math.exp %280 : vector<8x384xf32>
    %cst_56 = arith.constant 1.000000e+00 : f32
    %282 = vector.broadcast %cst_56 : f32 to vector<8x384xf32>
    %283 = arith.addf %282, %281 : vector<8x384xf32>
    %284 = arith.divf %282, %283 : vector<8x384xf32>
    %285 = vector.extract_strided_slice %278 {offsets = [0, 384], sizes = [8, 128], strides = [1, 1]} : vector<8x512xf32> to vector<8x128xf32>
    %286 = math.tanh %285 : vector<8x128xf32>
    %287 = vector.extract_strided_slice %284 {offsets = [0, 128], sizes = [8, 128], strides = [1, 1]} : vector<8x384xf32> to vector<8x128xf32>
    %288 = arith.mulf %287, %259 : vector<8x128xf32>
    %289 = vector.extract_strided_slice %284 {offsets = [0, 0], sizes = [8, 128], strides = [1, 1]} : vector<8x384xf32> to vector<8x128xf32>
    %290 = arith.mulf %289, %286 : vector<8x128xf32>
    %291 = arith.addf %288, %290 : vector<8x128xf32>
    %292 = vector.extract_strided_slice %284 {offsets = [0, 256], sizes = [8, 128], strides = [1, 1]} : vector<8x384xf32> to vector<8x128xf32>
    %293 = math.tanh %291 : vector<8x128xf32>
    %294 = arith.mulf %292, %293 : vector<8x128xf32>
    %c48_57 = arith.constant 48 : index
    %c0_58 = arith.constant 0 : index
    %295 = vector.load %arg17[%c48_57, %c0_58] : memref<64x256xf32, #tpu.memory_space<vmem>>, vector<8x128xf32>
    tpu.vector_store %arg17[%c48_57, %c0_58], %294 {strides = array<i32>} : memref<64x256xf32, #tpu.memory_space<vmem>>, vector<8x128xf32>,
    %c8_59 = arith.constant 8 : index
    %c128_60 = arith.constant 128 : index
    %296 = vector.load %arg17[%c8_59, %c128_60] : memref<64x256xf32, #tpu.memory_space<vmem>>, vector<8x128xf32>
    tpu.vector_store %arg17[%c8_59, %c128_60], %294 {strides = array<i32>} : memref<64x256xf32, #tpu.memory_space<vmem>>, vector<8x128xf32>,
    %297 = vector.extract_strided_slice %66 {offsets = [0, 7], sizes = [8, 1], strides = [1, 1]} : vector<8x128xf32> to vector<8x1xf32>
    %298 = vector.broadcast %297 : vector<8x1xf32> to vector<8x512xf32>
    %299 = vector.broadcast %68 : vector<1x512xf32> to vector<8x512xf32>
    %300 = arith.mulf %298, %299 : vector<8x512xf32>
    %301 = vector.extract_strided_slice %66 {offsets = [0, 0], sizes = [8, 1], strides = [1, 1]} : vector<8x128xf32> to vector<8x1xf32>
    %302 = vector.broadcast %301 : vector<8x1xf32> to vector<8x512xf32>
    %303 = vector.broadcast %69 : vector<1x512xf32> to vector<8x512xf32>
    %304 = arith.mulf %302, %303 : vector<8x512xf32>
    %305 = arith.addf %300, %304 : vector<8x512xf32>
    %306 = vector.broadcast %70 : vector<1x512xf32> to vector<8x512xf32>
    %307 = arith.addf %305, %306 : vector<8x512xf32>
    %308 = arith.truncf %294 : vector<8x128xf32> to vector<8x128xbf16>
    %cst_61 = arith.constant dense<0.000000e+00> : vector<8x512xf32>
    %309 = tpu.matmul %308, %67, %cst_61 {dimension_numbers = #tpu.dot_dimension_numbers<[1], [0], [0], [1], [0, 0, 1, 1], [], []>} : vector<8x128xbf16>, vector<128x512xbf16>, vector<8x512xf32> -> vector<8x512xf32>
    %310 = arith.addf %307, %309 : vector<8x512xf32>
    %311 = vector.extract_strided_slice %310 {offsets = [0, 0], sizes = [8, 384], strides = [1, 1]} : vector<8x512xf32> to vector<8x384xf32>
    %312 = arith.negf %311 : vector<8x384xf32>
    %313 = math.exp %312 : vector<8x384xf32>
    %cst_62 = arith.constant 1.000000e+00 : f32
    %314 = vector.broadcast %cst_62 : f32 to vector<8x384xf32>
    %315 = arith.addf %314, %313 : vector<8x384xf32>
    %316 = arith.divf %314, %315 : vector<8x384xf32>
    %317 = vector.extract_strided_slice %310 {offsets = [0, 384], sizes = [8, 128], strides = [1, 1]} : vector<8x512xf32> to vector<8x128xf32>
    %318 = math.tanh %317 : vector<8x128xf32>
    %319 = vector.extract_strided_slice %316 {offsets = [0, 128], sizes = [8, 128], strides = [1, 1]} : vector<8x384xf32> to vector<8x128xf32>
    %320 = arith.mulf %319, %291 : vector<8x128xf32>
    %321 = vector.extract_strided_slice %316 {offsets = [0, 0], sizes = [8, 128], strides = [1, 1]} : vector<8x384xf32> to vector<8x128xf32>
    %322 = arith.mulf %321, %318 : vector<8x128xf32>
    %323 = arith.addf %320, %322 : vector<8x128xf32>
    %324 = vector.extract_strided_slice %316 {offsets = [0, 256], sizes = [8, 128], strides = [1, 1]} : vector<8x384xf32> to vector<8x128xf32>
    %325 = math.tanh %323 : vector<8x128xf32>
    %326 = arith.mulf %324, %325 : vector<8x128xf32>
    %c56_63 = arith.constant 56 : index
    %c0_64 = arith.constant 0 : index
    %327 = vector.load %arg17[%c56_63, %c0_64] : memref<64x256xf32, #tpu.memory_space<vmem>>, vector<8x128xf32>
    tpu.vector_store %arg17[%c56_63, %c0_64], %326 {strides = array<i32>} : memref<64x256xf32, #tpu.memory_space<vmem>>, vector<8x128xf32>,
    %c0_65 = arith.constant 0 : index
    %c128_66 = arith.constant 128 : index
    %328 = vector.load %arg17[%c0_65, %c128_66] : memref<64x256xf32, #tpu.memory_space<vmem>>, vector<8x128xf32>
    tpu.vector_store %arg17[%c0_65, %c128_66], %326 {strides = array<i32>} : memref<64x256xf32, #tpu.memory_space<vmem>>, vector<8x128xf32>,
    %c0_67 = arith.constant 0 : index
    %c0_68 = arith.constant 0 : index
    %329 = vector.load %arg17[%c0_67, %c0_68] : memref<64x256xf32, #tpu.memory_space<vmem>>, vector<64x256xf32>
    %330 = arith.truncf %329 : vector<64x256xf32> to vector<64x256xbf16>
    %c0_69 = arith.constant 0 : index
    %c0_70 = arith.constant 0 : index
    %331 = vector.load %arg11[%c0_69, %c0_70] : memref<256x512xbf16, #tpu.memory_space<vmem>>, vector<256x512xbf16>
    %cst_71 = arith.constant dense<0.000000e+00> : vector<64x512xf32>
    %332 = tpu.matmul %330, %331, %cst_71 {dimension_numbers = #tpu.dot_dimension_numbers<[1], [0], [0], [1], [0, 0, 1, 1], [], []>} : vector<64x256xbf16>, vector<256x512xbf16>, vector<64x512xf32> -> vector<64x512xf32>
    %c0_72 = arith.constant 0 : index
    %c0_73 = arith.constant 0 : index
    %333 = vector.load %arg12[%c0_72, %c0_73] : memref<1x512xf32, #tpu.memory_space<vmem>>, vector<1x512xf32>
    %334 = vector.broadcast %333 : vector<1x512xf32> to vector<64x512xf32>
    %335 = arith.addf %332, %334 : vector<64x512xf32>
    %c0_74 = arith.constant 0 : index
    %c0_75 = arith.constant 0 : index
    %336 = vector.load %arg13[%c0_74, %c0_75] : memref<128x512xbf16, #tpu.memory_space<vmem>>, vector<128x512xbf16>
    %cst_76 = arith.constant 0.000000e+00 : f32
    %337 = vector.broadcast %cst_76 : f32 to vector<8x128xf32>
    %cst_77 = arith.constant 0.000000e+00 : f32
    %338 = vector.broadcast %cst_77 : f32 to vector<8x128xf32>
    %339 = vector.extract_strided_slice %335 {offsets = [0, 0], sizes = [8, 512], strides = [1, 1]} : vector<64x512xf32> to vector<8x512xf32>
    %340 = arith.truncf %337 : vector<8x128xf32> to vector<8x128xbf16>
    %cst_78 = arith.constant dense<0.000000e+00> : vector<8x512xf32>
    %341 = tpu.matmul %340, %336, %cst_78 {dimension_numbers = #tpu.dot_dimension_numbers<[1], [0], [0], [1], [0, 0, 1, 1], [], []>} : vector<8x128xbf16>, vector<128x512xbf16>, vector<8x512xf32> -> vector<8x512xf32>
    %342 = arith.addf %339, %341 : vector<8x512xf32>
    %343 = vector.extract_strided_slice %342 {offsets = [0, 0], sizes = [8, 384], strides = [1, 1]} : vector<8x512xf32> to vector<8x384xf32>
    %344 = arith.negf %343 : vector<8x384xf32>
    %345 = math.exp %344 : vector<8x384xf32>
    %cst_79 = arith.constant 1.000000e+00 : f32
    %346 = vector.broadcast %cst_79 : f32 to vector<8x384xf32>
    %347 = arith.addf %346, %345 : vector<8x384xf32>
    %348 = arith.divf %346, %347 : vector<8x384xf32>
    %349 = vector.extract_strided_slice %342 {offsets = [0, 384], sizes = [8, 128], strides = [1, 1]} : vector<8x512xf32> to vector<8x128xf32>
    %350 = math.tanh %349 : vector<8x128xf32>
    %351 = vector.extract_strided_slice %348 {offsets = [0, 128], sizes = [8, 128], strides = [1, 1]} : vector<8x384xf32> to vector<8x128xf32>
    %352 = arith.mulf %351, %338 : vector<8x128xf32>
    %353 = vector.extract_strided_slice %348 {offsets = [0, 0], sizes = [8, 128], strides = [1, 1]} : vector<8x384xf32> to vector<8x128xf32>
    %354 = arith.mulf %353, %350 : vector<8x128xf32>
    %355 = arith.addf %352, %354 : vector<8x128xf32>
    %356 = vector.extract_strided_slice %348 {offsets = [0, 256], sizes = [8, 128], strides = [1, 1]} : vector<8x384xf32> to vector<8x128xf32>
    %357 = math.tanh %355 : vector<8x128xf32>
    %358 = arith.mulf %356, %357 : vector<8x128xf32>
    %359 = vector.extract_strided_slice %335 {offsets = [8, 0], sizes = [8, 512], strides = [1, 1]} : vector<64x512xf32> to vector<8x512xf32>
    %360 = arith.truncf %358 : vector<8x128xf32> to vector<8x128xbf16>
    %cst_80 = arith.constant dense<0.000000e+00> : vector<8x512xf32>
    %361 = tpu.matmul %360, %336, %cst_80 {dimension_numbers = #tpu.dot_dimension_numbers<[1], [0], [0], [1], [0, 0, 1, 1], [], []>} : vector<8x128xbf16>, vector<128x512xbf16>, vector<8x512xf32> -> vector<8x512xf32>
    %362 = arith.addf %359, %361 : vector<8x512xf32>
    %363 = vector.extract_strided_slice %362 {offsets = [0, 0], sizes = [8, 384], strides = [1, 1]} : vector<8x512xf32> to vector<8x384xf32>
    %364 = arith.negf %363 : vector<8x384xf32>
    %365 = math.exp %364 : vector<8x384xf32>
    %cst_81 = arith.constant 1.000000e+00 : f32
    %366 = vector.broadcast %cst_81 : f32 to vector<8x384xf32>
    %367 = arith.addf %366, %365 : vector<8x384xf32>
    %368 = arith.divf %366, %367 : vector<8x384xf32>
    %369 = vector.extract_strided_slice %362 {offsets = [0, 384], sizes = [8, 128], strides = [1, 1]} : vector<8x512xf32> to vector<8x128xf32>
    %370 = math.tanh %369 : vector<8x128xf32>
    %371 = vector.extract_strided_slice %368 {offsets = [0, 128], sizes = [8, 128], strides = [1, 1]} : vector<8x384xf32> to vector<8x128xf32>
    %372 = arith.mulf %371, %355 : vector<8x128xf32>
    %373 = vector.extract_strided_slice %368 {offsets = [0, 0], sizes = [8, 128], strides = [1, 1]} : vector<8x384xf32> to vector<8x128xf32>
    %374 = arith.mulf %373, %370 : vector<8x128xf32>
    %375 = arith.addf %372, %374 : vector<8x128xf32>
    %376 = vector.extract_strided_slice %368 {offsets = [0, 256], sizes = [8, 128], strides = [1, 1]} : vector<8x384xf32> to vector<8x128xf32>
    %377 = math.tanh %375 : vector<8x128xf32>
    %378 = arith.mulf %376, %377 : vector<8x128xf32>
    %379 = vector.extract_strided_slice %335 {offsets = [16, 0], sizes = [8, 512], strides = [1, 1]} : vector<64x512xf32> to vector<8x512xf32>
    %380 = arith.truncf %378 : vector<8x128xf32> to vector<8x128xbf16>
    %cst_82 = arith.constant dense<0.000000e+00> : vector<8x512xf32>
    %381 = tpu.matmul %380, %336, %cst_82 {dimension_numbers = #tpu.dot_dimension_numbers<[1], [0], [0], [1], [0, 0, 1, 1], [], []>} : vector<8x128xbf16>, vector<128x512xbf16>, vector<8x512xf32> -> vector<8x512xf32>
    %382 = arith.addf %379, %381 : vector<8x512xf32>
    %383 = vector.extract_strided_slice %382 {offsets = [0, 0], sizes = [8, 384], strides = [1, 1]} : vector<8x512xf32> to vector<8x384xf32>
    %384 = arith.negf %383 : vector<8x384xf32>
    %385 = math.exp %384 : vector<8x384xf32>
    %cst_83 = arith.constant 1.000000e+00 : f32
    %386 = vector.broadcast %cst_83 : f32 to vector<8x384xf32>
    %387 = arith.addf %386, %385 : vector<8x384xf32>
    %388 = arith.divf %386, %387 : vector<8x384xf32>
    %389 = vector.extract_strided_slice %382 {offsets = [0, 384], sizes = [8, 128], strides = [1, 1]} : vector<8x512xf32> to vector<8x128xf32>
    %390 = math.tanh %389 : vector<8x128xf32>
    %391 = vector.extract_strided_slice %388 {offsets = [0, 128], sizes = [8, 128], strides = [1, 1]} : vector<8x384xf32> to vector<8x128xf32>
    %392 = arith.mulf %391, %375 : vector<8x128xf32>
    %393 = vector.extract_strided_slice %388 {offsets = [0, 0], sizes = [8, 128], strides = [1, 1]} : vector<8x384xf32> to vector<8x128xf32>
    %394 = arith.mulf %393, %390 : vector<8x128xf32>
    %395 = arith.addf %392, %394 : vector<8x128xf32>
    %396 = vector.extract_strided_slice %388 {offsets = [0, 256], sizes = [8, 128], strides = [1, 1]} : vector<8x384xf32> to vector<8x128xf32>
    %397 = math.tanh %395 : vector<8x128xf32>
    %398 = arith.mulf %396, %397 : vector<8x128xf32>
    %399 = vector.extract_strided_slice %335 {offsets = [24, 0], sizes = [8, 512], strides = [1, 1]} : vector<64x512xf32> to vector<8x512xf32>
    %400 = arith.truncf %398 : vector<8x128xf32> to vector<8x128xbf16>
    %cst_84 = arith.constant dense<0.000000e+00> : vector<8x512xf32>
    %401 = tpu.matmul %400, %336, %cst_84 {dimension_numbers = #tpu.dot_dimension_numbers<[1], [0], [0], [1], [0, 0, 1, 1], [], []>} : vector<8x128xbf16>, vector<128x512xbf16>, vector<8x512xf32> -> vector<8x512xf32>
    %402 = arith.addf %399, %401 : vector<8x512xf32>
    %403 = vector.extract_strided_slice %402 {offsets = [0, 0], sizes = [8, 384], strides = [1, 1]} : vector<8x512xf32> to vector<8x384xf32>
    %404 = arith.negf %403 : vector<8x384xf32>
    %405 = math.exp %404 : vector<8x384xf32>
    %cst_85 = arith.constant 1.000000e+00 : f32
    %406 = vector.broadcast %cst_85 : f32 to vector<8x384xf32>
    %407 = arith.addf %406, %405 : vector<8x384xf32>
    %408 = arith.divf %406, %407 : vector<8x384xf32>
    %409 = vector.extract_strided_slice %402 {offsets = [0, 384], sizes = [8, 128], strides = [1, 1]} : vector<8x512xf32> to vector<8x128xf32>
    %410 = math.tanh %409 : vector<8x128xf32>
    %411 = vector.extract_strided_slice %408 {offsets = [0, 128], sizes = [8, 128], strides = [1, 1]} : vector<8x384xf32> to vector<8x128xf32>
    %412 = arith.mulf %411, %395 : vector<8x128xf32>
    %413 = vector.extract_strided_slice %408 {offsets = [0, 0], sizes = [8, 128], strides = [1, 1]} : vector<8x384xf32> to vector<8x128xf32>
    %414 = arith.mulf %413, %410 : vector<8x128xf32>
    %415 = arith.addf %412, %414 : vector<8x128xf32>
    %416 = vector.extract_strided_slice %408 {offsets = [0, 256], sizes = [8, 128], strides = [1, 1]} : vector<8x384xf32> to vector<8x128xf32>
    %417 = math.tanh %415 : vector<8x128xf32>
    %418 = arith.mulf %416, %417 : vector<8x128xf32>
    %419 = vector.extract_strided_slice %335 {offsets = [32, 0], sizes = [8, 512], strides = [1, 1]} : vector<64x512xf32> to vector<8x512xf32>
    %420 = arith.truncf %418 : vector<8x128xf32> to vector<8x128xbf16>
    %cst_86 = arith.constant dense<0.000000e+00> : vector<8x512xf32>
    %421 = tpu.matmul %420, %336, %cst_86 {dimension_numbers = #tpu.dot_dimension_numbers<[1], [0], [0], [1], [0, 0, 1, 1], [], []>} : vector<8x128xbf16>, vector<128x512xbf16>, vector<8x512xf32> -> vector<8x512xf32>
    %422 = arith.addf %419, %421 : vector<8x512xf32>
    %423 = vector.extract_strided_slice %422 {offsets = [0, 0], sizes = [8, 384], strides = [1, 1]} : vector<8x512xf32> to vector<8x384xf32>
    %424 = arith.negf %423 : vector<8x384xf32>
    %425 = math.exp %424 : vector<8x384xf32>
    %cst_87 = arith.constant 1.000000e+00 : f32
    %426 = vector.broadcast %cst_87 : f32 to vector<8x384xf32>
    %427 = arith.addf %426, %425 : vector<8x384xf32>
    %428 = arith.divf %426, %427 : vector<8x384xf32>
    %429 = vector.extract_strided_slice %422 {offsets = [0, 384], sizes = [8, 128], strides = [1, 1]} : vector<8x512xf32> to vector<8x128xf32>
    %430 = math.tanh %429 : vector<8x128xf32>
    %431 = vector.extract_strided_slice %428 {offsets = [0, 128], sizes = [8, 128], strides = [1, 1]} : vector<8x384xf32> to vector<8x128xf32>
    %432 = arith.mulf %431, %415 : vector<8x128xf32>
    %433 = vector.extract_strided_slice %428 {offsets = [0, 0], sizes = [8, 128], strides = [1, 1]} : vector<8x384xf32> to vector<8x128xf32>
    %434 = arith.mulf %433, %430 : vector<8x128xf32>
    %435 = arith.addf %432, %434 : vector<8x128xf32>
    %436 = vector.extract_strided_slice %428 {offsets = [0, 256], sizes = [8, 128], strides = [1, 1]} : vector<8x384xf32> to vector<8x128xf32>
    %437 = math.tanh %435 : vector<8x128xf32>
    %438 = arith.mulf %436, %437 : vector<8x128xf32>
    %439 = vector.extract_strided_slice %335 {offsets = [40, 0], sizes = [8, 512], strides = [1, 1]} : vector<64x512xf32> to vector<8x512xf32>
    %440 = arith.truncf %438 : vector<8x128xf32> to vector<8x128xbf16>
    %cst_88 = arith.constant dense<0.000000e+00> : vector<8x512xf32>
    %441 = tpu.matmul %440, %336, %cst_88 {dimension_numbers = #tpu.dot_dimension_numbers<[1], [0], [0], [1], [0, 0, 1, 1], [], []>} : vector<8x128xbf16>, vector<128x512xbf16>, vector<8x512xf32> -> vector<8x512xf32>
    %442 = arith.addf %439, %441 : vector<8x512xf32>
    %443 = vector.extract_strided_slice %442 {offsets = [0, 0], sizes = [8, 384], strides = [1, 1]} : vector<8x512xf32> to vector<8x384xf32>
    %444 = arith.negf %443 : vector<8x384xf32>
    %445 = math.exp %444 : vector<8x384xf32>
    %cst_89 = arith.constant 1.000000e+00 : f32
    %446 = vector.broadcast %cst_89 : f32 to vector<8x384xf32>
    %447 = arith.addf %446, %445 : vector<8x384xf32>
    %448 = arith.divf %446, %447 : vector<8x384xf32>
    %449 = vector.extract_strided_slice %442 {offsets = [0, 384], sizes = [8, 128], strides = [1, 1]} : vector<8x512xf32> to vector<8x128xf32>
    %450 = math.tanh %449 : vector<8x128xf32>
    %451 = vector.extract_strided_slice %448 {offsets = [0, 128], sizes = [8, 128], strides = [1, 1]} : vector<8x384xf32> to vector<8x128xf32>
    %452 = arith.mulf %451, %435 : vector<8x128xf32>
    %453 = vector.extract_strided_slice %448 {offsets = [0, 0], sizes = [8, 128], strides = [1, 1]} : vector<8x384xf32> to vector<8x128xf32>
    %454 = arith.mulf %453, %450 : vector<8x128xf32>
    %455 = arith.addf %452, %454 : vector<8x128xf32>
    %456 = vector.extract_strided_slice %448 {offsets = [0, 256], sizes = [8, 128], strides = [1, 1]} : vector<8x384xf32> to vector<8x128xf32>
    %457 = math.tanh %455 : vector<8x128xf32>
    %458 = arith.mulf %456, %457 : vector<8x128xf32>
    %459 = vector.extract_strided_slice %335 {offsets = [48, 0], sizes = [8, 512], strides = [1, 1]} : vector<64x512xf32> to vector<8x512xf32>
    %460 = arith.truncf %458 : vector<8x128xf32> to vector<8x128xbf16>
    %cst_90 = arith.constant dense<0.000000e+00> : vector<8x512xf32>
    %461 = tpu.matmul %460, %336, %cst_90 {dimension_numbers = #tpu.dot_dimension_numbers<[1], [0], [0], [1], [0, 0, 1, 1], [], []>} : vector<8x128xbf16>, vector<128x512xbf16>, vector<8x512xf32> -> vector<8x512xf32>
    %462 = arith.addf %459, %461 : vector<8x512xf32>
    %463 = vector.extract_strided_slice %462 {offsets = [0, 0], sizes = [8, 384], strides = [1, 1]} : vector<8x512xf32> to vector<8x384xf32>
    %464 = arith.negf %463 : vector<8x384xf32>
    %465 = math.exp %464 : vector<8x384xf32>
    %cst_91 = arith.constant 1.000000e+00 : f32
    %466 = vector.broadcast %cst_91 : f32 to vector<8x384xf32>
    %467 = arith.addf %466, %465 : vector<8x384xf32>
    %468 = arith.divf %466, %467 : vector<8x384xf32>
    %469 = vector.extract_strided_slice %462 {offsets = [0, 384], sizes = [8, 128], strides = [1, 1]} : vector<8x512xf32> to vector<8x128xf32>
    %470 = math.tanh %469 : vector<8x128xf32>
    %471 = vector.extract_strided_slice %468 {offsets = [0, 128], sizes = [8, 128], strides = [1, 1]} : vector<8x384xf32> to vector<8x128xf32>
    %472 = arith.mulf %471, %455 : vector<8x128xf32>
    %473 = vector.extract_strided_slice %468 {offsets = [0, 0], sizes = [8, 128], strides = [1, 1]} : vector<8x384xf32> to vector<8x128xf32>
    %474 = arith.mulf %473, %470 : vector<8x128xf32>
    %475 = arith.addf %472, %474 : vector<8x128xf32>
    %476 = vector.extract_strided_slice %468 {offsets = [0, 256], sizes = [8, 128], strides = [1, 1]} : vector<8x384xf32> to vector<8x128xf32>
    %477 = math.tanh %475 : vector<8x128xf32>
    %478 = arith.mulf %476, %477 : vector<8x128xf32>
    %479 = vector.extract_strided_slice %335 {offsets = [56, 0], sizes = [8, 512], strides = [1, 1]} : vector<64x512xf32> to vector<8x512xf32>
    %480 = arith.truncf %478 : vector<8x128xf32> to vector<8x128xbf16>
    %cst_92 = arith.constant dense<0.000000e+00> : vector<8x512xf32>
    %481 = tpu.matmul %480, %336, %cst_92 {dimension_numbers = #tpu.dot_dimension_numbers<[1], [0], [0], [1], [0, 0, 1, 1], [], []>} : vector<8x128xbf16>, vector<128x512xbf16>, vector<8x512xf32> -> vector<8x512xf32>
    %482 = arith.addf %479, %481 : vector<8x512xf32>
    %483 = vector.extract_strided_slice %482 {offsets = [0, 0], sizes = [8, 384], strides = [1, 1]} : vector<8x512xf32> to vector<8x384xf32>
    %484 = arith.negf %483 : vector<8x384xf32>
    %485 = math.exp %484 : vector<8x384xf32>
    %cst_93 = arith.constant 1.000000e+00 : f32
    %486 = vector.broadcast %cst_93 : f32 to vector<8x384xf32>
    %487 = arith.addf %486, %485 : vector<8x384xf32>
    %488 = arith.divf %486, %487 : vector<8x384xf32>
    %489 = vector.extract_strided_slice %482 {offsets = [0, 384], sizes = [8, 128], strides = [1, 1]} : vector<8x512xf32> to vector<8x128xf32>
    %490 = math.tanh %489 : vector<8x128xf32>
    %491 = vector.extract_strided_slice %488 {offsets = [0, 128], sizes = [8, 128], strides = [1, 1]} : vector<8x384xf32> to vector<8x128xf32>
    %492 = arith.mulf %491, %475 : vector<8x128xf32>
    %493 = vector.extract_strided_slice %488 {offsets = [0, 0], sizes = [8, 128], strides = [1, 1]} : vector<8x384xf32> to vector<8x128xf32>
    %494 = arith.mulf %493, %490 : vector<8x128xf32>
    %495 = arith.addf %492, %494 : vector<8x128xf32>
    %496 = vector.extract_strided_slice %488 {offsets = [0, 256], sizes = [8, 128], strides = [1, 1]} : vector<8x384xf32> to vector<8x128xf32>
    %497 = math.tanh %495 : vector<8x128xf32>
    %498 = arith.mulf %496, %497 : vector<8x128xf32>
    %499 = arith.truncf %498 : vector<8x128xf32> to vector<8x128xbf16>
    %c0_94 = arith.constant 0 : index
    %c0_95 = arith.constant 0 : index
    %500 = vector.load %arg14[%c0_94, %c0_95] : memref<128x6xbf16, #tpu.memory_space<vmem>>, vector<128x6xbf16>
    %cst_96 = arith.constant dense<0.000000e+00> : vector<8x6xf32>
    %501 = tpu.matmul %499, %500, %cst_96 {dimension_numbers = #tpu.dot_dimension_numbers<[1], [0], [0], [1], [0, 0, 1, 1], [], []>} : vector<8x128xbf16>, vector<128x6xbf16>, vector<8x6xf32> -> vector<8x6xf32>
    %c0_97 = arith.constant 0 : index
    %c0_98 = arith.constant 0 : index
    %502 = vector.load %arg15[%c0_97, %c0_98] : memref<1x6xf32, #tpu.memory_space<vmem>>, vector<1x6xf32>
    %503 = vector.broadcast %502 : vector<1x6xf32> to vector<8x6xf32>
    %504 = arith.addf %501, %503 : vector<8x6xf32>
    %c0_99 = arith.constant 0 : index
    %c0_100 = arith.constant 0 : index
    %505 = vector.load %arg16[%c0_99, %c0_100] : memref<8x6xf32, #tpu.memory_space<vmem>>, vector<8x6xf32>
    tpu.vector_store %arg16[%c0_99, %c0_100], %504 {strides = array<i32>} : memref<8x6xf32, #tpu.memory_space<vmem>>, vector<8x6xf32>,
    return
  }
}

</mosaic_0001>

<bundles_post_ra>
// kernel: ablstm_forward.1
= control target key start
LH: loop header
LB: loop body
LE: loop exit
PB: predicated region body
PF: predicated region fallthrough
CT: control target
= control target key end

     0   :  { %s7912_s0 = inlined_call_operand.vmem [shape: f32[8], index: 0, kind: input, shape index: {}]   ;;  %s7913_s1 = inlined_call_operand.vmem [shape: bf16[8,648], index: 1, kind: input, shape index: {}]   ;;  %s7914_s2 = inlined_call_operand.vmem [shape: f32[8,128], index: 2, kind: input, shape index: {}]   ;;  %s7915_s3 = inlined_call_operand.hbm [shape: bf16[648,512], index: 3, kind: input, shape index: {}]   ;;  %s7916_s4 = inlined_call_operand.vmem [shape: f32[1,512], index: 4, kind: input, shape index: {}]   ;;  %s7917_s5 = inlined_call_operand.hbm [shape: bf16[128,512], index: 5, kind: input, shape index: {}]   ;;  %s7918_s6 = inlined_call_operand.vmem [shape: f32[1,512], index: 6, kind: input, shape index: {}]   ;;  %s7919_s7 = inlined_call_operand.vmem [shape: f32[1,512], index: 7, kind: input, shape index: {}]   ;;  %s7920_s8 = inlined_call_operand.vmem [shape: f32[1,512], index: 8, kind: input, shape index: {}]   ;;  %s7921_s9 = inlined_call_operand.vmem [shape: f32[1,512], index: 9, kind: input, shape index: {}]   ;;  %s7922_s10 = inlined_call_operand.hbm [shape: bf16[128,512], index: 10, kind: input, shape index: {}]   ;;  %s7923_s11 = inlined_call_operand.vmem [shape: bf16[256,512], index: 11, kind: input, shape index: {}]   ;;  %s7924_s12 = inlined_call_operand.vmem [shape: f32[1,512], index: 12, kind: input, shape index: {}]   ;;  %s7925_s13 = inlined_call_operand.hbm [shape: bf16[128,512], index: 13, kind: input, shape index: {}]   ;;  %s7926_s14 = inlined_call_operand.vmem [shape: bf16[128,6], index: 14, kind: input, shape index: {}]   ;;  %s7927_s15 = inlined_call_operand.vmem [shape: f32[1,6], index: 15, kind: input, shape index: {}]   ;;  %s7928_s16 = inlined_call_operand.vmem [shape: f32[8,6], index: 16, kind: output, shape index: {}]  }
   0x1   :  { %7983 = sst [smem:[#allocation61_spill]] %s7912_s0 }
   0x2   :  { %21 = vsyncpa [#allocation5], 0 }
   0x3   :  { %22 = vsyncpa [#allocation4], 0 }
   0x4   :  { %23 = vsyncpa [#allocation8], 0 }
   0x5   :  { %24 = vsyncpa [#allocation11], 0  ;;  %s7984_s23 = sld [smem:[#allocation61_spill]]  ;;  %s6212_s25 = smov [#allocation7]  }
   0x6   :  { %s58_s26 = sshll.u32 %s6212_s25, 4  ;;  %s59_s26 = int_to_ptr.vmem [resolvable:$true] %s58_s26 }
   0x7   :  { %s6120_s27 = scalar_lea.vmem %s59_s26, 4096  ;;  %p6125_p1 = scmp.lt.s32.totalorder %s59_s26, %s59_s26 }
   0x8   :  { %p6121_p0 = scmp.ne.s32.totalorder %s59_s26, %s6120_s27  ;;  %p6126_p2 = scmp.lt.s32.totalorder %s6120_s27, %s6120_s27 }
   0xa   :  { %p6127_p3 = por %p6126_p2, %p6125_p1 }
   0xb   :  { %s31_s24 = sshll.u32 %s7984_s23, 4  ;;  %s32_s24 = int_to_ptr.vmem [resolvable:$true] %s31_s24 }
   0xc   :  { %p6128_p4 = pnand %p6127_p3, %p6121_p0 }
   0xe   :  { %6131 = shalt.err (!%p6128_p4)
}
   0xf   :  { %s6213_s28 = smov 256   ;;  %s6214_s29 = smov 16  }
  0x10   :  { %64 = dma.hbm_to_vmem [thread:$0]  %s7917_s5, 4096, %s59_s26, [#allocation8], %s6213_s28, %s6213_s28, %s6214_s29  }
  0x11   :  { %s6132_s17 = scalar_lea.vmem %s32_s24, 16  ;;  %p6137_p6 = scmp.lt.s32.totalorder %s32_s24, %s32_s24 }
  0x12   :  { %p6133_p5 = scmp.ne.s32.totalorder %s32_s24, %s6132_s17  ;;  %p6138_p7 = scmp.lt.s32.totalorder %s6132_s17, %s6132_s17 }
  0x14   :  { %p6139_p8 = por %p6138_p7, %p6137_p6 }
  0x16   :  { %p6140_p9 = pnand %p6139_p8, %p6133_p5 }
  0x18   :  { %6143 = shalt.err (!%p6140_p9)
}
  0x19   :  { %s6215_s18 = smov [#allocation3]   ;;  %s6216_s19 = smov [#allocation6]  }
  0x1a   :  { %34 = dma.vmem_to_smem %s32_s24, 16, %s6215_s18, [#allocation5]  }
  0x1b   :  { %s44_s20 = sshll.u32 %s6216_s19, 4  ;;  %s6217_s21 = smov [#allocation9]   ;;  %s45_s20 = int_to_ptr.vmem [resolvable:$true] %s44_s20 }
  0x1c   :  { %s78_s22 = sshll.u32 %s6217_s21, 4  ;;  %s6152_s23 = scalar_lea.vmem %s45_s20, 20736  ;;  %s79_s22 = int_to_ptr.vmem [resolvable:$true] %s78_s22 }
  0x1d   :  { %p6153_p10 = scmp.ne.s32.totalorder %s45_s20, %s6152_s23  ;;  %p6157_p11 = scmp.lt.s32.totalorder %s45_s20, %s45_s20 }
  0x1e   :  { %p6158_p12 = scmp.lt.s32.totalorder %s6152_s23, %s6152_s23 }
  0x20   :  { %p6159_p13 = por %p6158_p12, %p6157_p11 }
  0x22   :  { %p6160_p0 = pnand %p6159_p13, %p6153_p10 }
  0x24   :  { %6163 = shalt.err (!%p6160_p0)
}
  0x25   :  { %50 = dma.hbm_to_vmem [thread:$0]  %s7915_s3, 20736, %s45_s20, [#allocation4], %s6213_s28, %s6213_s28, %s6214_s29  }
  0x26   :  { %s6172_s24 = scalar_lea.vmem %s79_s22, 4096  ;;  %p6177_p2 = scmp.lt.s32.totalorder %s79_s22, %s79_s22 }
  0x27   :  { %p6173_p1 = scmp.ne.s32.totalorder %s79_s22, %s6172_s24  ;;  %p6178_p3 = scmp.lt.s32.totalorder %s6172_s24, %s6172_s24 }
  0x29   :  { %p6179_p4 = por %p6178_p3, %p6177_p2 }
  0x2b   :  { %p6180_p5 = pnand %p6179_p4, %p6173_p1 }
  0x2d   :  { %6183 = shalt.err (!%p6180_p5)
}
  0x2e   :  { %84 = dma.hbm_to_vmem [thread:$0]  %s7922_s10, 4096, %s79_s22, [#allocation8], %s6213_s28, %s6213_s28, %s6214_s29  }
  0x2f   :  { %s6218_s30 = smov [#allocation10]  }
  0x30   :  { %s94_s0 = sshll.u32 %s6218_s30, 4  ;;  %s95_s0 = int_to_ptr.vmem [resolvable:$true] %s94_s0 }
  0x31   :  { %s6192_s17 = scalar_lea.vmem %s95_s0, 4096  ;;  %p6197_p7 = scmp.lt.s32.totalorder %s95_s0, %s95_s0 }
  0x32   :  { %p6193_p6 = scmp.ne.s32.totalorder %s95_s0, %s6192_s17  ;;  %p6198_p8 = scmp.lt.s32.totalorder %s6192_s17, %s6192_s17 }
  0x34   :  { %p6199_p9 = por %p6198_p8, %p6197_p7 }
  0x36   :  { %p6200_p10 = pnand %p6199_p9, %p6193_p6 }
  0x38   :  { %6203 = shalt.err (!%p6200_p10)
}
  0x39   :  { %100 = dma.hbm_to_vmem [thread:$0]  %s7925_s13, 4096, %s95_s0, [#allocation11], %s6213_s28, %s6213_s28, %s6214_s29  }
  0x3a   :  { %6204 = dma.done.wait [#allocation5], 16  }
  0x3b   :  { %6205 = vsyncadd [#allocation5], 4294967280 }
  0x3c   :  { %6206 = dma.done.wait [#allocation4], 20736  }
  0x3d   :  { %6207 = vsyncadd [#allocation4], 4294946560 }
  0x3e   :  { %6208 = dma.done.wait [#allocation8], 8192  }
  0x3f   :  { %6209 = vsyncadd [#allocation8], 4294959104 }
  0x40   :  { %6210 = dma.done.wait [#allocation11], 4096  }
  0x41   :  { %6211 = vsyncadd [#allocation11], 4294963200 }
  0x42   :  { %120 = sfence }
  0x43   :  { %v5294_v0 = vld [vmem:[#allocation6 + $0xe4] ss:$16 sps:$4 sm:$0xff]   ;;  %v5298_v2 = vld [vmem:[#allocation6 + $0xe0] ss:$16 sps:$4 sm:$0xff]   ;;  %v125_v48 = vld [vmem:[%s7913_s1 + $0x8] sm:$0xff]  ;;  %vm1141_vm0 = vcmask 64512  }
  0x44   :  { %v5296_v1 = vld [vmem:[#allocation6 + $0x2e4] ss:$16 sps:$4 sm:$0xff]   ;;  %1158 = vmatprep.subr.bf16.mxu0 %v5294_v0  ;;  %v5299_v3 = vld [vmem:[#allocation6 + $0x2e0] ss:$16 sps:$4 sm:$0xff]   ;;  %v6349_v51 = vcombine.high %v125_v48, %v125_v48  ;;  %vm1145_vm1 = vcmask 1043456   ;;  %s4841_s5 = sld [smem:[#allocation3 + $0x1]] }
  0x45   :  { %1199 = vmatprep.subr.bf16.mxu1 %v5296_v1  ;;  %v5300_v4 = vld [vmem:[#allocation6 + $0xc4] ss:$16 sps:$4 sm:$0xff]   ;;  %1159 = vmatpush1.bf16.msra.mxu0 %v5298_v2  ;;  %v5304_v6 = vld [vmem:[#allocation6 + $0xc0] ss:$16 sps:$4 sm:$0xff]   ;;  %s5049_s25 = sld [smem:[#allocation3 + $0x3]]  ;;  %vm6228_vm6 = vmmov 0  }
  0x46   :  { %1200 = vmatpush1.bf16.msra.mxu1 %v5299_v3  ;;  %v5302_v5 = vld [vmem:[#allocation6 + $0x2c4] ss:$16 sps:$4 sm:$0xff]   ;;  %1160 = vmatprep.subr.bf16.mxu0 %v5300_v4  ;;  %v5305_v7 = vld [vmem:[#allocation6 + $0x2c0] ss:$16 sps:$4 sm:$0xff]   ;;  %s5050_s27 = sld [smem:[#allocation3 + $0x4]]  ;;  %vm4831_vm7 = vcmask 48128  }
  0x47   :  { %1201 = vmatprep.subr.bf16.mxu1 %v5302_v5  ;;  %v5306_v8 = vld [vmem:[#allocation6 + $0xa4] ss:$16 sps:$4 sm:$0xff]   ;;  %v5310_v10 = vld [vmem:[#allocation6 + $0xa0] ss:$16 sps:$4 sm:$0xff]   ;;  %1231 = vmatprep.mubr.bf16.mxu1 %v6349_v51  ;;  %v5399_v5 = vld [vmem:[#allocation6 + $0xec] ss:$16 sps:$4 sm:$0xff]  }
  0x48   :  { %v5308_v9 = vld [vmem:[#allocation6 + $0x2a4] ss:$16 sps:$4 sm:$0xff]   ;;  %v5311_v11 = vld [vmem:[#allocation6 + $0x2a0] ss:$16 sps:$4 sm:$0xff]   ;;  %s5051_s30 = sld [smem:[#allocation3 + $0x5]] }
  0x49   :  { %1161 = vmatpush1.bf16.msra.mxu0 %v5304_v6  ;;  %v5312_v12 = vld [vmem:[#allocation6 + $0x84] ss:$16 sps:$4 sm:$0xff]   ;;  %v5316_v14 = vld [vmem:[#allocation6 + $0x80] ss:$16 sps:$4 sm:$0xff]   ;;  %s5052_s0 = sld [smem:[#allocation3 + $0x6]] }
  0x4a   :  { %1202 = vmatpush1.bf16.msra.mxu1 %v5305_v7  ;;  %1162 = vmatprep.subr.bf16.mxu0 %v5306_v8  ;;  %v5314_v13 = vld [vmem:[#allocation6 + $0x284] ss:$16 sps:$4 sm:$0xff]   ;;  %v5317_v15 = vld [vmem:[#allocation6 + $0x280] ss:$16 sps:$4 sm:$0xff]   ;;  %v6355_v7 = vcombine.low %v125_v48, %v125_v48  ;;  %s5053_s17 = sld [smem:[#allocation3 + $0x7]] }
  0x4b   :  { %1203 = vmatprep.subr.bf16.mxu1 %v5308_v9  ;;  %v5318_v16 = vld [vmem:[#allocation6 + $0x64] ss:$16 sps:$4 sm:$0xff]   ;;  %v5322_v18 = vld [vmem:[#allocation6 + $0x60] ss:$16 sps:$4 sm:$0xff]   ;;  %v5397_v9 = vld [vmem:[#allocation6 + $0xe8] ss:$16 sps:$4 sm:$0xff]  }
  0x4c   :  { %v5320_v17 = vld [vmem:[#allocation6 + $0x264] ss:$16 sps:$4 sm:$0xff]   ;;  %v5323_v19 = vld [vmem:[#allocation6 + $0x260] ss:$16 sps:$4 sm:$0xff]  }
  0x4d   :  { %1163 = vmatpush1.bf16.msra.mxu0 %v5310_v10  ;;  %v5324_v20 = vld [vmem:[#allocation6 + $0x44] ss:$16 sps:$4 sm:$0xff]   ;;  %v5328_v22 = vld [vmem:[#allocation6 + $0x40] ss:$16 sps:$4 sm:$0xff]  }
  0x4e   :  { %1204 = vmatpush1.bf16.msra.mxu1 %v5311_v11  ;;  %1164 = vmatprep.subr.bf16.mxu0 %v5312_v12  ;;  %v5326_v21 = vld [vmem:[#allocation6 + $0x244] ss:$16 sps:$4 sm:$0xff]   ;;  %v5329_v23 = vld [vmem:[#allocation6 + $0x240] ss:$16 sps:$4 sm:$0xff]   ;;  %v5405_v11 = vld [vmem:[#allocation6 + $0xcc] ss:$16 sps:$4 sm:$0xff]  }
  0x4f   :  { %1205 = vmatprep.subr.bf16.mxu1 %v5314_v13  ;;  %v5330_v24 = vld [vmem:[#allocation6 + $0x24] ss:$16 sps:$4 sm:$0xff]   ;;  %v5334_v26 = vld [vmem:[#allocation6 + $0x20] ss:$16 sps:$4 sm:$0xff]  }
  0x50   :  { %v5332_v25 = vld [vmem:[#allocation6 + $0x224] ss:$16 sps:$4 sm:$0xff]   ;;  %v5335_v27 = vld [vmem:[#allocation6 + $0x220] ss:$16 sps:$4 sm:$0xff]  }
  0x51   :  { %1165 = vmatpush1.bf16.msra.mxu0 %v5316_v14  ;;  %v5336_v28 = vld [vmem:[#allocation6 + $0x4] ss:$16 sps:$4 sm:$0xff]   ;;  %v5340_v30 = vld [vmem:[#allocation6] ss:$16 sps:$4 sm:$0xff]   ;;  %v5403_v14 = vld [vmem:[#allocation6 + $0xc8] ss:$16 sps:$4 sm:$0xff]  }
  0x52   :  { %1206 = vmatpush1.bf16.msra.mxu1 %v5317_v15  ;;  %1166 = vmatprep.subr.bf16.mxu0 %v5318_v16  ;;  %v5338_v29 = vld [vmem:[#allocation6 + $0x204] ss:$16 sps:$4 sm:$0xff]   ;;  %v5341_v31 = vld [vmem:[#allocation6 + $0x200] ss:$16 sps:$4 sm:$0xff]  }
  0x53   :  { %1207 = vmatprep.subr.bf16.mxu1 %v5320_v17  ;;  %v5342_v32 = vld [vmem:[#allocation6 + $0x1e4] ss:$16 sps:$4 sm:$0xff]   ;;  %v5346_v34 = vld [vmem:[#allocation6 + $0x1e0] ss:$16 sps:$4 sm:$0xff]   ;;  %v5411_v17 = vld [vmem:[#allocation6 + $0xac] ss:$16 sps:$4 sm:$0xff]  }
  0x54   :  { %v5344_v33 = vld [vmem:[#allocation6 + $0x3e4] ss:$16 sps:$4 sm:$0xff]   ;;  %v5347_v35 = vld [vmem:[#allocation6 + $0x3e0] ss:$16 sps:$4 sm:$0xff]  }
  0x55   :  { %1167 = vmatpush1.bf16.msra.mxu0 %v5322_v18  ;;  %v5348_v36 = vld [vmem:[#allocation6 + $0x1c4] ss:$16 sps:$4 sm:$0xff]   ;;  %v5352_v38 = vld [vmem:[#allocation6 + $0x1c0] ss:$16 sps:$4 sm:$0xff]  }
  0x56   :  { %1208 = vmatpush1.bf16.msra.mxu1 %v5323_v19  ;;  %1168 = vmatprep.subr.bf16.mxu0 %v5324_v20  ;;  %v5350_v37 = vld [vmem:[#allocation6 + $0x3c4] ss:$16 sps:$4 sm:$0xff]   ;;  %v5353_v39 = vld [vmem:[#allocation6 + $0x3c0] ss:$16 sps:$4 sm:$0xff]   ;;  %v5409_v19 = vld [vmem:[#allocation6 + $0xa8] ss:$16 sps:$4 sm:$0xff]  }
  0x57   :  { %1209 = vmatprep.subr.bf16.mxu1 %v5326_v21  ;;  %v5354_v40 = vld [vmem:[#allocation6 + $0x1a4] ss:$16 sps:$4 sm:$0xff]   ;;  %v5358_v42 = vld [vmem:[#allocation6 + $0x1a0] ss:$16 sps:$4 sm:$0xff]   ;;  %v5417_v21 = vld [vmem:[#allocation6 + $0x8c] ss:$16 sps:$4 sm:$0xff]  }
  0x58   :  { %v5356_v41 = vld [vmem:[#allocation6 + $0x3a4] ss:$16 sps:$4 sm:$0xff]   ;;  %v5359_v43 = vld [vmem:[#allocation6 + $0x3a0] ss:$16 sps:$4 sm:$0xff]  }
  0x59   :  { %1169 = vmatpush1.bf16.msra.mxu0 %v5328_v22  ;;  %v5360_v44 = vld [vmem:[#allocation6 + $0x184] ss:$16 sps:$4 sm:$0xff]   ;;  %v5364_v49 = vld [vmem:[#allocation6 + $0x180] ss:$16 sps:$4 sm:$0xff]  }
  0x5a   :  { %1210 = vmatpush1.bf16.msra.mxu1 %v5329_v23  ;;  %1170 = vmatprep.subr.bf16.mxu0 %v5330_v24  ;;  %v5362_v45 = vld [vmem:[#allocation6 + $0x384] ss:$16 sps:$4 sm:$0xff]   ;;  %v5365_v50 = vld [vmem:[#allocation6 + $0x380] ss:$16 sps:$4 sm:$0xff]   ;;  %v5415_v23 = vld [vmem:[#allocation6 + $0x88] ss:$16 sps:$4 sm:$0xff]  }
  0x5b   :  { %1211 = vmatprep.subr.bf16.mxu1 %v5332_v25  ;;  %v124_v46 = vld [vmem:[%s7913_s1] sm:$0xff]  ;;  %v6360_v12 = vld [vmem:[%s7913_s1 + $0x10] sm:$0xff]  ;;  %v5423_v25 = vld [vmem:[#allocation6 + $0x6c] ss:$16 sps:$4 sm:$0xff]  }
  0x5c   :  { %v6344_v47 = vcombine.high %v124_v46, %v124_v46  ;;  %v5366_v52 = vld [vmem:[#allocation6 + $0x164] ss:$16 sps:$4 sm:$0xff]   ;;  %v5370_v54 = vld [vmem:[#allocation6 + $0x160] ss:$16 sps:$4 sm:$0xff]   ;;  %v6353_v6 = vcombine.low %v124_v46, %v124_v46  ;;  %v6366_v15 = vcombine.high %v6360_v12, %v6360_v12  ;;  %v6375_v48 = vcombine.low %v6360_v12, %v6360_v12  ;;  %v5488_v12 = vld [vmem:[#allocation6 + $0x228] ss:$16 sps:$4 sm:$0xff]  }
  0x5d   :  { %1171 = vmatpush1.bf16.msra.mxu0 %v5334_v26  ;;  %v5368_v53 = vld [vmem:[#allocation6 + $0x364] ss:$16 sps:$4 sm:$0xff]   ;;  %v5371_v55 = vld [vmem:[#allocation6 + $0x360] ss:$16 sps:$4 sm:$0xff]  }
  0x5e   :  { %1212 = vmatpush1.bf16.msra.mxu1 %v5335_v27  ;;  %1172 = vmatprep.subr.bf16.mxu0 %v5336_v28  ;;  %v5372_v56 = vld [vmem:[#allocation6 + $0x144] ss:$16 sps:$4 sm:$0xff]   ;;  %v5376_v58 = vld [vmem:[#allocation6 + $0x140] ss:$16 sps:$4 sm:$0xff]   ;;  %v5421_v27 = vld [vmem:[#allocation6 + $0x68] ss:$16 sps:$4 sm:$0xff]  }
  0x5f   :  { %1213 = vmatprep.subr.bf16.mxu1 %v5338_v29  ;;  %1190 = vmatprep.mubr.bf16.mxu0 %v6344_v47  ;;  %v5374_v57 = vld [vmem:[#allocation6 + $0x344] ss:$16 sps:$4 sm:$0xff]   ;;  %v5377_v59 = vld [vmem:[#allocation6 + $0x340] ss:$16 sps:$4 sm:$0xff]   ;;  %v5429_v29 = vld [vmem:[#allocation6 + $0x4c] ss:$16 sps:$4 sm:$0xff]  }
  0x60   :  { %v5378_v60 = vld [vmem:[#allocation6 + $0x124] ss:$16 sps:$4 sm:$0xff]   ;;  %v5382_v62 = vld [vmem:[#allocation6 + $0x120] ss:$16 sps:$4 sm:$0xff]  }
  0x61   :  { %1173 = vmatpush1.bf16.msra.mxu0 %v5340_v30  ;;  %v5380_v61 = vld [vmem:[#allocation6 + $0x324] ss:$16 sps:$4 sm:$0xff]   ;;  %v5383_v63 = vld [vmem:[#allocation6 + $0x320] ss:$16 sps:$4 sm:$0xff]  }
  0x62   :  { %1214 = vmatpush1.bf16.msra.mxu1 %v5341_v31  ;;  %1174 = vmatprep.subr.bf16.mxu0 %v5342_v32  ;;  %v5384_v0 = vld [vmem:[#allocation6 + $0x104] ss:$16 sps:$4 sm:$0xff]   ;;  %v5388_v2 = vld [vmem:[#allocation6 + $0x100] ss:$16 sps:$4 sm:$0xff]   ;;  %v5427_v31 = vld [vmem:[#allocation6 + $0x48] ss:$16 sps:$4 sm:$0xff]  }
  0x63   :  { %1215 = vmatprep.subr.bf16.mxu1 %v5344_v33  ;;  %v5386_v1 = vld [vmem:[#allocation6 + $0x304] ss:$16 sps:$4 sm:$0xff]   ;;  %v5389_v3 = vld [vmem:[#allocation6 + $0x300] ss:$16 sps:$4 sm:$0xff]   ;;  %v5435_v33 = vld [vmem:[#allocation6 + $0x2c] ss:$16 sps:$4 sm:$0xff]  }
  0x64   :  { %v5396_v4 = vld [vmem:[#allocation6 + $0x4e4] ss:$16 sps:$4 sm:$0xff]   ;;  %v5394_v8 = vld [vmem:[#allocation6 + $0x4e0] ss:$16 sps:$4 sm:$0xff]  }
  0x65   :  { %1175 = vmatpush2.bf16.msra.mxu0 %v5346_v34  ;;  %v5402_v10 = vld [vmem:[#allocation6 + $0x4c4] ss:$16 sps:$4 sm:$0xff]   ;;  %v5400_v13 = vld [vmem:[#allocation6 + $0x4c0] ss:$16 sps:$4 sm:$0xff]  }
  0x66   :  { %1216 = vmatpush2.bf16.msra.mxu1 %v5347_v35  ;;  %1176 = vmatprep.subr.bf16.mxu0 %v5348_v36  ;;  %v5408_v16 = vld [vmem:[#allocation6 + $0x4a4] ss:$16 sps:$4 sm:$0xff]   ;;  %v5406_v18 = vld [vmem:[#allocation6 + $0x4a0] ss:$16 sps:$4 sm:$0xff]   ;;  %v5433_v35 = vld [vmem:[#allocation6 + $0x28] ss:$16 sps:$4 sm:$0xff]  }
  0x67   :  { %1217 = vmatprep.subr.bf16.mxu1 %v5350_v37  ;;  %v5414_v20 = vld [vmem:[#allocation6 + $0x484] ss:$16 sps:$4 sm:$0xff]   ;;  %v5412_v22 = vld [vmem:[#allocation6 + $0x480] ss:$16 sps:$4 sm:$0xff]   ;;  %v5441_v37 = vld [vmem:[#allocation6 + $0xc] ss:$16 sps:$4 sm:$0xff]  }
  0x68   :  { %v5420_v24 = vld [vmem:[#allocation6 + $0x464] ss:$16 sps:$4 sm:$0xff]   ;;  %v5418_v26 = vld [vmem:[#allocation6 + $0x460] ss:$16 sps:$4 sm:$0xff]  }
  0x69   :  { %1177 = vmatpush2.bf16.msra.mxu0 %v5352_v38  ;;  %v5426_v28 = vld [vmem:[#allocation6 + $0x444] ss:$16 sps:$4 sm:$0xff]   ;;  %v5424_v30 = vld [vmem:[#allocation6 + $0x440] ss:$16 sps:$4 sm:$0xff]  }
  0x6a   :  { %1218 = vmatpush2.bf16.msra.mxu1 %v5353_v39  ;;  %1178 = vmatprep.subr.bf16.mxu0 %v5354_v40  ;;  %v5432_v32 = vld [vmem:[#allocation6 + $0x424] ss:$16 sps:$4 sm:$0xff]   ;;  %v5430_v34 = vld [vmem:[#allocation6 + $0x420] ss:$16 sps:$4 sm:$0xff]   ;;  %v5439_v40 = vld [vmem:[#allocation6 + $0x8] ss:$16 sps:$4 sm:$0xff]  }
  0x6b   :  { %1219 = vmatprep.subr.bf16.mxu1 %v5356_v41  ;;  %v5438_v36 = vld [vmem:[#allocation6 + $0x404] ss:$16 sps:$4 sm:$0xff]   ;;  %v5436_v39 = vld [vmem:[#allocation6 + $0x400] ss:$16 sps:$4 sm:$0xff]  }
  0x6c   :  { %v287_v38 = vld [vmem:[#allocation6 + $0x500] sm:$0xff] }
  0x6d   :  { %1179 = vmatpush2.bf16.msra.mxu0 %v5358_v42  ;;  %v5009_v41 = vcombine.high %v287_v38, %v287_v38  ;;  %v5445_v42 = vld [vmem:[#allocation6 + $0x1ec] ss:$16 sps:$4 sm:$0xff]  }
  0x6e   :  { %1220 = vmatpush2.bf16.msra.mxu1 %v5359_v43  ;;  %1180 = vmatprep.subr.bf16.mxu0 %v5360_v44  ;;  %v5008_v43 = vcombine.low %v287_v38, %v287_v38  ;;  %v5443_v44 = vld [vmem:[#allocation6 + $0x1e8] ss:$16 sps:$4 sm:$0xff]  }
  0x6f   :  { %1221 = vmatprep.subr.bf16.mxu1 %v5362_v45  ;;  %v5451_v45 = vld [vmem:[#allocation6 + $0x1cc] ss:$16 sps:$4 sm:$0xff]   ;;  %v5527_v38 = vld [vmem:[#allocation6 + $0x348] ss:$16 sps:$4 sm:$0xff]  }
  0x70   :  { %v1147_v46 = vsel %vm1145_vm1, %v5008_v43, 0  ;;  %v5533_v43 = vld [vmem:[#allocation6 + $0x328] ss:$16 sps:$4 sm:$0xff]  }
  0x71   :  { %1181 = vmatpush2.bf16.msra.mxu0 %v5364_v49  ;;  %v5449_v49 = vld [vmem:[#allocation6 + $0x1c8] ss:$16 sps:$4 sm:$0xff]  }
  0x72   :  { %1222 = vmatpush2.bf16.msra.mxu1 %v5365_v50  ;;  %1182 = vmatprep.subr.bf16.mxu0 %v5366_v52  ;;  %v5452_v50 = vld [vmem:[#allocation6 + $0x2e8] ss:$16 sps:$4 sm:$0xff]   ;;  %v5457_v52 = vld [vmem:[#allocation6 + $0x1ac] ss:$16 sps:$4 sm:$0xff]  }
  0x73   :  { %1223 = vmatprep.subr.bf16.mxu1 %v5368_v53  ;;  %v5460_v53 = vld [vmem:[#allocation6 + $0x2cc] ss:$16 sps:$4 sm:$0xff]  }
  0x75   :  { %1183 = vmatpush2.bf16.msra.mxu0 %v5370_v54  ;;  %v5455_v54 = vld [vmem:[#allocation6 + $0x1a8] ss:$16 sps:$4 sm:$0xff]  }
  0x76   :  { %1224 = vmatpush2.bf16.msra.mxu1 %v5371_v55  ;;  %1184 = vmatprep.subr.bf16.mxu0 %v5372_v56  ;;  %v5458_v55 = vld [vmem:[#allocation6 + $0x2c8] ss:$16 sps:$4 sm:$0xff]   ;;  %v5463_v56 = vld [vmem:[#allocation6 + $0x18c] ss:$16 sps:$4 sm:$0xff]  }
  0x77   :  { %1225 = vmatprep.subr.bf16.mxu1 %v5374_v57  ;;  %v5466_v57 = vld [vmem:[#allocation6 + $0x2ac] ss:$16 sps:$4 sm:$0xff]  }
  0x79   :  { %1185 = vmatpush2.bf16.msra.mxu0 %v5376_v58  ;;  %v5461_v58 = vld [vmem:[#allocation6 + $0x188] ss:$16 sps:$4 sm:$0xff]  }
  0x7a   :  { %1226 = vmatpush2.bf16.msra.mxu1 %v5377_v59  ;;  %1186 = vmatprep.subr.bf16.mxu0 %v5378_v60  ;;  %v5464_v59 = vld [vmem:[#allocation6 + $0x2a8] ss:$16 sps:$4 sm:$0xff]   ;;  %v5469_v60 = vld [vmem:[#allocation6 + $0x16c] ss:$16 sps:$4 sm:$0xff]  }
  0x7b   :  { %1227 = vmatprep.subr.bf16.mxu1 %v5380_v61  ;;  %v5472_v61 = vld [vmem:[#allocation6 + $0x28c] ss:$16 sps:$4 sm:$0xff]  }
  0x7d   :  { %1187 = vmatpush2.bf16.msra.mxu0 %v5382_v62  ;;  %v5467_v62 = vld [vmem:[#allocation6 + $0x168] ss:$16 sps:$4 sm:$0xff]  }
  0x7e   :  { %1228 = vmatpush2.bf16.msra.mxu1 %v5383_v63  ;;  %1188 = vmatprep.subr.bf16.mxu0 %v5384_v0  ;;  %v5470_v63 = vld [vmem:[#allocation6 + $0x288] ss:$16 sps:$4 sm:$0xff]   ;;  %v5475_v0 = vld [vmem:[#allocation6 + $0x14c] ss:$16 sps:$4 sm:$0xff]  }
  0x7f   :  { %1229 = vmatprep.subr.bf16.mxu1 %v5386_v1  ;;  %v5478_v1 = vld [vmem:[#allocation6 + $0x26c] ss:$16 sps:$4 sm:$0xff]  }
  0x81   :  { %1189 = vmatpush2.bf16.msra.mxu0 %v5388_v2  ;;  %v5473_v2 = vld [vmem:[#allocation6 + $0x148] ss:$16 sps:$4 sm:$0xff]  }
  0x82   :  { %1230 = vmatpush2.bf16.msra.mxu1 %v5389_v3  ;;  %1240 = vmatprep.subr.bf16.mxu0 %v5396_v4  ;;  %v5476_v3 = vld [vmem:[#allocation6 + $0x268] ss:$16 sps:$4 sm:$0xff]   ;;  %v5481_v4 = vld [vmem:[#allocation6 + $0x12c] ss:$16 sps:$4 sm:$0xff]  }
  0x83   :  { %1281 = vmatprep.subr.bf16.mxu1 %v5399_v5  ;;  %v5479_v5 = vld [vmem:[#allocation6 + $0x128] ss:$16 sps:$4 sm:$0xff]  }
  0x84   :  { %1191 = vmatmul.mubr.bf16.vlgmr.msra.gmra.mxu0 %v6353_v6 }
  0x85   :  { %1232 = vmatmul.mubr.bf16.vlgmr.msra.gmra.mxu1 %v6355_v7  ;;  %1241 = vmatpush1.bf16.msra.mxu0 %v5394_v8  ;;  %v5482_v8 = vld [vmem:[#allocation6 + $0x248] ss:$16 sps:$4 sm:$0xff]  }
  0x86   :  { %1282 = vmatpush1.bf16.msra.mxu1 %v5397_v9  ;;  %1242 = vmatprep.subr.bf16.mxu0 %v5402_v10  ;;  %v5487_v9 = vld [vmem:[#allocation6 + $0x10c] ss:$16 sps:$4 sm:$0xff]  }
  0x87   :  { %1283 = vmatprep.subr.bf16.mxu1 %v5405_v11  ;;  %5013 = vmatprep.mubr.msk.bf16.mxu0 %vm1141_vm0, %v6366_v15  ;;  %v5490_v10 = vld [vmem:[#allocation6 + $0x22c] ss:$16 sps:$4 sm:$0xff]   ;;  %v5485_v11 = vld [vmem:[#allocation6 + $0x108] ss:$16 sps:$4 sm:$0xff]  }
  0x88   :  { %1313 = vmatprep.mubr.bf16.mxu1 %v6344_v47  ;;  %v5454_v47 = vld [vmem:[#allocation6 + $0x2ec] ss:$16 sps:$4 sm:$0xff]  }
  0x89   :  { %1243 = vmatpush1.bf16.msra.mxu0 %v5400_v13  ;;  %v5493_v13 = vld [vmem:[#allocation6 + $0x20c] ss:$16 sps:$4 sm:$0xff]  }
  0x8a   :  { %1284 = vmatpush1.bf16.msra.mxu1 %v5403_v14  ;;  %1244 = vmatprep.subr.bf16.mxu0 %v5408_v16  ;;  %v5496_v14 = vld [vmem:[#allocation6 + $0x4ec] ss:$16 sps:$4 sm:$0xff]   ;;  %v5491_v16 = vld [vmem:[#allocation6 + $0x208] ss:$16 sps:$4 sm:$0xff]  }
  0x8b   :  { %1285 = vmatprep.subr.bf16.mxu1 %v5411_v17  ;;  %v5494_v17 = vld [vmem:[#allocation6 + $0x4e8] ss:$16 sps:$4 sm:$0xff]  }
  0x8d   :  { %1245 = vmatpush1.bf16.msra.mxu0 %v5406_v18  ;;  %v5499_v18 = vld [vmem:[#allocation6 + $0x3ec] ss:$16 sps:$4 sm:$0xff]  }
  0x8e   :  { %1286 = vmatpush1.bf16.msra.mxu1 %v5409_v19  ;;  %1246 = vmatprep.subr.bf16.mxu0 %v5414_v20  ;;  %v5502_v19 = vld [vmem:[#allocation6 + $0x4cc] ss:$16 sps:$4 sm:$0xff]   ;;  %v5497_v20 = vld [vmem:[#allocation6 + $0x3e8] ss:$16 sps:$4 sm:$0xff]  }
  0x8f   :  { %1287 = vmatprep.subr.bf16.mxu1 %v5417_v21  ;;  %v5500_v21 = vld [vmem:[#allocation6 + $0x4c8] ss:$16 sps:$4 sm:$0xff]  }
  0x91   :  { %1247 = vmatpush1.bf16.msra.mxu0 %v5412_v22  ;;  %v5505_v22 = vld [vmem:[#allocation6 + $0x3cc] ss:$16 sps:$4 sm:$0xff]  }
  0x92   :  { %1288 = vmatpush1.bf16.msra.mxu1 %v5415_v23  ;;  %1248 = vmatprep.subr.bf16.mxu0 %v5420_v24  ;;  %v5508_v23 = vld [vmem:[#allocation6 + $0x4ac] ss:$16 sps:$4 sm:$0xff]   ;;  %v5503_v24 = vld [vmem:[#allocation6 + $0x3c8] ss:$16 sps:$4 sm:$0xff]  }
  0x93   :  { %1289 = vmatprep.subr.bf16.mxu1 %v5423_v25  ;;  %v5506_v25 = vld [vmem:[#allocation6 + $0x4a8] ss:$16 sps:$4 sm:$0xff]  }
  0x95   :  { %1249 = vmatpush1.bf16.msra.mxu0 %v5418_v26  ;;  %v5511_v26 = vld [vmem:[#allocation6 + $0x3ac] ss:$16 sps:$4 sm:$0xff]  }
  0x96   :  { %1290 = vmatpush1.bf16.msra.mxu1 %v5421_v27  ;;  %1250 = vmatprep.subr.bf16.mxu0 %v5426_v28  ;;  %v5514_v27 = vld [vmem:[#allocation6 + $0x48c] ss:$16 sps:$4 sm:$0xff]   ;;  %v5509_v28 = vld [vmem:[#allocation6 + $0x3a8] ss:$16 sps:$4 sm:$0xff]  }
  0x97   :  { %1291 = vmatprep.subr.bf16.mxu1 %v5429_v29  ;;  %v5517_v29 = vld [vmem:[#allocation6 + $0x38c] ss:$16 sps:$4 sm:$0xff]  }
  0x99   :  { %1251 = vmatpush1.bf16.msra.mxu0 %v5424_v30  ;;  %v5520_v30 = vld [vmem:[#allocation6 + $0x46c] ss:$16 sps:$4 sm:$0xff]  }
  0x9a   :  { %1292 = vmatpush1.bf16.msra.mxu1 %v5427_v31  ;;  %1252 = vmatprep.subr.bf16.mxu0 %v5432_v32  ;;  %v5515_v31 = vld [vmem:[#allocation6 + $0x388] ss:$16 sps:$4 sm:$0xff]  }
  0x9b   :  { %1293 = vmatprep.subr.bf16.mxu1 %v5435_v33  ;;  %v5518_v32 = vld [vmem:[#allocation6 + $0x468] ss:$16 sps:$4 sm:$0xff]   ;;  %v5523_v33 = vld [vmem:[#allocation6 + $0x36c] ss:$16 sps:$4 sm:$0xff]  }
  0x9d   :  { %1253 = vmatpush1.bf16.msra.mxu0 %v5430_v34  ;;  %v5526_v34 = vld [vmem:[#allocation6 + $0x44c] ss:$16 sps:$4 sm:$0xff]  }
  0x9e   :  { %1294 = vmatpush1.bf16.msra.mxu1 %v5433_v35  ;;  %1254 = vmatprep.subr.bf16.mxu0 %v5438_v36  ;;  %v5524_v35 = vld [vmem:[#allocation6 + $0x448] ss:$16 sps:$4 sm:$0xff]   ;;  %v5529_v36 = vld [vmem:[#allocation6 + $0x34c] ss:$16 sps:$4 sm:$0xff]  }
  0x9f   :  { %1295 = vmatprep.subr.bf16.mxu1 %v5441_v37  ;;  %v5532_v37 = vld [vmem:[#allocation6 + $0x42c] ss:$16 sps:$4 sm:$0xff]  }
  0xa1   :  { %1255 = vmatpush1.bf16.msra.mxu0 %v5436_v39  ;;  %v5530_v39 = vld [vmem:[#allocation6 + $0x428] ss:$16 sps:$4 sm:$0xff]  }
  0xa2   :  { %1296 = vmatpush1.bf16.msra.mxu1 %v5439_v40  ;;  %5012 = vmatprep.subr.msk.bf16.mxu0 %vm1145_vm1, %v5009_v41  ;;  %v5535_v40 = vld [vmem:[#allocation6 + $0x32c] ss:$16 sps:$4 sm:$0xff]  }
  0xa3   :  { %1297 = vmatprep.subr.bf16.mxu1 %v5445_v42  ;;  %v5538_v41 = vld [vmem:[#allocation6 + $0x40c] ss:$16 sps:$4 sm:$0xff]  }
  0xa4   :  { %v288_v42 = vld [vmem:[#allocation6 + $0x508] sm:$0xff] }
  0xa5   :  { %1271 = vmatpush2.bf16.msra.mxu0 %v1147_v46  ;;  %v5011_v46 = vcombine.high %v288_v42, %v288_v42 }
  0xa6   :  { %1298 = vmatpush2.bf16.msra.mxu1 %v5443_v44  ;;  %1322 = vmatprep.subr.bf16.mxu0 %v5454_v47  ;;  %v5536_v44 = vld [vmem:[#allocation6 + $0x408] ss:$16 sps:$4 sm:$0xff]   ;;  %v5010_v47 = vcombine.low %v288_v42, %v288_v42 }
  0xa7   :  { %1299 = vmatprep.subr.bf16.mxu1 %v5451_v45  ;;  %v5541_v45 = vld [vmem:[#allocation6 + $0x30c] ss:$16 sps:$4 sm:$0xff]  }
  0xa8   :  { %1273 = vmatmul.mubr.bf16.vlgmr.msra.gmra.mxu0 %v6375_v48 }
  0xa9   :  { %1323 = vmatpush1.bf16.msra.mxu0 %v5452_v50  ;;  %1354 = vmatprep.mubr.bf16.mxu0 %v6349_v51  ;;  %v5484_v51 = vld [vmem:[#allocation6 + $0x24c] ss:$16 sps:$4 sm:$0xff]   ;;  %v1153_v50 = vsel %vm1145_vm1, %v5010_v47, 0 }
  0xaa   :  { %1300 = vmatpush2.bf16.msra.mxu1 %v5449_v49  ;;  %1324 = vmatprep.subr.bf16.mxu0 %v5460_v53  ;;  %v5539_v49 = vld [vmem:[#allocation6 + $0x308] ss:$16 sps:$4 sm:$0xff]   ;;  %v5546_v53 = vld [vmem:[#allocation7 + $0xe4] ss:$16 sps:$4 sm:$0xff]  }
  0xab   :  { %1301 = vmatprep.subr.bf16.mxu1 %v5457_v52  ;;  %v5544_v52 = vld [vmem:[#allocation7 + $0xe0] ss:$16 sps:$4 sm:$0xff]  }
  0xad   :  { %1325 = vmatpush1.bf16.msra.mxu0 %v5458_v55  ;;  %v5549_v55 = vld [vmem:[#allocation7 + $0xec] ss:$16 sps:$4 sm:$0xff]  }
  0xae   :  { %1302 = vmatpush2.bf16.msra.mxu1 %v5455_v54  ;;  %1326 = vmatprep.subr.bf16.mxu0 %v5466_v57  ;;  %v5547_v54 = vld [vmem:[#allocation7 + $0xe8] ss:$16 sps:$4 sm:$0xff]   ;;  %v5555_v57 = vld [vmem:[#allocation7 + $0xcc] ss:$16 sps:$4 sm:$0xff]  }
  0xaf   :  { %1303 = vmatprep.subr.bf16.mxu1 %v5463_v56  ;;  %v5552_v56 = vld [vmem:[#allocation7 + $0xc4] ss:$16 sps:$4 sm:$0xff]  }
  0xb1   :  { %1327 = vmatpush1.bf16.msra.mxu0 %v5464_v59  ;;  %v5553_v59 = vld [vmem:[#allocation7 + $0xc8] ss:$16 sps:$4 sm:$0xff]  }
  0xb2   :  { %1304 = vmatpush2.bf16.msra.mxu1 %v5461_v58  ;;  %1328 = vmatprep.subr.bf16.mxu0 %v5472_v61  ;;  %v5550_v58 = vld [vmem:[#allocation7 + $0xc0] ss:$16 sps:$4 sm:$0xff]   ;;  %v5561_v61 = vld [vmem:[#allocation7 + $0xac] ss:$16 sps:$4 sm:$0xff]  }
  0xb3   :  { %1305 = vmatprep.subr.bf16.mxu1 %v5469_v60  ;;  %v5558_v60 = vld [vmem:[#allocation7 + $0xa4] ss:$16 sps:$4 sm:$0xff]  }
  0xb5   :  { %1329 = vmatpush1.bf16.msra.mxu0 %v5470_v63  ;;  %v5567_v63 = vld [vmem:[#allocation7 + $0x8c] ss:$16 sps:$4 sm:$0xff]  }
  0xb6   :  { %1306 = vmatpush2.bf16.msra.mxu1 %v5467_v62  ;;  %1330 = vmatprep.subr.bf16.mxu0 %v5478_v1  ;;  %v5564_v62 = vld [vmem:[#allocation7 + $0x84] ss:$16 sps:$4 sm:$0xff]   ;;  %v5565_v1 = vld [vmem:[#allocation7 + $0x88] ss:$16 sps:$4 sm:$0xff]  }
  0xb7   :  { %1307 = vmatprep.subr.bf16.mxu1 %v5475_v0  ;;  %v5562_v0 = vld [vmem:[#allocation7 + $0x80] ss:$16 sps:$4 sm:$0xff]  }
  0xb9   :  { %1331 = vmatpush1.bf16.msra.mxu0 %v5476_v3  ;;  %v5573_v3 = vld [vmem:[#allocation7 + $0x6c] ss:$16 sps:$4 sm:$0xff]  }
  0xba   :  { %1308 = vmatpush2.bf16.msra.mxu1 %v5473_v2  ;;  %1332 = vmatprep.subr.bf16.mxu0 %v5484_v51  ;;  %v5570_v2 = vld [vmem:[#allocation7 + $0x64] ss:$16 sps:$4 sm:$0xff]   ;;  %v5571_v51 = vld [vmem:[#allocation7 + $0x68] ss:$16 sps:$4 sm:$0xff]  }
  0xbb   :  { %1309 = vmatprep.subr.bf16.mxu1 %v5481_v4  ;;  %v5568_v4 = vld [vmem:[#allocation7 + $0x60] ss:$16 sps:$4 sm:$0xff]  }
  0xbd   :  { %1333 = vmatpush1.bf16.msra.mxu0 %v5482_v8  ;;  %v5579_v8 = vld [vmem:[#allocation7 + $0x4c] ss:$16 sps:$4 sm:$0xff]  }
  0xbe   :  { %1310 = vmatpush2.bf16.msra.mxu1 %v5479_v5  ;;  %1334 = vmatprep.subr.bf16.mxu0 %v5490_v10  ;;  %v5576_v5 = vld [vmem:[#allocation7 + $0x44] ss:$16 sps:$4 sm:$0xff]   ;;  %v5577_v10 = vld [vmem:[#allocation7 + $0x48] ss:$16 sps:$4 sm:$0xff]  }
  0xbf   :  { %1311 = vmatprep.subr.bf16.mxu1 %v5487_v9  ;;  %v5574_v9 = vld [vmem:[#allocation7 + $0x40] ss:$16 sps:$4 sm:$0xff]  }
  0xc1   :  { %1335 = vmatpush1.bf16.msra.mxu0 %v5488_v12  ;;  %v5585_v12 = vld [vmem:[#allocation7 + $0x2c] ss:$16 sps:$4 sm:$0xff]  }
  0xc2   :  { %1312 = vmatpush2.bf16.msra.mxu1 %v5485_v11  ;;  %1336 = vmatprep.subr.bf16.mxu0 %v5493_v13  ;;  %v5582_v11 = vld [vmem:[#allocation7 + $0x24] ss:$16 sps:$4 sm:$0xff]   ;;  %v5580_v13 = vld [vmem:[#allocation7 + $0x20] ss:$16 sps:$4 sm:$0xff]  }
  0xc3   :  { %1363 = vmatprep.subr.bf16.mxu1 %v5496_v14  ;;  %v5583_v14 = vld [vmem:[#allocation7 + $0x28] ss:$16 sps:$4 sm:$0xff]  }
  0xc5   :  { %1314 = vmatmul.mubr.bf16.vlgmr.msra.gmra.mxu1 %v6353_v6  ;;  %1337 = vmatpush1.bf16.msra.mxu0 %v5491_v16  ;;  %v5512_v6 = vld [vmem:[#allocation6 + $0x488] ss:$16 sps:$4 sm:$0xff]   ;;  %v5588_v16 = vld [vmem:[#allocation7 + $0x4] ss:$16 sps:$4 sm:$0xff]  }
  0xc6   :  { %1364 = vmatpush1.bf16.msra.mxu1 %v5494_v17  ;;  %1338 = vmatprep.subr.bf16.mxu0 %v5499_v18  ;;  %v5591_v17 = vld [vmem:[#allocation7 + $0xc] ss:$16 sps:$4 sm:$0xff]   ;;  %v5586_v18 = vld [vmem:[#allocation7] ss:$16 sps:$4 sm:$0xff]  }
  0xc7   :  { %1365 = vmatprep.subr.bf16.mxu1 %v5502_v19  ;;  %5015 = vmatprep.mubr.msk.bf16.mxu1 %vm1141_vm0, %v6366_v15  ;;  %v5521_v15 = vld [vmem:[#allocation6 + $0x368] ss:$16 sps:$4 sm:$0xff]  }
  0xc8   :  { %v5589_v19 = vld [vmem:[#allocation7 + $0x8] ss:$16 sps:$4 sm:$0xff]  }
  0xc9   :  { %1339 = vmatpush2.bf16.msra.mxu0 %v5497_v20  ;;  %v291_v20 = vlaneseq }
  0xca   :  { %1366 = vmatpush1.bf16.msra.mxu1 %v5500_v21  ;;  %1340 = vmatprep.subr.bf16.mxu0 %v5505_v22  ;;  %v7929_v21 = vmov 0   ;;  %v6389_v22 = vld [vmem:[#allocation9 + $0xe4] ss:$16 sps:$4 sm:$0xff]  }
  0xcb   :  { %1367 = vmatprep.subr.bf16.mxu1 %v5508_v23  ;;  %5285 = vset.pattern.permute.xlu0 %v7929_v21  ;;  %7985 = vst [vmem:[#allocation16_spill] sm:$0xff] %v6389_v22  ;;  %v292_v23 = vshrl.u32 %v291_v20, 7  ;;  %v6428_v20 = vld [vmem:[#allocation9 + $0xac] ss:$16 sps:$4 sm:$0xff]  }
  0xcd   :  { %1341 = vmatpush2.bf16.msra.mxu0 %v5503_v24  ;;  %v6392_v24 = vsub.s32 0, %v292_v23 }
  0xce   :  { %1368 = vmatpush1.bf16.msra.mxu1 %v5506_v25  ;;  %1342 = vmatprep.subr.bf16.mxu0 %v5511_v26  ;;  %v6394_v25 = vld [vmem:[#allocation9 + $0xec] ss:$16 sps:$4 sm:$0xff]   ;;  %v289_v26 = vld [vmem:[%s7916_s4] sm:$0xf]  ;;  %s122_s4 = sld [smem:[#allocation3]] }
  0xcf   :  { %1369 = vmatprep.subr.bf16.mxu1 %v5514_v27  ;;  %7986 = vst [vmem:[#allocation17_spill] sm:$0xff] %v6392_v24  ;;  %7987 = vst [vmem:[#allocation18_spill] sm:$0xff] %v6394_v25  ;;  %v6399_v27 = vsub.s32 1, %v292_v23 }
  0xd1   :  { %1343 = vmatpush2.bf16.msra.mxu0 %v5509_v28  ;;  %7988 = vst [vmem:[#allocation19_spill] sm:$0xff] %v6399_v27  ;;  %v294_v28 = vrot.slane %v289_v26, %v6392_v24 }
  0xd2   :  { %1370 = vmatpush1.bf16.msra.mxu1 %v5512_v6  ;;  %1344 = vmatprep.subr.bf16.mxu0 %v5517_v29  ;;  %v298_v6 = vrot.slane %v289_v26, %v6399_v27 }
  0xd3   :  { %1371 = vmatprep.subr.bf16.mxu1 %v5520_v30 }
  0xd5   :  { %1345 = vmatpush2.bf16.msra.mxu0 %v5515_v31 }
  0xd6   :  { %1372 = vmatpush1.bf16.msra.mxu1 %v5518_v32  ;;  %1346 = vmatprep.subr.bf16.mxu0 %v5523_v33 }
  0xd7   :  { %1373 = vmatprep.subr.bf16.mxu1 %v5526_v34 }
  0xd9   :  { %1347 = vmatpush2.bf16.msra.mxu0 %v5521_v15 }
  0xda   :  { %1374 = vmatpush1.bf16.msra.mxu1 %v5524_v35  ;;  %1348 = vmatprep.subr.bf16.mxu0 %v5529_v36 }
  0xdb   :  { %1375 = vmatprep.subr.bf16.mxu1 %v5532_v37 }
  0xdd   :  { %1349 = vmatpush2.bf16.msra.mxu0 %v5527_v38 }
  0xde   :  { %1376 = vmatpush1.bf16.msra.mxu1 %v5530_v39  ;;  %1350 = vmatprep.subr.bf16.mxu0 %v5535_v40 }
  0xdf   :  { %1377 = vmatprep.subr.bf16.mxu1 %v5538_v41 }
  0xe1   :  { %1351 = vmatpush2.bf16.msra.mxu0 %v5533_v43 }
  0xe2   :  { %1378 = vmatpush1.bf16.msra.mxu1 %v5536_v44  ;;  %1352 = vmatprep.subr.bf16.mxu0 %v5541_v45 }
  0xe3   :  { %5014 = vmatprep.subr.msk.bf16.mxu1 %vm1145_vm1, %v5011_v46 }
  0xe5   :  { %1353 = vmatpush2.bf16.msra.mxu0 %v5539_v49 }
  0xe6   :  { %1394 = vmatpush2.bf16.msra.mxu1 %v1153_v50  ;;  %1626 = vmatprep.subr.bf16.mxu0 %v5546_v53  ;;  %v6404_v53 = vsub.s32 2, %v292_v23 }
  0xe7   :  { %1667 = vmatprep.subr.bf16.mxu1 %v5549_v55 }
  0xe8   :  { %1355 = vmatmul.mubr.bf16.vlgmr.msra.gmra.mxu0 %v6355_v7  ;;  %v5556_v7 = vld [vmem:[#allocation7 + $0xa0] ss:$16 sps:$4 sm:$0xff]   ;;  %7989 = vst [vmem:[#allocation20_spill] sm:$0xff] %v6404_v53  ;;  %v302_v55 = vrot.slane %v289_v26, %v6404_v53 }
  0xe9   :  { %1396 = vmatmul.mubr.bf16.vlgmr.msra.gmra.mxu1 %v6375_v48  ;;  %1627 = vmatpush1.bf16.msra.mxu0 %v5544_v52  ;;  %v5559_v48 = vld [vmem:[#allocation7 + $0xa8] ss:$16 sps:$4 sm:$0xff]  }
  0xea   :  { %1668 = vmatpush1.bf16.msra.mxu1 %v5547_v54  ;;  %1628 = vmatprep.subr.bf16.mxu0 %v5552_v56  ;;  %v6406_v54 = vsub.s32 3, %v292_v23  ;;  %v6433_v23 = vld [vmem:[#allocation9 + $0xa0] ss:$16 sps:$4 sm:$0xff]  }
  0xeb   :  { %1669 = vmatprep.subr.bf16.mxu1 %v5555_v57  ;;  %1658 = vmatprep.mubr.bf16.mxu0 %v7929_v21  ;;  %7991 = vst [vmem:[#allocation22_spill] sm:$0xff] %v6433_v23 }
  0xec   :  { %1699 = vmatprep.mubr.bf16.mxu1 %v7929_v21  ;;  %7990 = vst [vmem:[#allocation21_spill] sm:$0xff] %v6406_v54  ;;  %v306_v56 = vrot.slane %v289_v26, %v6406_v54  ;;  %v6436_v26 = vld [vmem:[#allocation9 + $0xa8] ss:$16 sps:$4 sm:$0xff]  }
  0xed   :  { %1629 = vmatpush1.bf16.msra.mxu0 %v5550_v58  ;;  %7992 = vst [vmem:[#allocation23_spill] sm:$0xff] %v6436_v26 }
  0xee   :  { %1670 = vmatpush1.bf16.msra.mxu1 %v5553_v59  ;;  %1630 = vmatprep.subr.bf16.mxu0 %v5558_v60 }
  0xef   :  { %1671 = vmatprep.subr.bf16.mxu1 %v5561_v61 }
  0xf1   :  { %1631 = vmatpush1.bf16.msra.mxu0 %v5556_v7 }
  0xf2   :  { %1672 = vmatpush1.bf16.msra.mxu1 %v5559_v48  ;;  %1632 = vmatprep.subr.bf16.mxu0 %v5564_v62 }
  0xf3   :  { %1673 = vmatprep.subr.bf16.mxu1 %v5567_v63 }
  0xf5   :  { %1633 = vmatpush1.bf16.msra.mxu0 %v5562_v0 }
  0xf6   :  { %1674 = vmatpush1.bf16.msra.mxu1 %v5565_v1  ;;  %1634 = vmatprep.subr.bf16.mxu0 %v5570_v2 }
  0xf7   :  { %1675 = vmatprep.subr.bf16.mxu1 %v5573_v3 }
  0xf9   :  { %1635 = vmatpush1.bf16.msra.mxu0 %v5568_v4 }
  0xfa   :  { %1676 = vmatpush1.bf16.msra.mxu1 %v5571_v51  ;;  %1636 = vmatprep.subr.bf16.mxu0 %v5576_v5  ;;  %v1408_v5 = vstv %s122_s4 }
  0xfb   :  { %1677 = vmatprep.subr.bf16.mxu1 %v5579_v8 }
  0xfd   :  { %1637 = vmatpush1.bf16.msra.mxu0 %v5574_v9 }
  0xfe   :  { %1678 = vmatpush1.bf16.msra.mxu1 %v5577_v10  ;;  %1638 = vmatprep.subr.bf16.mxu0 %v5582_v11  ;;  %v6410_v11 = vld [vmem:[#allocation9 + $0xe0] ss:$16 sps:$4 sm:$0xff]  }
  0xff   :  { %1679 = vmatprep.subr.bf16.mxu1 %v5585_v12  ;;  %v6412_v12 = vld [vmem:[#allocation9 + $0xe8] ss:$16 sps:$4 sm:$0xff]  }
 0x101   :  { %1639 = vmatpush1.bf16.msra.mxu0 %v5580_v13 }
 0x102   :  { %1680 = vmatpush1.bf16.msra.mxu1 %v5583_v14  ;;  %1640 = vmatprep.subr.bf16.mxu0 %v5588_v16  ;;  %v6414_v14 = vld [vmem:[#allocation9 + $0xc4] ss:$16 sps:$4 sm:$0xff]   ;;  %v6416_v16 = vld [vmem:[#allocation9 + $0xcc] ss:$16 sps:$4 sm:$0xff]  }
 0x103   :  { %1681 = vmatprep.subr.bf16.mxu1 %v5591_v17  ;;  %v6419_v17 = vld [vmem:[#allocation9 + $0xc0] ss:$16 sps:$4 sm:$0xff]  }
 0x105   :  { %1641 = vmatpush1.bf16.msra.mxu0 %v5586_v18  ;;  %v6422_v18 = vld [vmem:[#allocation9 + $0xc8] ss:$16 sps:$4 sm:$0xff]  }
 0x106   :  { %1682 = vmatpush1.bf16.msra.mxu1 %v5589_v19  ;;  %2025 = vmatprep.subr.bf16.mxu0 %v6389_v22  ;;  %v6425_v19 = vld [vmem:[#allocation9 + $0xa4] ss:$16 sps:$4 sm:$0xff]  }
 0x107   :  { %2066 = vmatprep.subr.bf16.mxu1 %v6394_v25 }
 0x144   :  { %v1192_v29 = vpop.f32.mrf.mxu0 }
 0x145   :  { %v1233_v30 = vpop.f32.mrf.mxu1  ;;  %v1193_v31 = vadd.f32 %v1192_v29, %v294_v28  ;;  %v6439_v28 = vld [vmem:[#allocation9 + $0x84] ss:$16 sps:$4 sm:$0xff]   ;;  %v6445_v29 = vld [vmem:[#allocation9 + $0x80] ss:$16 sps:$4 sm:$0xff]  }
 0x146   :  { %v1194_v32 = vpop.f32.mrf.mxu0  ;;  %7993 = vst [vmem:[#allocation24_spill] sm:$0xff] %v6439_v28  ;;  %7995 = vst [vmem:[#allocation26_spill] sm:$0xff] %v6445_v29 }
 0x147   :  { %v1235_v33 = vpop.f32.mrf.mxu1  ;;  %v1234_v34 = vadd.f32 %v1233_v30, %v1193_v31  ;;  %v1195_v15 = vadd.f32 %v1194_v32, %v298_v6  ;;  %v6442_v6 = vld [vmem:[#allocation9 + $0x8c] ss:$16 sps:$4 sm:$0xff]   ;;  %v6448_v30 = vld [vmem:[#allocation9 + $0x88] ss:$16 sps:$4 sm:$0xff]   ;;  %v6451_v31 = vld [vmem:[#allocation9 + $0x64] ss:$16 sps:$4 sm:$0xff]  }
 0x148   :  { %v1196_v35 = vpop.f32.mrf.mxu0  ;;  %7994 = vst [vmem:[#allocation25_spill] sm:$0xff] %v6442_v6  ;;  %7996 = vst [vmem:[#allocation27_spill] sm:$0xff] %v6448_v30  ;;  %v6454_v32 = vld [vmem:[#allocation9 + $0x6c] ss:$16 sps:$4 sm:$0xff]  }
 0x149   :  { %v1237_v36 = vpop.f32.mrf.mxu1  ;;  %v1236_v37 = vadd.f32 %v1235_v33, %v1195_v15  ;;  %7997 = vst [vmem:[#allocation28_spill] sm:$0xff] %v6451_v31  ;;  %7998 = vst [vmem:[#allocation29_spill] sm:$0xff] %v6454_v32  ;;  %v6457_v33 = vld [vmem:[#allocation9 + $0x60] ss:$16 sps:$4 sm:$0xff]   ;;  %v6463_v15 = vld [vmem:[#allocation9 + $0x44] ss:$16 sps:$4 sm:$0xff]  }
 0x14a   :  { %v1197_v38 = vpop.f32.mrf.mxu0  ;;  %7999 = vst [vmem:[#allocation30_spill] sm:$0xff] %v6457_v33  ;;  %8001 = vst [vmem:[#allocation32_spill] sm:$0xff] %v6463_v15  ;;  %v6466_v35 = vld [vmem:[#allocation9 + $0x4c] ss:$16 sps:$4 sm:$0xff]   ;;  %v6469_v36 = vld [vmem:[#allocation9 + $0x40] ss:$16 sps:$4 sm:$0xff]  }
 0x14b   :  { %v1238_v39 = vpop.f32.mrf.mxu1  ;;  %8002 = vst [vmem:[#allocation33_spill] sm:$0xff] %v6466_v35  ;;  %8003 = vst [vmem:[#allocation34_spill] sm:$0xff] %v6469_v36  ;;  %v6475_v38 = vld [vmem:[#allocation9 + $0x24] ss:$16 sps:$4 sm:$0xff]  }
 0x14c   :  { %8005 = vst [vmem:[#allocation36_spill] sm:$0xff] %v6475_v38  ;;  %v6478_v39 = vld [vmem:[#allocation9 + $0x2c] ss:$16 sps:$4 sm:$0xff]  }
 0x14d   :  { %8006 = vst [vmem:[#allocation37_spill] sm:$0xff] %v6478_v39 }
 0x168   :  { %v1274_v40 = vpop.f32.mrf.mxu0 }
 0x169   :  { %v1275_v41 = vadd.f32 %v1274_v40, %v1234_v34  ;;  %v6460_v34 = vld [vmem:[#allocation9 + $0x68] ss:$16 sps:$4 sm:$0xff]   ;;  %v6481_v40 = vld [vmem:[#allocation9 + $0x20] ss:$16 sps:$4 sm:$0xff]  }
 0x16a   :  { %v1276_v42 = vpop.f32.mrf.mxu0  ;;  %8000 = vst [vmem:[#allocation31_spill] sm:$0xff] %v6460_v34  ;;  %8007 = vst [vmem:[#allocation38_spill] sm:$0xff] %v6481_v40 }
 0x16b   :  { %v1277_v43 = vadd.f32 %v1276_v42, %v1236_v37  ;;  %v6472_v37 = vld [vmem:[#allocation9 + $0x48] ss:$16 sps:$4 sm:$0xff]   ;;  %v6487_v42 = vld [vmem:[#allocation9 + $0x4] ss:$16 sps:$4 sm:$0xff]  }
 0x16c   :  { %v1278_v44 = vpop.f32.mrf.mxu0  ;;  %8004 = vst [vmem:[#allocation35_spill] sm:$0xff] %v6472_v37  ;;  %8009 = vst [vmem:[#allocation40_spill] sm:$0xff] %v6487_v42 }
 0x16d   :  { %v1404_v45 = vmax.f32 %v1275_v41, %v1277_v43  ;;  %v6484_v41 = vld [vmem:[#allocation9 + $0x28] ss:$16 sps:$4 sm:$0xff]   ;;  %v6490_v43 = vld [vmem:[#allocation9 + $0xc] ss:$16 sps:$4 sm:$0xff]   ;;  %v6493_v44 = vld [vmem:[#allocation9] ss:$16 sps:$4 sm:$0xff]  }
 0x16e   :  { %v1279_v46 = vpop.f32.mrf.mxu0  ;;  %8008 = vst [vmem:[#allocation39_spill] sm:$0xff] %v6484_v41  ;;  %8010 = vst [vmem:[#allocation41_spill] sm:$0xff] %v6490_v43 }
 0x16f   :  { %8011 = vst [vmem:[#allocation42_spill] sm:$0xff] %v6493_v44  ;;  %v6220_v46 = vmov 1  }
 0x170   :  { %5287 = vset.pattern.permute.xlu1 %v6220_v46 }
 0x185   :  { %v1315_v47 = vpop.f32.mrf.mxu1 }
 0x186   :  { %v1316_v57 = vadd.f32 %v1315_v47, %v302_v55  ;;  %v1444_v47 = vld [vmem:[%s7918_s6] sm:$0xf]  ;;  %s5048_s6 = sld [smem:[#allocation3 + $0x2]] }
 0x187   :  { %v1317_v49 = vpop.f32.mrf.mxu1  ;;  %v1461_v55 = vrot.slane %v1444_v47, %v6406_v54 }
 0x188   :  { %v1318_v60 = vadd.f32 %v1317_v49, %v306_v56  ;;  %v1449_v49 = vrot.slane %v1444_v47, %v6392_v24 }
 0x189   :  { %v1319_v50 = vpop.f32.mrf.mxu1 }
 0x18a   :  { %v1457_v50 = vrot.slane %v1444_v47, %v6404_v53 }
 0x18b   :  { %v1320_v52 = vpop.f32.mrf.mxu1 }
 0x18c   :  { %v1453_v52 = vrot.slane %v1444_v47, %v6399_v27  ;;  %v1722_v47 = vstv %s5049_s25 }
 0x1a8   :  { %v1356_v58 = vpop.f32.mrf.mxu0 }
 0x1a9   :  { %v1397_v59 = vpop.f32.mrf.mxu1  ;;  %v1357_v61 = vadd.f32 %v1356_v58, %v1316_v57 }
 0x1aa   :  { %v1358_v7 = vpop.f32.mrf.mxu0 }
 0x1ab   :  { %v1399_v48 = vpop.f32.mrf.mxu1  ;;  %v1359_v62 = vadd.f32 %v1358_v7, %v1318_v60  ;;  %v1398_v1 = vadd.f32 %v1397_v59, %v1357_v61 }
 0x1ac   :  { %v1360_v63 = vpop.f32.mrf.mxu0 }
 0x1ad   :  { %v1401_v0 = vpop.f32.mrf.mxu1  ;;  %v1400_v2 = vadd.f32 %v1399_v48, %v1359_v62 }
 0x1ae   :  { %v1361_v3 = vpop.f32.mrf.mxu0 }
 0x1af   :  { %v1402_v4 = vpop.f32.mrf.mxu1  ;;  %v1405_v51 = vmax.f32 %v1398_v1, %v1400_v2  ;;  %v1712_v2 = vstv %s4841_s5 }
 0x1b1   :  { %v1406_v8 = vmax.f32 %v1404_v45, %v1405_v51  ;;  %v6496_v45 = vld [vmem:[#allocation9 + $0x8] ss:$16 sps:$4 sm:$0xff]  }
 0x1b2   :  { %8012 = vst [vmem:[#allocation43_spill] sm:$0xff] %v6496_v45 }
 0x1b3   :  { %vm1407_vm2 = vcmp.ge.f32.partialorder %v1406_v8, 0.0  ;;  %v1409_v9 = vmul.f32 %v1408_v5, %v1406_v8 }
 0x1b5   :  { %v1410_v10 = vsel %vm1407_vm2, %v1406_v8, %v1409_v9  ;;  %v1715_v8 = vld [vmem:[%s7914_s2] sm:$0xff] }
 0x1b6   :  { %v1411_v13 = vpack.c.bf16 %v1410_v10, %v1410_v10 }
 0x1b8   :  { %1659 = vmatmul.mubr.bf16.vlgmr.msra.gmra.mxu0 %v1411_v13  ;;  %1700 = vmatmul.mubr.bf16.vlgmr.msra.gmra.mxu1 %v1411_v13  ;;  %v1719_v13 = vstv %s5048_s6 }
 0x1b9   :  { %2026 = vmatpush1.bf16.msra.mxu0 %v6410_v11  ;;  %2067 = vmatpush1.bf16.msra.mxu1 %v6412_v12 }
 0x1ba   :  { %2027 = vmatprep.subr.bf16.mxu0 %v6414_v14  ;;  %2068 = vmatprep.subr.bf16.mxu1 %v6416_v16 }
 0x1bb   :  { %2057 = vmatprep.mubr.bf16.mxu0 %v7929_v21  ;;  %2098 = vmatprep.mubr.bf16.mxu1 %v7929_v21 }
 0x1bd   :  { %2028 = vmatpush1.bf16.msra.mxu0 %v6419_v17  ;;  %2069 = vmatpush1.bf16.msra.mxu1 %v6422_v18 }
 0x1be   :  { %2029 = vmatprep.subr.bf16.mxu0 %v6425_v19  ;;  %2070 = vmatprep.subr.bf16.mxu1 %v6428_v20 }
 0x1c1   :  { %2030 = vmatpush1.bf16.msra.mxu0 %v6433_v23  ;;  %2071 = vmatpush1.bf16.msra.mxu1 %v6436_v26 }
 0x1c2   :  { %2031 = vmatprep.subr.bf16.mxu0 %v6439_v28  ;;  %2072 = vmatprep.subr.bf16.mxu1 %v6442_v6 }
 0x1c5   :  { %2032 = vmatpush1.bf16.msra.mxu0 %v6445_v29  ;;  %2073 = vmatpush1.bf16.msra.mxu1 %v6448_v30 }
 0x1c6   :  { %2033 = vmatprep.subr.bf16.mxu0 %v6451_v31  ;;  %2074 = vmatprep.subr.bf16.mxu1 %v6454_v32 }
 0x1c9   :  { %2034 = vmatpush1.bf16.msra.mxu0 %v6457_v33  ;;  %2075 = vmatpush1.bf16.msra.mxu1 %v6460_v34 }
 0x1ca   :  { %2035 = vmatprep.subr.bf16.mxu0 %v6463_v15  ;;  %2076 = vmatprep.subr.bf16.mxu1 %v6466_v35 }
 0x1cd   :  { %2036 = vmatpush1.bf16.msra.mxu0 %v6469_v36  ;;  %2077 = vmatpush1.bf16.msra.mxu1 %v6472_v37 }
 0x1ce   :  { %2037 = vmatprep.subr.bf16.mxu0 %v6475_v38  ;;  %2078 = vmatprep.subr.bf16.mxu1 %v6478_v39 }
 0x1d1   :  { %2038 = vmatpush1.bf16.msra.mxu0 %v6481_v40  ;;  %2079 = vmatpush1.bf16.msra.mxu1 %v6484_v41 }
 0x1d2   :  { %2039 = vmatprep.subr.bf16.mxu0 %v6487_v42  ;;  %2080 = vmatprep.subr.bf16.mxu1 %v6490_v43 }
 0x1d5   :  { %2040 = vmatpush1.bf16.msra.mxu0 %v6493_v44  ;;  %2081 = vmatpush1.bf16.msra.mxu1 %v6496_v45 }
 0x1d6   :  { %2162 = vmatprep.subr.bf16.mxu0 %v6389_v22  ;;  %2203 = vmatprep.subr.bf16.mxu1 %v6394_v25 }
 0x1d8   :  { %2058 = vmatmul.mubr.bf16.vlgmr.msra.gmra.mxu0 %v7929_v21  ;;  %2099 = vmatmul.mubr.bf16.vlgmr.msra.gmra.mxu1 %v7929_v21 }
 0x1d9   :  { %2163 = vmatpush1.bf16.msra.mxu0 %v6410_v11  ;;  %2204 = vmatpush1.bf16.msra.mxu1 %v6412_v12 }
 0x1da   :  { %2164 = vmatprep.subr.bf16.mxu0 %v6414_v14  ;;  %2205 = vmatprep.subr.bf16.mxu1 %v6416_v16 }
 0x1db   :  { %2194 = vmatprep.mubr.bf16.mxu0 %v7929_v21  ;;  %2235 = vmatprep.mubr.bf16.mxu1 %v7929_v21 }
 0x1dd   :  { %2165 = vmatpush1.bf16.msra.mxu0 %v6419_v17  ;;  %2206 = vmatpush1.bf16.msra.mxu1 %v6422_v18 }
 0x1de   :  { %2166 = vmatprep.subr.bf16.mxu0 %v6425_v19  ;;  %2207 = vmatprep.subr.bf16.mxu1 %v6428_v20 }
 0x1e1   :  { %2167 = vmatpush1.bf16.msra.mxu0 %v6433_v23  ;;  %2208 = vmatpush1.bf16.msra.mxu1 %v6436_v26 }
 0x1e2   :  { %2168 = vmatprep.subr.bf16.mxu0 %v6439_v28  ;;  %2209 = vmatprep.subr.bf16.mxu1 %v6442_v6 }
 0x1e5   :  { %2169 = vmatpush1.bf16.msra.mxu0 %v6445_v29  ;;  %2210 = vmatpush1.bf16.msra.mxu1 %v6448_v30 }
 0x1e6   :  { %2170 = vmatprep.subr.bf16.mxu0 %v6451_v31  ;;  %2211 = vmatprep.subr.bf16.mxu1 %v6454_v32 }
 0x1e9   :  { %2171 = vmatpush1.bf16.msra.mxu0 %v6457_v33  ;;  %2212 = vmatpush1.bf16.msra.mxu1 %v6460_v34 }
 0x1ea   :  { %2172 = vmatprep.subr.bf16.mxu0 %v6463_v15  ;;  %2213 = vmatprep.subr.bf16.mxu1 %v6466_v35 }
 0x1ed   :  { %2173 = vmatpush1.bf16.msra.mxu0 %v6469_v36  ;;  %2214 = vmatpush1.bf16.msra.mxu1 %v6472_v37 }
 0x1ee   :  { %2174 = vmatprep.subr.bf16.mxu0 %v6475_v38  ;;  %2215 = vmatprep.subr.bf16.mxu1 %v6478_v39 }
 0x1f1   :  { %2175 = vmatpush1.bf16.msra.mxu0 %v6481_v40  ;;  %2216 = vmatpush1.bf16.msra.mxu1 %v6484_v41 }
 0x1f2   :  { %2176 = vmatprep.subr.bf16.mxu0 %v6487_v42  ;;  %2217 = vmatprep.subr.bf16.mxu1 %v6490_v43 }
 0x1f5   :  { %2177 = vmatpush1.bf16.msra.mxu0 %v6493_v44  ;;  %2218 = vmatpush1.bf16.msra.mxu1 %v6496_v45 }
 0x1f6   :  { %2299 = vmatprep.subr.bf16.mxu0 %v6389_v22  ;;  %2340 = vmatprep.subr.bf16.mxu1 %v6394_v25 }
 0x278   :  { %v1660_v56 = vpop.f32.mrf.mxu0  ;;  %v1701_v57 = vpop.f32.mrf.mxu1 }
 0x279   :  { %v1661_v60 = vadd.f32 %v1660_v56, %v1449_v49  ;;  %v1702_v61 = vadd.f32 %v1701_v57, %v1457_v50  ;;  %v1726_v50 = vstv %s5050_s27  ;;  %v1730_v56 = vstv %s5051_s30 }
 0x27a   :  { %v1662_v58 = vpop.f32.mrf.mxu0  ;;  %v1703_v59 = vpop.f32.mrf.mxu1 }
 0x27b   :  { %v1663_v7 = vadd.f32 %v1662_v58, %v1453_v52  ;;  %v1704_v48 = vadd.f32 %v1703_v59, %v1461_v55  ;;  %v1733_v58 = vstv %s5052_s0 }
 0x27c   :  { %v1664_v62 = vpop.f32.mrf.mxu0  ;;  %v1705_v63 = vpop.f32.mrf.mxu1 }
 0x27d   :  { %v1708_v0 = vmax.f32 %v1661_v60, %v1663_v7  ;;  %v1709_v1 = vmax.f32 %v1702_v61, %v1704_v48  ;;  %v1737_v60 = vstv %s5053_s17 }
 0x27e   :  { %v1665_v3 = vpop.f32.mrf.mxu0  ;;  %v1706_v4 = vpop.f32.mrf.mxu1 }
 0x27f   :  { %v1710_v51 = vmax.f32 %v1708_v0, %v1709_v1  ;;  %v6221_v3 = vmov 6   ;;  %v6222_v4 = vmov 7  }
 0x281   :  { %vm1711_vm3 = vcmp.ge.f32.partialorder %v1710_v51, 0.0  ;;  %v1713_v5 = vmul.f32 %v1712_v2, %v1710_v51 }
 0x283   :  { %v1714_v9 = vsel %vm1711_vm3, %v1710_v51, %v1713_v5 }
 0x284   :  { %v1716_v10 = vmul.f32 %v1715_v8, %v1714_v9  ;;  %v6223_v9 = vmov 2  }
 0x286   :  { %v1717_v46 = vadd.f32 %v1716_v10, %v1715_v8  ;;  %v6224_v10 = vmov 5  }
 0x288   :  { %v1720_v49 = vmul.f32 %v1719_v13, %v1717_v46 }
 0x28a   :  { %v1723_v52 = vadd.f32 %v1722_v47, %v1720_v49  ;;  %v6225_v47 = vmov 3   ;;  %v6226_v49 = vmov 4  }
 0x28c   :  { %vm1725_vm4 = vcmp.ge.f32.partialorder %v1723_v52, 0.0  ;;  %v1727_v55 = vmul.f32 %v1726_v50, %v1723_v52  ;;  %v1774_v50 = vld [vmem:[%s7919_s7] sm:$0xf] }
 0x28e   :  { %v1728_v57 = vsel %vm1725_vm4, %v1723_v52, %v1727_v55  ;;  %v1775_v52 = vld [vmem:[%s7920_s8] sm:$0xf] }
 0x28f   :  { %v1731_v59 = vmul.f32 %v1730_v56, %v1728_v57  ;;  %v1776_v55 = vld [vmem:[%s7921_s9] sm:$0xf]  ;;  %v6568_v56 = vrot.slane %v1774_v50, %v6392_v24  ;;  %v6571_v57 = vrot.slane %v1774_v50, %v6399_v27 }
 0x291   :  { %v1734_v61 = vadd.f32 %v1733_v58, %v1731_v59  ;;  %v6574_v58 = vrot.slane %v1774_v50, %v6404_v53  ;;  %v6577_v59 = vrot.slane %v1774_v50, %v6406_v54 }
 0x293   :  { %vm1736_vm5 = vcmp.ge.f32.partialorder %v1734_v61, 0.0  ;;  %v1738_v7 = vmul.f32 %v1737_v60, %v1734_v61  ;;  %v6580_v60 = vrot.slane %v1775_v52, %v6392_v24 }
 0x295   :  { %v1739_v48 = vsel %vm1736_vm5, %v1734_v61, %v1738_v7  ;;  %v6583_v61 = vrot.slane %v1775_v52, %v6399_v27  ;;  %v6586_v7 = vrot.slane %v1775_v52, %v6404_v53 }
 0x296   :  { %v1740_v62 = vmul.f32 %v1739_v48, %v1717_v46  ;;  %v6589_v48 = vrot.slane %v1775_v52, %v6406_v54 }
 0x298   :  { %v1741_v63 = vadd.f32 %v1740_v62, %v1717_v46  ;;  %v6550_v0 = vpop.f32.mrf.mxu0  ;;  %v6554_v5 = vpop.f32.mrf.mxu1 }
 0x29a   :  { %2138 = vperm.xlu1 %5287, %v1741_v63   ;;  %1779 = vperm.xlu0 %5285, %v1741_v63   ;;  %v6552_v1 = vpop.f32.mrf.mxu0  ;;  %v6556_v8 = vpop.f32.mrf.mxu1 }
 0x29c   :  { %v2063_v2 = vpop.f32.mrf.mxu0  ;;  %v2104_v13 = vpop.f32.mrf.mxu1 }
 0x29d   :  { %v6592_v2 = vrot.slane %v1776_v55, %v6392_v24 }
 0x29e   :  { %5288 = vset.pattern.permute.xlu1 %v6221_v3  ;;  %5286 = vset.pattern.permute.xlu0 %v6222_v4  ;;  %v2064_v51 = vpop.f32.mrf.mxu0  ;;  %v2105_v46 = vpop.f32.mrf.mxu1  ;;  %v6595_v3 = vrot.slane %v1776_v55, %v6399_v27  ;;  %v6598_v4 = vrot.slane %v1776_v55, %v6404_v53 }
 0x29f   :  { %2146 = vperm.xlu1 %5288, %v1741_v63   ;;  %1808 = vperm.xlu0 %5286, %v1741_v63   ;;  %v6601_v51 = vrot.slane %v1776_v55, %v6406_v54 }
 0x2a3   :  { %5289 = vset.pattern.permute.xlu1 %v6223_v9  ;;  %5290 = vset.pattern.permute.xlu0 %v6224_v10 }
 0x2a4   :  { %2275 = vperm.xlu1 %5289, %v1741_v63   ;;  %2283 = vperm.xlu0 %5290, %v1741_v63  }
 0x2a8   :  { %5291 = vset.pattern.permute.xlu1 %v6225_v47  ;;  %5293 = vset.pattern.permute.xlu0 %v6226_v49 }
 0x2a9   :  { %2412 = vperm.xlu1 %5291, %v1741_v63  }
 0x2ad   :  { %5292 = vset.pattern.permute.xlu1 %v6226_v49 }
 0x2ae   :  { %2420 = vperm.xlu1 %5292, %v1741_v63  }
 0x315   :  { %v2139_v62 = vpop.permute.xlu1 %2138  ;;  %v1780_v63 = vpop.permute.xlu0 %1779 }
 0x316   :  { %v1803_v9 = vmul.f32 %v6568_v56, %v1780_v63  ;;  %v1804_v10 = vmul.f32 %v6571_v57, %v1780_v63  ;;  %v1805_v13 = vmul.f32 %v6574_v58, %v1780_v63  ;;  %v1806_v46 = vmul.f32 %v6577_v59, %v1780_v63 }
 0x317   :  { %v6608_v47 = vmul.f32 %v2139_v62, %v6580_v60  ;;  %v6611_v49 = vmul.f32 %v2139_v62, %v6586_v7  ;;  %v6614_v50 = vmul.f32 %v2139_v62, %v6583_v61  ;;  %v6617_v52 = vmul.f32 %v2139_v62, %v6589_v48 }
 0x318   :  { %v6620_v55 = vmul.f32 %v6580_v60, %v1780_v63  ;;  %v6623_v21 = vmul.f32 %v6586_v7, %v1780_v63  ;;  %v6626_v54 = vmul.f32 %v6583_v61, %v1780_v63  ;;  %v6629_v27 = vmul.f32 %v6589_v48, %v1780_v63 }
 0x319   :  { %v2141_v25 = vmul.f32 %v2139_v62, %v6568_v56  ;;  %v2143_v22 = vmul.f32 %v2139_v62, %v6574_v58  ;;  %v2142_v45 = vmul.f32 %v2139_v62, %v6571_v57  ;;  %v2144_v44 = vmul.f32 %v2139_v62, %v6577_v59 }
 0x31a   :  { %v6631_v53 = vpop.permute.xlu1 %2146  ;;  %v6633_v24 = vpop.permute.xlu0 %1808 }
 0x31b   :  { %v1832_v43 = vmul.f32 %v6580_v60, %v6633_v24  ;;  %v1833_v42 = vmul.f32 %v6583_v61, %v6633_v24  ;;  %v1834_v63 = vmul.f32 %v6586_v7, %v6633_v24  ;;  %v1835_v41 = vmul.f32 %v6589_v48, %v6633_v24 }
 0x31c   :  { %v2149_v40 = vmul.f32 %v6631_v53, %v6580_v60  ;;  %v2151_v39 = vmul.f32 %v6631_v53, %v6586_v7  ;;  %v2150_v62 = vmul.f32 %v6631_v53, %v6583_v61  ;;  %v2152_v38 = vmul.f32 %v6631_v53, %v6589_v48 }
 0x31d   :  { %v1836_v37 = vadd.f32 %v1832_v43, %v1803_v9  ;;  %v1837_v36 = vadd.f32 %v1833_v42, %v1804_v10  ;;  %v1838_v35 = vadd.f32 %v1834_v63, %v1805_v13  ;;  %v1839_v15 = vadd.f32 %v1835_v41, %v1806_v46 }
 0x31e   :  { %v2153_v34 = vadd.f32 %v2149_v40, %v2141_v25  ;;  %v2155_v33 = vadd.f32 %v2151_v39, %v2143_v22  ;;  %v2154_v32 = vadd.f32 %v2150_v62, %v2142_v45  ;;  %v2156_v31 = vadd.f32 %v2152_v38, %v2144_v44 }
 0x31f   :  { %v1861_v30 = vadd.f32 %v6592_v2, %v1836_v37  ;;  %v1862_v29 = vadd.f32 %v6595_v3, %v1837_v36  ;;  %v1863_v6 = vadd.f32 %v6598_v4, %v1838_v35  ;;  %v6658_v28 = vpop.permute.xlu1 %2275  ;;  %v6660_v26 = vpop.permute.xlu0 %2283  ;;  %v1864_v23 = vadd.f32 %v6601_v51, %v1839_v15 }
 0x320   :  { %v6664_v42 = vadd.f32 %v2153_v34, %v6592_v2  ;;  %v6667_v25 = vadd.f32 %v2155_v33, %v6598_v4  ;;  %v6670_v22 = vadd.f32 %v2154_v32, %v6595_v3  ;;  %v6673_v37 = vadd.f32 %v2156_v31, %v6601_v51 }
 0x321   :  { %v2107_v35 = vadd.f32 %v6550_v0, %v1861_v30  ;;  %v2108_v36 = vadd.f32 %v6552_v1, %v1862_v29  ;;  %v2109_v38 = vadd.f32 %v6554_v5, %v1863_v6  ;;  %v2110_v15 = vadd.f32 %v6556_v8, %v1864_v23 }
 0x322   :  { %8013 = vst [vmem:[#allocation44_spill] sm:$0xff] %v6667_v25  ;;  %8014 = vst [vmem:[#allocation45_spill] sm:$0xff] %v6670_v22  ;;  %v2278_v34 = vmul.f32 %v6658_v28, %v6568_v56  ;;  %v2286_v33 = vmul.f32 %v6660_v26, %v6580_v60  ;;  %v2280_v32 = vmul.f32 %v6658_v28, %v6574_v58 }
 0x323   :  { %8015 = vst [vmem:[#allocation46_spill] sm:$0xff] %v6673_v37  ;;  %v2288_v31 = vmul.f32 %v6660_v26, %v6586_v7  ;;  %v5086_v39 = vmul.f32 -1.442695, %v2107_v35  ;;  %v5087_v30 = vmul.f32 -1.442695, %v2108_v36  ;;  %5792 = vtanh.f32 %v2110_v15 }
 0x324   :  { %v2413_v29 = vpop.permute.xlu1 %2412  ;;  %v2290_v40 = vadd.f32 %v2286_v33, %v2278_v34  ;;  %v2279_v23 = vmul.f32 %v6658_v28, %v6571_v57  ;;  %v2287_v41 = vmul.f32 %v6660_v26, %v6583_v61  ;;  %v5088_v43 = vmul.f32 -1.442695, %v2109_v38 }
 0x325   :  { %v2292_v6 = vadd.f32 %v2288_v31, %v2280_v32  ;;  %5794 = vpow2.f32 %v5086_v39  ;;  %v2281_v44 = vmul.f32 %v6658_v28, %v6577_v59  ;;  %v2289_v45 = vmul.f32 %v6660_v26, %v6589_v48 }
 0x326   :  { %v6696_v0 = vadd.f32 %v2290_v40, %v6592_v2  ;;  %v2291_v5 = vadd.f32 %v2287_v41, %v2279_v23  ;;  %v2415_v8 = vmul.f32 %v2413_v29, %v6568_v56  ;;  %5796 = vpow2.f32 %v5087_v30 }
 0x327   :  { %v6699_v1 = vadd.f32 %v2292_v6, %v6598_v4  ;;  %v2293_v9 = vadd.f32 %v2289_v45, %v2281_v44  ;;  %v2417_v10 = vmul.f32 %v2413_v29, %v6574_v58  ;;  %v2416_v13 = vmul.f32 %v2413_v29, %v6571_v57 }
 0x328   :  { %8016 = vst [vmem:[#allocation47_spill] sm:$0xff] %v6696_v0  ;;  %v6705_v46 = vadd.f32 %v2291_v5, %v6595_v3  ;;  %v2418_v63 = vmul.f32 %v2413_v29, %v6577_v59  ;;  %v2552_v62 = vmul.f32 %v2413_v29, %v6580_v60  ;;  %v2554_v35 = vmul.f32 %v2413_v29, %v6586_v7 }
 0x329   :  { %8017 = vst [vmem:[#allocation48_spill] sm:$0xff] %v6699_v1  ;;  %v2421_v36 = vpop.permute.xlu1 %2420  ;;  %v6711_v38 = vadd.f32 %v2293_v9, %v6601_v51  ;;  %v2553_v15 = vmul.f32 %v2413_v29, %v6583_v61  ;;  %v2555_v34 = vmul.f32 %v2413_v29, %v6589_v48  ;;  %v2677_v33 = vmul.f32 %v6660_v26, %v6568_v56 }
 0x32a   :  { %8018 = vst [vmem:[#allocation49_spill] sm:$0xff] %v6705_v46  ;;  %v2423_v32 = vmul.f32 %v2421_v36, %v6580_v60  ;;  %v2425_v31 = vmul.f32 %v2421_v36, %v6586_v7  ;;  %v2424_v39 = vmul.f32 %v2421_v36, %v6583_v61  ;;  %v2426_v30 = vmul.f32 %v2421_v36, %v6589_v48 }
 0x32b   :  { %8019 = vst [vmem:[#allocation50_spill] sm:$0xff] %v6711_v38  ;;  %v2548_v40 = vmul.f32 %v2421_v36, %v6568_v56  ;;  %v2550_v6 = vmul.f32 %v2421_v36, %v6574_v58  ;;  %v2549_v23 = vmul.f32 %v2421_v36, %v6571_v57  ;;  %v2551_v41 = vmul.f32 %v2421_v36, %v6577_v59 }
 0x32c   :  { %v2427_v29 = vadd.f32 %v2423_v32, %v2415_v8  ;;  %v2429_v44 = vadd.f32 %v2425_v31, %v2417_v10  ;;  %v2428_v45 = vadd.f32 %v2424_v39, %v2416_v13  ;;  %v2430_v5 = vadd.f32 %v2426_v30, %v2418_v63 }
 0x32d   :  { %v2556_v9 = vadd.f32 %v2552_v62, %v2548_v40  ;;  %v2558_v38 = vadd.f32 %v2554_v35, %v2550_v6  ;;  %v2557_v1 = vadd.f32 %v2553_v15, %v2549_v23  ;;  %v2559_v46 = vadd.f32 %v2555_v34, %v2551_v41 }
 0x32e   :  { %v6726_v0 = vadd.f32 %v2427_v29, %v6592_v2  ;;  %v6729_v37 = vadd.f32 %v2429_v44, %v6598_v4  ;;  %v6732_v25 = vadd.f32 %v2428_v45, %v6595_v3  ;;  %v6735_v22 = vadd.f32 %v2430_v5, %v6601_v51 }
 0x32f   :  { %v6738_v8 = vadd.f32 %v2556_v9, %v6592_v2  ;;  %v6741_v10 = vadd.f32 %v2558_v38, %v6598_v4  ;;  %v6744_v13 = vadd.f32 %v2557_v1, %v6595_v3  ;;  %v6747_v63 = vadd.f32 %v2559_v46, %v6601_v51 }
 0x330   :  { %v5793_v62 = vpop.eup %5792  ;;  %v2681_v35 = vmul.f32 %v6658_v28, %v6580_v60  ;;  %v2679_v36 = vmul.f32 %v6660_v26, %v6574_v58  ;;  %v2683_v15 = vmul.f32 %v6658_v28, %v6586_v7  ;;  %v2678_v38 = vmul.f32 %v6660_v26, %v6571_v57 }
 0x331   :  { %v2682_v1 = vmul.f32 %v6658_v28, %v6583_v61  ;;  %v2680_v46 = vmul.f32 %v6660_v26, %v6577_v59  ;;  %v2684_v34 = vmul.f32 %v6658_v28, %v6589_v48  ;;  %v2806_v60 = vmul.f32 %v6631_v53, %v6568_v56 }
 0x332   :  { %v5795_v32 = vpop.eup %5794  ;;  %v2685_v31 = vadd.f32 %v2681_v35, %v2677_v33  ;;  %v2687_v39 = vadd.f32 %v2683_v15, %v2679_v36  ;;  %v2808_v7 = vmul.f32 %v6631_v53, %v6574_v58  ;;  %v2807_v30 = vmul.f32 %v6631_v53, %v6571_v57 }
 0x333   :  { %v2120_v40 = vadd.f32 1.0, %v5795_v32  ;;  %v2686_v61 = vadd.f32 %v2682_v1, %v2678_v38  ;;  %v2688_v6 = vadd.f32 %v2684_v34, %v2680_v46  ;;  %v2814_v26 = vadd.f32 %v6608_v47, %v2806_v60  ;;  %v5797_v23 = vpop.eup %5796 }
 0x334   :  { %5798 = vpow2.f32 %v5088_v43  ;;  %v6771_v28 = vadd.f32 %v2685_v31, %v6592_v2  ;;  %v6774_v48 = vadd.f32 %v2687_v39, %v6598_v4  ;;  %v2816_v33 = vadd.f32 %v6611_v49, %v2808_v7  ;;  %v8032_v31 = vld [vmem:[#allocation23_spill] sm:$0xff]  ;;  %v8033_v39 = vld [vmem:[#allocation24_spill] sm:$0xff]  ;;  %v8034_v7 = vld [vmem:[#allocation25_spill] sm:$0xff] }
 0x335   :  { %v2121_v41 = vadd.f32 1.0, %v5797_v23  ;;  %5800 = vrcp.f32 %v2120_v40  ;;  %v6778_v29 = vadd.f32 %v2686_v61, %v6595_v3  ;;  %v6781_v44 = vadd.f32 %v2688_v6, %v6601_v51  ;;  %v8036_v40 = vld [vmem:[#allocation27_spill] sm:$0xff]  ;;  %v8037_v61 = vld [vmem:[#allocation28_spill] sm:$0xff]  ;;  %v8038_v6 = vld [vmem:[#allocation29_spill] sm:$0xff] }
 0x336   :  { %v6784_v47 = vadd.f32 %v2814_v26, %v6592_v2  ;;  %v6787_v43 = vadd.f32 %v2816_v33, %v6598_v4  ;;  %v2815_v45 = vadd.f32 %v6614_v50, %v2807_v30  ;;  %v2809_v49 = vmul.f32 %v6631_v53, %v6577_v59  ;;  %v8035_v30 = vld [vmem:[#allocation26_spill] sm:$0xff]  ;;  %v8040_v23 = vld [vmem:[#allocation31_spill] sm:$0xff]  ;;  %v8041_v33 = vld [vmem:[#allocation32_spill] sm:$0xff] }
 0x337   :  { %8020 = vst [vmem:[#allocation51_spill] sm:$0xff] %v6781_v44  ;;  %5802 = vrcp.f32 %v2121_v41  ;;  %v2935_v5 = vmul.f32 %v6633_v24, %v6568_v56  ;;  %v2937_v9 = vmul.f32 %v6633_v24, %v6574_v58  ;;  %v2936_v36 = vmul.f32 %v6633_v24, %v6571_v57  ;;  %v8039_v26 = vld [vmem:[#allocation30_spill] sm:$0xff]  ;;  %v8042_v41 = vld [vmem:[#allocation33_spill] sm:$0xff] }
 0x338   :  { %8021 = vst [vmem:[#allocation52_spill] sm:$0xff] %v6784_v47  ;;  %8022 = vst [vmem:[#allocation53_spill] sm:$0xff] %v6787_v43  ;;  %v6797_v35 = vadd.f32 %v2815_v45, %v6595_v3  ;;  %v2938_v15 = vmul.f32 %v6633_v24, %v6577_v59  ;;  %v2817_v50 = vadd.f32 %v6617_v52, %v2809_v49  ;;  %v8043_v45 = vld [vmem:[#allocation34_spill] sm:$0xff]  ;;  %v8044_v49 = vld [vmem:[#allocation35_spill] sm:$0xff] }
 0x339   :  { %v2943_v38 = vadd.f32 %v6620_v55, %v2935_v5  ;;  %v2945_v53 = vadd.f32 %v6623_v21, %v2937_v9  ;;  %v2944_v56 = vadd.f32 %v6626_v54, %v2936_v36  ;;  %v8045_v5 = vld [vmem:[#allocation36_spill] sm:$0xff]  ;;  %v8046_v9 = vld [vmem:[#allocation37_spill] sm:$0xff]  ;;  %v8047_v36 = vld [vmem:[#allocation38_spill] sm:$0xff] }
 0x33a   :  { %8023 = vst [vmem:[#allocation54_spill] sm:$0xff] %v6797_v35  ;;  %v2946_v1 = vadd.f32 %v6629_v27, %v2938_v15  ;;  %v6809_v58 = vadd.f32 %v2817_v50, %v6601_v51  ;;  %v8048_v15 = vld [vmem:[#allocation39_spill] sm:$0xff]  ;;  %v8049_v50 = vld [vmem:[#allocation40_spill] sm:$0xff] }
 0x33b   :  { %v6812_v46 = vadd.f32 %v2943_v38, %v6592_v2  ;;  %v6815_v57 = vadd.f32 %v2945_v53, %v6598_v4  ;;  %v6818_v24 = vadd.f32 %v2944_v56, %v6595_v3  ;;  %v8050_v38 = vld [vmem:[#allocation41_spill] sm:$0xff]  ;;  %v8051_v53 = vld [vmem:[#allocation42_spill] sm:$0xff]  ;;  %v8052_v56 = vld [vmem:[#allocation43_spill] sm:$0xff] }
 0x33c   :  { %8024 = vst [vmem:[#allocation55_spill] sm:$0xff] %v6809_v58  ;;  %v6821_v59 = vadd.f32 %v2946_v1, %v6601_v51  ;;  %v8030_v51 = vmov 0   ;;  %v8053_v1 = vld [vmem:[#allocation16_spill] sm:$0xff] }
 0x33d   :  { %8025 = vst [vmem:[#allocation56_spill] sm:$0xff] %v6812_v46  ;;  %8026 = vst [vmem:[#allocation57_spill] sm:$0xff] %v6815_v57  ;;  %v8056_v58 = vld [vmem:[#allocation44_spill] sm:$0xff] }
 0x33e   :  { %8027 = vst [vmem:[#allocation58_spill] sm:$0xff] %v6818_v24  ;;  %8028 = vst [vmem:[#allocation59_spill] sm:$0xff] %v6821_v59 }
 0x341   :  { %v5799_v21 = vpop.eup %5798 }
 0x342   :  { %v5801_v52 = vpop.eup %5800  ;;  %v2122_v27 = vadd.f32 1.0, %v5799_v21  ;;  %v8054_v21 = vld [vmem:[#allocation18_spill] sm:$0xff] }
 0x343   :  { %v2131_v54 = vmul.f32 %v5801_v52, %v5793_v62  ;;  %v8031_v62 = vld [vmem:[#allocation22_spill] sm:$0xff] }
 0x344   :  { %v5803_v55 = vpop.eup %5802  ;;  %5804 = vrcp.f32 %v2122_v27 }
 0x345   :  { %v2130_v34 = vmul.f32 0.0, %v5803_v55 }
 0x347   :  { %v6823_v60 = vadd.f32 %v2131_v54, %v2130_v34 }
 0x349   :  { %5806 = vtanh.f32 %v6823_v60 }
 0x351   :  { %v5805_v2 = vpop.eup %5804 }
 0x356   :  { %v5807_v4 = vpop.eup %5806 }
 0x357   :  { %v6826_v32 = vmul.f32 %v5807_v4, %v5805_v2  ;;  %v8055_v4 = vld [vmem:[#allocation45_spill] sm:$0xff] }
 0x359   :  { %8029 = vst [vmem:[#allocation60_spill] sm:$0xff] %v6826_v32  ;;  %v2161_v3 = vpack.c.bf16 %v6826_v32, %v6826_v32 }
 0x35b   :  { %2195 = vmatmul.mubr.bf16.vlgmr.msra.gmra.mxu0 %v2161_v3  ;;  %2236 = vmatmul.mubr.bf16.vlgmr.msra.gmra.mxu1 %v2161_v3 }
 0x35c   :  { %2300 = vmatpush1.bf16.msra.mxu0 %v6410_v11  ;;  %2341 = vmatpush1.bf16.msra.mxu1 %v6412_v12 }
 0x35d   :  { %2301 = vmatprep.subr.bf16.mxu0 %v6414_v14  ;;  %2342 = vmatprep.subr.bf16.mxu1 %v6416_v16 }
 0x35e   :  { %2331 = vmatprep.mubr.bf16.mxu0 %v8030_v51  ;;  %2372 = vmatprep.mubr.bf16.mxu1 %v8030_v51 }
 0x360   :  { %2302 = vmatpush1.bf16.msra.mxu0 %v6419_v17  ;;  %2343 = vmatpush1.bf16.msra.mxu1 %v6422_v18 }
 0x361   :  { %2303 = vmatprep.subr.bf16.mxu0 %v6425_v19  ;;  %2344 = vmatprep.subr.bf16.mxu1 %v6428_v20 }
 0x364   :  { %2304 = vmatpush1.bf16.msra.mxu0 %v8031_v62  ;;  %2345 = vmatpush1.bf16.msra.mxu1 %v8032_v31 }
 0x365   :  { %2305 = vmatprep.subr.bf16.mxu0 %v8033_v39  ;;  %2346 = vmatprep.subr.bf16.mxu1 %v8034_v7 }
 0x368   :  { %2306 = vmatpush1.bf16.msra.mxu0 %v8035_v30  ;;  %2347 = vmatpush1.bf16.msra.mxu1 %v8036_v40 }
 0x369   :  { %2307 = vmatprep.subr.bf16.mxu0 %v8037_v61  ;;  %2348 = vmatprep.subr.bf16.mxu1 %v8038_v6 }
 0x36c   :  { %2308 = vmatpush1.bf16.msra.mxu0 %v8039_v26  ;;  %2349 = vmatpush1.bf16.msra.mxu1 %v8040_v23 }
 0x36d   :  { %2309 = vmatprep.subr.bf16.mxu0 %v8041_v33  ;;  %2350 = vmatprep.subr.bf16.mxu1 %v8042_v41 }
 0x370   :  { %2310 = vmatpush1.bf16.msra.mxu0 %v8043_v45  ;;  %2351 = vmatpush1.bf16.msra.mxu1 %v8044_v49 }
 0x371   :  { %2311 = vmatprep.subr.bf16.mxu0 %v8045_v5  ;;  %2352 = vmatprep.subr.bf16.mxu1 %v8046_v9 }
 0x374   :  { %2312 = vmatpush1.bf16.msra.mxu0 %v8047_v36  ;;  %2353 = vmatpush1.bf16.msra.mxu1 %v8048_v15 }
 0x375   :  { %2313 = vmatprep.subr.bf16.mxu0 %v8049_v50  ;;  %2354 = vmatprep.subr.bf16.mxu1 %v8050_v38 }
 0x378   :  { %2314 = vmatpush1.bf16.msra.mxu0 %v8051_v53  ;;  %2355 = vmatpush1.bf16.msra.mxu1 %v8052_v56 }
 0x379   :  { %2436 = vmatprep.subr.bf16.mxu0 %v8053_v1  ;;  %2477 = vmatprep.subr.bf16.mxu1 %v8054_v21  ;;  %v8057_v21 = vld [vmem:[#allocation46_spill] sm:$0xff] }
 0x41b   :  { %v2196_v52 = vpop.f32.mrf.mxu0  ;;  %v2237_v54 = vpop.f32.mrf.mxu1 }
 0x41c   :  { %v2244_v55 = vadd.f32 %v2196_v52, %v6664_v42  ;;  %v2246_v1 = vadd.f32 %v2237_v54, %v8056_v58 }
 0x41d   :  { %v2198_v27 = vpop.f32.mrf.mxu0  ;;  %v2239_v34 = vpop.f32.mrf.mxu1 }
 0x41e   :  { %v5089_v2 = vmul.f32 -1.442695, %v2244_v55  ;;  %v2245_v3 = vadd.f32 %v2198_v27, %v8055_v4  ;;  %v5091_v43 = vmul.f32 -1.442695, %v2246_v1  ;;  %v2247_v35 = vadd.f32 %v2239_v34, %v8057_v21  ;;  %v8060_v21 = vld [vmem:[#allocation48_spill] sm:$0xff] }
 0x41f   :  { %v2200_v32 = vpop.f32.mrf.mxu0  ;;  %v2241_v59 = vpop.f32.mrf.mxu1 }
 0x420   :  { %5808 = vpow2.f32 %v5089_v2  ;;  %v5090_v57 = vmul.f32 -1.442695, %v2245_v3 }
 0x421   :  { %v2201_v24 = vpop.f32.mrf.mxu0  ;;  %v2242_v46 = vpop.f32.mrf.mxu1 }
 0x422   :  { %5810 = vpow2.f32 %v5090_v57 }
 0x423   :  { %5812 = vpow2.f32 %v5091_v43 }
 0x424   :  { %5814 = vtanh.f32 %v2247_v35 }
 0x42d   :  { %v5809_v47 = vpop.eup %5808 }
 0x42e   :  { %v2257_v44 = vadd.f32 1.0, %v5809_v47 }
 0x42f   :  { %v5811_v42 = vpop.eup %5810 }
 0x430   :  { %5816 = vrcp.f32 %v2257_v44  ;;  %v2258_v52 = vadd.f32 1.0, %v5811_v42  ;;  %v5813_v32 = vpop.eup %5812 }
 0x431   :  { %v5815_v59 = vpop.eup %5814  ;;  %v2259_v46 = vadd.f32 1.0, %v5813_v32  ;;  %v8061_v32 = vld [vmem:[#allocation50_spill] sm:$0xff] }
 0x432   :  { %5818 = vrcp.f32 %v2258_v52 }
 0x433   :  { %5820 = vrcp.f32 %v2259_v46 }
 0x43d   :  { %v5817_v55 = vpop.eup %5816 }
 0x43e   :  { %v2268_v27 = vmul.f32 %v5817_v55, %v5815_v59 }
 0x43f   :  { %v5819_v24 = vpop.eup %5818 }
 0x440   :  { %v2267_v57 = vmul.f32 %v5819_v24, %v6823_v60  ;;  %v5821_v47 = vpop.eup %5820  ;;  %v8059_v60 = vld [vmem:[#allocation49_spill] sm:$0xff] }
 0x442   :  { %v6869_v58 = vadd.f32 %v2268_v27, %v2267_v57 }
 0x444   :  { %5822 = vtanh.f32 %v6869_v58 }
 0x451   :  { %v5823_v43 = vpop.eup %5822 }
 0x452   :  { %v6872_v54 = vmul.f32 %v5823_v43, %v5821_v47 }
 0x454   :  { %v2298_v44 = vpack.c.bf16 %v6872_v54, %v6872_v54 }
 0x456   :  { %2332 = vmatmul.mubr.bf16.vlgmr.msra.gmra.mxu0 %v2298_v44  ;;  %2373 = vmatmul.mubr.bf16.vlgmr.msra.gmra.mxu1 %v2298_v44 }
 0x457   :  { %2437 = vmatpush1.bf16.msra.mxu0 %v6410_v11  ;;  %2478 = vmatpush1.bf16.msra.mxu1 %v6412_v12  ;;  %v6908_v11 = vld [vmem:[#allocation9 + $0xe4] ss:$16 sps:$4 sm:$0xff]   ;;  %v6911_v12 = vld [vmem:[#allocation9 + $0xec] ss:$16 sps:$4 sm:$0xff]  }
 0x458   :  { %2438 = vmatprep.subr.bf16.mxu0 %v6414_v14  ;;  %2479 = vmatprep.subr.bf16.mxu1 %v6416_v16 }
 0x459   :  { %2468 = vmatprep.mubr.bf16.mxu0 %v8030_v51  ;;  %2509 = vmatprep.mubr.bf16.mxu1 %v8030_v51 }
 0x45b   :  { %2439 = vmatpush1.bf16.msra.mxu0 %v6419_v17  ;;  %2480 = vmatpush1.bf16.msra.mxu1 %v6422_v18  ;;  %v8058_v17 = vld [vmem:[#allocation47_spill] sm:$0xff] }
 0x45c   :  { %2440 = vmatprep.subr.bf16.mxu0 %v6425_v19  ;;  %2481 = vmatprep.subr.bf16.mxu1 %v6428_v20 }
 0x45f   :  { %2441 = vmatpush1.bf16.msra.mxu0 %v8031_v62  ;;  %2482 = vmatpush1.bf16.msra.mxu1 %v8032_v31 }
 0x460   :  { %2442 = vmatprep.subr.bf16.mxu0 %v8033_v39  ;;  %2483 = vmatprep.subr.bf16.mxu1 %v8034_v7 }
 0x463   :  { %2443 = vmatpush1.bf16.msra.mxu0 %v8035_v30  ;;  %2484 = vmatpush1.bf16.msra.mxu1 %v8036_v40 }
 0x464   :  { %2444 = vmatprep.subr.bf16.mxu0 %v8037_v61  ;;  %2485 = vmatprep.subr.bf16.mxu1 %v8038_v6 }
 0x467   :  { %2445 = vmatpush1.bf16.msra.mxu0 %v8039_v26  ;;  %2486 = vmatpush1.bf16.msra.mxu1 %v8040_v23 }
 0x468   :  { %2446 = vmatprep.subr.bf16.mxu0 %v8041_v33  ;;  %2487 = vmatprep.subr.bf16.mxu1 %v8042_v41 }
 0x46b   :  { %2447 = vmatpush1.bf16.msra.mxu0 %v8043_v45  ;;  %2488 = vmatpush1.bf16.msra.mxu1 %v8044_v49 }
 0x46c   :  { %2448 = vmatprep.subr.bf16.mxu0 %v8045_v5  ;;  %2489 = vmatprep.subr.bf16.mxu1 %v8046_v9 }
 0x46f   :  { %2449 = vmatpush1.bf16.msra.mxu0 %v8047_v36  ;;  %2490 = vmatpush1.bf16.msra.mxu1 %v8048_v15 }
 0x470   :  { %2450 = vmatprep.subr.bf16.mxu0 %v8049_v50  ;;  %2491 = vmatprep.subr.bf16.mxu1 %v8050_v38 }
 0x473   :  { %2451 = vmatpush1.bf16.msra.mxu0 %v8051_v53  ;;  %2492 = vmatpush1.bf16.msra.mxu1 %v8052_v56 }
 0x474   :  { %2565 = vmatprep.subr.bf16.mxu0 %v6908_v11  ;;  %2606 = vmatprep.subr.bf16.mxu1 %v6911_v12 }
 0x516   :  { %v2333_v14 = vpop.f32.mrf.mxu0  ;;  %v2374_v16 = vpop.f32.mrf.mxu1 }
 0x517   :  { %v2381_v18 = vadd.f32 %v2333_v14, %v8058_v17  ;;  %v2383_v42 = vadd.f32 %v2374_v16, %v8060_v21  ;;  %v6949_v21 = vld [vmem:[#allocation9 + $0xac] ss:$16 sps:$4 sm:$0xff]  }
 0x518   :  { %v2335_v19 = vpop.f32.mrf.mxu0  ;;  %v2376_v20 = vpop.f32.mrf.mxu1 }
 0x519   :  { %v5092_v35 = vmul.f32 -1.442695, %v2381_v18  ;;  %v2382_v62 = vadd.f32 %v2335_v19, %v8059_v60  ;;  %v5094_v52 = vmul.f32 -1.442695, %v2383_v42  ;;  %v2384_v59 = vadd.f32 %v2376_v20, %v8061_v32  ;;  %v6952_v42 = vld [vmem:[#allocation9 + $0xa0] ss:$16 sps:$4 sm:$0xff]  }
 0x51a   :  { %v2337_v34 = vpop.f32.mrf.mxu0  ;;  %v2378_v2 = vpop.f32.mrf.mxu1 }
 0x51b   :  { %5824 = vpow2.f32 %v5092_v35  ;;  %v5093_v4 = vmul.f32 -1.442695, %v2382_v62  ;;  %v6926_v62 = vld [vmem:[#allocation9 + $0xe0] ss:$16 sps:$4 sm:$0xff]   ;;  %v6929_v34 = vld [vmem:[#allocation9 + $0xe8] ss:$16 sps:$4 sm:$0xff]  }
 0x51c   :  { %v2338_v3 = vpop.f32.mrf.mxu0  ;;  %v2379_v1 = vpop.f32.mrf.mxu1  ;;  %v6935_v2 = vld [vmem:[#allocation9 + $0xcc] ss:$16 sps:$4 sm:$0xff]  }
 0x51d   :  { %5826 = vpow2.f32 %v5093_v4  ;;  %v6940_v4 = vld [vmem:[#allocation9 + $0xc0] ss:$16 sps:$4 sm:$0xff]   ;;  %v6943_v3 = vld [vmem:[#allocation9 + $0xc8] ss:$16 sps:$4 sm:$0xff]   ;;  %v6946_v1 = vld [vmem:[#allocation9 + $0xa4] ss:$16 sps:$4 sm:$0xff]  }
 0x51e   :  { %5828 = vpow2.f32 %v5094_v52 }
 0x51f   :  { %5830 = vtanh.f32 %v2384_v59 }
 0x528   :  { %v5825_v55 = vpop.eup %5824 }
 0x529   :  { %v2394_v27 = vadd.f32 1.0, %v5825_v55 }
 0x52a   :  { %v5827_v24 = vpop.eup %5826 }
 0x52b   :  { %5832 = vrcp.f32 %v2394_v27  ;;  %v2395_v46 = vadd.f32 1.0, %v5827_v24  ;;  %v5829_v57 = vpop.eup %5828 }
 0x52c   :  { %v5831_v47 = vpop.eup %5830  ;;  %v2396_v17 = vadd.f32 1.0, %v5829_v57  ;;  %v7004_v57 = vld [vmem:[#allocation9 + $0x84] ss:$16 sps:$4 sm:$0xff]  }
 0x52d   :  { %5834 = vrcp.f32 %v2395_v46  ;;  %v7001_v46 = vld [vmem:[#allocation9 + $0xa8] ss:$16 sps:$4 sm:$0xff]  }
 0x52e   :  { %5836 = vrcp.f32 %v2396_v17  ;;  %v7019_v17 = vld [vmem:[#allocation9 + $0x6c] ss:$16 sps:$4 sm:$0xff]  }
 0x538   :  { %v5833_v43 = vpop.eup %5832 }
 0x539   :  { %v2405_v44 = vmul.f32 %v5833_v43, %v5831_v47  ;;  %v7007_v47 = vld [vmem:[#allocation9 + $0x8c] ss:$16 sps:$4 sm:$0xff]   ;;  %v7010_v43 = vld [vmem:[#allocation9 + $0x80] ss:$16 sps:$4 sm:$0xff]  }
 0x53a   :  { %v5835_v14 = vpop.eup %5834 }
 0x53b   :  { %v2404_v18 = vmul.f32 %v5835_v14, %v6869_v58  ;;  %v5837_v19 = vpop.eup %5836  ;;  %v6932_v58 = vld [vmem:[#allocation9 + $0xc4] ss:$16 sps:$4 sm:$0xff]  }
 0x53c   :  { %v7016_v14 = vld [vmem:[#allocation9 + $0x64] ss:$16 sps:$4 sm:$0xff]  }
 0x53d   :  { %v6919_v16 = vadd.f32 %v2405_v44, %v2404_v18  ;;  %v7013_v44 = vld [vmem:[#allocation9 + $0x88] ss:$16 sps:$4 sm:$0xff]   ;;  %v7022_v18 = vld [vmem:[#allocation9 + $0x60] ss:$16 sps:$4 sm:$0xff]  }
 0x53f   :  { %5838 = vtanh.f32 %v6919_v16 }
 0x54c   :  { %v5839_v20 = vpop.eup %5838 }
 0x54d   :  { %v6922_v35 = vmul.f32 %v5839_v20, %v5837_v19  ;;  %v7028_v19 = vld [vmem:[#allocation9 + $0x44] ss:$16 sps:$4 sm:$0xff]   ;;  %v7031_v20 = vld [vmem:[#allocation9 + $0x4c] ss:$16 sps:$4 sm:$0xff]  }
 0x54f   :  { %v2435_v60 = vpack.c.bf16 %v6922_v35, %v6922_v35 }
 0x551   :  { %2469 = vmatmul.mubr.bf16.vlgmr.msra.gmra.mxu0 %v2435_v60  ;;  %2510 = vmatmul.mubr.bf16.vlgmr.msra.gmra.mxu1 %v2435_v60  ;;  %v7034_v60 = vld [vmem:[#allocation9 + $0x40] ss:$16 sps:$4 sm:$0xff]  }
 0x552   :  { %2566 = vmatpush1.bf16.msra.mxu0 %v6926_v62  ;;  %2607 = vmatpush1.bf16.msra.mxu1 %v6929_v34 }
 0x553   :  { %2567 = vmatprep.subr.bf16.mxu0 %v6932_v58  ;;  %2608 = vmatprep.subr.bf16.mxu1 %v6935_v2 }
 0x554   :  { %2597 = vmatprep.mubr.bf16.mxu0 %v8030_v51  ;;  %2638 = vmatprep.mubr.bf16.mxu1 %v8030_v51 }
 0x556   :  { %2568 = vmatpush1.bf16.msra.mxu0 %v6940_v4  ;;  %2609 = vmatpush1.bf16.msra.mxu1 %v6943_v3 }
 0x557   :  { %2569 = vmatprep.subr.bf16.mxu0 %v6946_v1  ;;  %2610 = vmatprep.subr.bf16.mxu1 %v6949_v21 }
 0x55a   :  { %2570 = vmatpush1.bf16.msra.mxu0 %v6952_v42  ;;  %2611 = vmatpush1.bf16.msra.mxu1 %v8032_v31 }
 0x55b   :  { %2571 = vmatprep.subr.bf16.mxu0 %v8033_v39  ;;  %2612 = vmatprep.subr.bf16.mxu1 %v8034_v7 }
 0x55e   :  { %2572 = vmatpush1.bf16.msra.mxu0 %v8035_v30  ;;  %2613 = vmatpush1.bf16.msra.mxu1 %v8036_v40 }
 0x55f   :  { %2573 = vmatprep.subr.bf16.mxu0 %v8037_v61  ;;  %2614 = vmatprep.subr.bf16.mxu1 %v8038_v6 }
 0x562   :  { %2574 = vmatpush1.bf16.msra.mxu0 %v8039_v26  ;;  %2615 = vmatpush1.bf16.msra.mxu1 %v8040_v23 }
 0x563   :  { %2575 = vmatprep.subr.bf16.mxu0 %v8041_v33  ;;  %2616 = vmatprep.subr.bf16.mxu1 %v8042_v41 }
 0x566   :  { %2576 = vmatpush1.bf16.msra.mxu0 %v8043_v45  ;;  %2617 = vmatpush1.bf16.msra.mxu1 %v8044_v49 }
 0x567   :  { %2577 = vmatprep.subr.bf16.mxu0 %v8045_v5  ;;  %2618 = vmatprep.subr.bf16.mxu1 %v8046_v9 }
 0x56a   :  { %2578 = vmatpush1.bf16.msra.mxu0 %v8047_v36  ;;  %2619 = vmatpush1.bf16.msra.mxu1 %v8048_v15 }
 0x56b   :  { %2579 = vmatprep.subr.bf16.mxu0 %v8049_v50  ;;  %2620 = vmatprep.subr.bf16.mxu1 %v8050_v38 }
 0x56e   :  { %2580 = vmatpush1.bf16.msra.mxu0 %v8051_v53  ;;  %2621 = vmatpush1.bf16.msra.mxu1 %v8052_v56 }
 0x56f   :  { %2694 = vmatprep.subr.bf16.mxu0 %v6908_v11  ;;  %2735 = vmatprep.subr.bf16.mxu1 %v6911_v12 }
 0x611   :  { %v2470_v31 = vpop.f32.mrf.mxu0  ;;  %v2511_v39 = vpop.f32.mrf.mxu1 }
 0x612   :  { %v2518_v7 = vadd.f32 %v2470_v31, %v6726_v0  ;;  %v2520_v49 = vadd.f32 %v2511_v39, %v6729_v37  ;;  %v7037_v31 = vld [vmem:[#allocation9 + $0x48] ss:$16 sps:$4 sm:$0xff]   ;;  %v7040_v39 = vld [vmem:[#allocation9 + $0x24] ss:$16 sps:$4 sm:$0xff]  }
 0x613   :  { %v2472_v30 = vpop.f32.mrf.mxu0  ;;  %v2513_v40 = vpop.f32.mrf.mxu1 }
 0x614   :  { %v5095_v61 = vmul.f32 -1.442695, %v2518_v7  ;;  %v2519_v6 = vadd.f32 %v2472_v30, %v6732_v25  ;;  %v5097_v5 = vmul.f32 -1.442695, %v2520_v49  ;;  %v2521_v9 = vadd.f32 %v2513_v40, %v6735_v22  ;;  %v7043_v7 = vld [vmem:[#allocation9 + $0x2c] ss:$16 sps:$4 sm:$0xff]  }
 0x615   :  { %v2474_v26 = vpop.f32.mrf.mxu0  ;;  %v2515_v23 = vpop.f32.mrf.mxu1  ;;  %v7046_v30 = vld [vmem:[#allocation9 + $0x20] ss:$16 sps:$4 sm:$0xff]   ;;  %v7049_v40 = vld [vmem:[#allocation9 + $0x28] ss:$16 sps:$4 sm:$0xff]  }
 0x616   :  { %5840 = vpow2.f32 %v5095_v61  ;;  %v5096_v33 = vmul.f32 -1.442695, %v2519_v6  ;;  %v7052_v61 = vld [vmem:[#allocation9 + $0x4] ss:$16 sps:$4 sm:$0xff]   ;;  %v7055_v6 = vld [vmem:[#allocation9 + $0xc] ss:$16 sps:$4 sm:$0xff]  }
 0x617   :  { %v2475_v41 = vpop.f32.mrf.mxu0  ;;  %v2516_v45 = vpop.f32.mrf.mxu1  ;;  %v7058_v26 = vld [vmem:[#allocation9] ss:$16 sps:$4 sm:$0xff]   ;;  %v7061_v23 = vld [vmem:[#allocation9 + $0x8] ss:$16 sps:$4 sm:$0xff]  }
 0x618   :  { %5842 = vpow2.f32 %v5096_v33 }
 0x619   :  { %5844 = vpow2.f32 %v5097_v5 }
 0x61a   :  { %5846 = vtanh.f32 %v2521_v9 }
 0x623   :  { %v5841_v36 = vpop.eup %5840 }
 0x624   :  { %v2531_v15 = vadd.f32 1.0, %v5841_v36 }
 0x625   :  { %v5843_v0 = vpop.eup %5842 }
 0x626   :  { %5848 = vrcp.f32 %v2531_v15  ;;  %v2532_v50 = vadd.f32 1.0, %v5843_v0  ;;  %v5845_v25 = vpop.eup %5844 }
 0x627   :  { %v5847_v38 = vpop.eup %5846  ;;  %v2533_v32 = vadd.f32 1.0, %v5845_v25 }
 0x628   :  { %5850 = vrcp.f32 %v2532_v50 }
 0x629   :  { %5852 = vrcp.f32 %v2533_v32 }
 0x633   :  { %v5849_v53 = vpop.eup %5848 }
 0x634   :  { %v2542_v56 = vmul.f32 %v5849_v53, %v5847_v38 }
 0x635   :  { %v5851_v52 = vpop.eup %5850 }
 0x636   :  { %v2541_v59 = vmul.f32 %v5851_v52, %v6919_v16  ;;  %v5853_v22 = vpop.eup %5852  ;;  %v7025_v16 = vld [vmem:[#allocation9 + $0x68] ss:$16 sps:$4 sm:$0xff]  }
 0x638   :  { %v6983_v37 = vadd.f32 %v2542_v56, %v2541_v59 }
 0x63a   :  { %5854 = vtanh.f32 %v6983_v37 }
 0x647   :  { %v5855_v55 = vpop.eup %5854 }
 0x648   :  { %v6986_v27 = vmul.f32 %v5855_v55, %v5853_v22 }
 0x64a   :  { %v2564_v24 = vpack.c.bf16 %v6986_v27, %v6986_v27 }
 0x64c   :  { %2598 = vmatmul.mubr.bf16.vlgmr.msra.gmra.mxu0 %v2564_v24  ;;  %2639 = vmatmul.mubr.bf16.vlgmr.msra.gmra.mxu1 %v2564_v24 }
 0x64d   :  { %2695 = vmatpush1.bf16.msra.mxu0 %v6926_v62  ;;  %2736 = vmatpush1.bf16.msra.mxu1 %v6929_v34 }
 0x64e   :  { %2696 = vmatprep.subr.bf16.mxu0 %v6932_v58  ;;  %2737 = vmatprep.subr.bf16.mxu1 %v6935_v2 }
 0x64f   :  { %2726 = vmatprep.mubr.bf16.mxu0 %v8030_v51  ;;  %2767 = vmatprep.mubr.bf16.mxu1 %v8030_v51 }
 0x651   :  { %2697 = vmatpush1.bf16.msra.mxu0 %v6940_v4  ;;  %2738 = vmatpush1.bf16.msra.mxu1 %v6943_v3 }
 0x652   :  { %2698 = vmatprep.subr.bf16.mxu0 %v6946_v1  ;;  %2739 = vmatprep.subr.bf16.mxu1 %v6949_v21 }
 0x655   :  { %2699 = vmatpush1.bf16.msra.mxu0 %v6952_v42  ;;  %2740 = vmatpush1.bf16.msra.mxu1 %v7001_v46 }
 0x656   :  { %2700 = vmatprep.subr.bf16.mxu0 %v7004_v57  ;;  %2741 = vmatprep.subr.bf16.mxu1 %v7007_v47 }
 0x659   :  { %2701 = vmatpush1.bf16.msra.mxu0 %v7010_v43  ;;  %2742 = vmatpush1.bf16.msra.mxu1 %v7013_v44 }
 0x65a   :  { %2702 = vmatprep.subr.bf16.mxu0 %v7016_v14  ;;  %2743 = vmatprep.subr.bf16.mxu1 %v7019_v17 }
 0x65d   :  { %2703 = vmatpush1.bf16.msra.mxu0 %v7022_v18  ;;  %2744 = vmatpush1.bf16.msra.mxu1 %v7025_v16 }
 0x65e   :  { %2704 = vmatprep.subr.bf16.mxu0 %v7028_v19  ;;  %2745 = vmatprep.subr.bf16.mxu1 %v7031_v20 }
 0x661   :  { %2705 = vmatpush1.bf16.msra.mxu0 %v7034_v60  ;;  %2746 = vmatpush1.bf16.msra.mxu1 %v7037_v31 }
 0x662   :  { %2706 = vmatprep.subr.bf16.mxu0 %v7040_v39  ;;  %2747 = vmatprep.subr.bf16.mxu1 %v7043_v7 }
 0x665   :  { %2707 = vmatpush1.bf16.msra.mxu0 %v7046_v30  ;;  %2748 = vmatpush1.bf16.msra.mxu1 %v7049_v40 }
 0x666   :  { %2708 = vmatprep.subr.bf16.mxu0 %v7052_v61  ;;  %2749 = vmatprep.subr.bf16.mxu1 %v7055_v6 }
 0x669   :  { %2709 = vmatpush1.bf16.msra.mxu0 %v7058_v26  ;;  %2750 = vmatpush1.bf16.msra.mxu1 %v7061_v23 }
 0x66a   :  { %2823 = vmatprep.subr.bf16.mxu0 %v6908_v11  ;;  %2864 = vmatprep.subr.bf16.mxu1 %v6911_v12 }
 0x70c   :  { %v2599_v33 = vpop.f32.mrf.mxu0  ;;  %v2640_v41 = vpop.f32.mrf.mxu1 }
 0x70d   :  { %v2647_v45 = vadd.f32 %v2599_v33, %v6738_v8  ;;  %v2649_v53 = vadd.f32 %v2640_v41, %v6741_v10 }
 0x70e   :  { %v2601_v49 = vpop.f32.mrf.mxu0  ;;  %v2642_v5 = vpop.f32.mrf.mxu1 }
 0x70f   :  { %v5098_v9 = vmul.f32 -1.442695, %v2647_v45  ;;  %v2648_v36 = vadd.f32 %v2601_v49, %v6744_v13  ;;  %v5100_v56 = vmul.f32 -1.442695, %v2649_v53  ;;  %v2650_v52 = vadd.f32 %v2642_v5, %v6747_v63 }
 0x710   :  { %v2603_v15 = vpop.f32.mrf.mxu0  ;;  %v2644_v0 = vpop.f32.mrf.mxu1 }
 0x711   :  { %5856 = vpow2.f32 %v5098_v9  ;;  %v5099_v50 = vmul.f32 -1.442695, %v2648_v36 }
 0x712   :  { %v2604_v25 = vpop.f32.mrf.mxu0  ;;  %v2645_v38 = vpop.f32.mrf.mxu1 }
 0x713   :  { %5858 = vpow2.f32 %v5099_v50 }
 0x714   :  { %5860 = vpow2.f32 %v5100_v56 }
 0x715   :  { %5862 = vtanh.f32 %v2650_v52 }
 0x71e   :  { %v5857_v32 = vpop.eup %5856 }
 0x71f   :  { %v2660_v59 = vadd.f32 1.0, %v5857_v32 }
 0x720   :  { %v5859_v8 = vpop.eup %5858 }
 0x721   :  { %5864 = vrcp.f32 %v2660_v59  ;;  %v2661_v22 = vadd.f32 1.0, %v5859_v8  ;;  %v5861_v13 = vpop.eup %5860 }
 0x722   :  { %v5863_v55 = vpop.eup %5862  ;;  %v2662_v49 = vadd.f32 1.0, %v5861_v13 }
 0x723   :  { %5866 = vrcp.f32 %v2661_v22 }
 0x724   :  { %5868 = vrcp.f32 %v2662_v49 }
 0x72e   :  { %v5865_v24 = vpop.eup %5864 }
 0x72f   :  { %v2671_v33 = vmul.f32 %v5865_v24, %v5863_v55 }
 0x730   :  { %v5867_v45 = vpop.eup %5866 }
 0x731   :  { %v2670_v9 = vmul.f32 %v5867_v45, %v6983_v37  ;;  %v5869_v63 = vpop.eup %5868 }
 0x733   :  { %v7071_v10 = vadd.f32 %v2671_v33, %v2670_v9 }
 0x735   :  { %5870 = vtanh.f32 %v7071_v10 }
 0x742   :  { %v5871_v41 = vpop.eup %5870 }
 0x743   :  { %v7074_v5 = vmul.f32 %v5871_v41, %v5869_v63 }
 0x745   :  { %v2693_v36 = vpack.c.bf16 %v7074_v5, %v7074_v5 }
 0x747   :  { %2727 = vmatmul.mubr.bf16.vlgmr.msra.gmra.mxu0 %v2693_v36  ;;  %2768 = vmatmul.mubr.bf16.vlgmr.msra.gmra.mxu1 %v2693_v36 }
 0x748   :  { %2824 = vmatpush1.bf16.msra.mxu0 %v6926_v62  ;;  %2865 = vmatpush1.bf16.msra.mxu1 %v6929_v34 }
 0x749   :  { %2825 = vmatprep.subr.bf16.mxu0 %v6932_v58  ;;  %2866 = vmatprep.subr.bf16.mxu1 %v6935_v2 }
 0x74a   :  { %2855 = vmatprep.mubr.bf16.mxu0 %v8030_v51  ;;  %2896 = vmatprep.mubr.bf16.mxu1 %v8030_v51 }
 0x74c   :  { %2826 = vmatpush1.bf16.msra.mxu0 %v6940_v4  ;;  %2867 = vmatpush1.bf16.msra.mxu1 %v6943_v3 }
 0x74d   :  { %2827 = vmatprep.subr.bf16.mxu0 %v6946_v1  ;;  %2868 = vmatprep.subr.bf16.mxu1 %v6949_v21 }
 0x750   :  { %2828 = vmatpush1.bf16.msra.mxu0 %v6952_v42  ;;  %2869 = vmatpush1.bf16.msra.mxu1 %v7001_v46 }
 0x751   :  { %2829 = vmatprep.subr.bf16.mxu0 %v7004_v57  ;;  %2870 = vmatprep.subr.bf16.mxu1 %v7007_v47 }
 0x754   :  { %2830 = vmatpush1.bf16.msra.mxu0 %v7010_v43  ;;  %2871 = vmatpush1.bf16.msra.mxu1 %v7013_v44 }
 0x755   :  { %2831 = vmatprep.subr.bf16.mxu0 %v7016_v14  ;;  %2872 = vmatprep.subr.bf16.mxu1 %v7019_v17 }
 0x758   :  { %2832 = vmatpush1.bf16.msra.mxu0 %v7022_v18  ;;  %2873 = vmatpush1.bf16.msra.mxu1 %v7025_v16 }
 0x759   :  { %2833 = vmatprep.subr.bf16.mxu0 %v7028_v19  ;;  %2874 = vmatprep.subr.bf16.mxu1 %v7031_v20 }
 0x75c   :  { %2834 = vmatpush1.bf16.msra.mxu0 %v7034_v60  ;;  %2875 = vmatpush1.bf16.msra.mxu1 %v7037_v31 }
 0x75d   :  { %2835 = vmatprep.subr.bf16.mxu0 %v7040_v39  ;;  %2876 = vmatprep.subr.bf16.mxu1 %v7043_v7 }
 0x760   :  { %2836 = vmatpush1.bf16.msra.mxu0 %v7046_v30  ;;  %2877 = vmatpush1.bf16.msra.mxu1 %v7049_v40 }
 0x761   :  { %2837 = vmatprep.subr.bf16.mxu0 %v7052_v61  ;;  %2878 = vmatprep.subr.bf16.mxu1 %v7055_v6 }
 0x764   :  { %2838 = vmatpush1.bf16.msra.mxu0 %v7058_v26  ;;  %2879 = vmatpush1.bf16.msra.mxu1 %v7061_v23 }
 0x765   :  { %2952 = vmatprep.subr.bf16.mxu0 %v6908_v11  ;;  %2993 = vmatprep.subr.bf16.mxu1 %v6911_v12  ;;  %v8062_v12 = vld [vmem:[#allocation51_spill] sm:$0xff] }
 0x807   :  { %v2728_v37 = vpop.f32.mrf.mxu0  ;;  %v2769_v15 = vpop.f32.mrf.mxu1 }
 0x808   :  { %v2776_v0 = vadd.f32 %v2728_v37, %v6771_v28  ;;  %v2778_v11 = vadd.f32 %v2769_v15, %v6774_v48 }
 0x809   :  { %v2730_v50 = vpop.f32.mrf.mxu0  ;;  %v2771_v25 = vpop.f32.mrf.mxu1 }
 0x80a   :  { %v5101_v38 = vmul.f32 -1.442695, %v2776_v0  ;;  %v2777_v53 = vadd.f32 %v2730_v50, %v6778_v29  ;;  %v5103_v22 = vmul.f32 -1.442695, %v2778_v11  ;;  %v2779_v13 = vadd.f32 %v2771_v25, %v8062_v12  ;;  %v5648_v11 = vld [vmem:[%s7923_s11 + $0xc4] ss:$16 sps:$4 sm:$0xff]  }
 0x80b   :  { %v2732_v56 = vpop.f32.mrf.mxu0  ;;  %v2773_v52 = vpop.f32.mrf.mxu1  ;;  %v5649_v12 = vld [vmem:[%s7923_s11 + $0xc8] ss:$16 sps:$4 sm:$0xff]  }
 0x80c   :  { %5872 = vpow2.f32 %v5101_v38  ;;  %v5102_v32 = vmul.f32 -1.442695, %v2777_v53 }
 0x80d   :  { %v2733_v59 = vpop.f32.mrf.mxu0  ;;  %v2774_v8 = vpop.f32.mrf.mxu1 }
 0x80e   :  { %5874 = vpow2.f32 %v5102_v32  ;;  %v5640_v32 = vld [vmem:[%s7923_s11 + $0xe0] ss:$16 sps:$4 sm:$0xff]   ;;  %v5643_v59 = vld [vmem:[%s7923_s11 + $0xe8] ss:$16 sps:$4 sm:$0xff]  }
 0x80f   :  { %5876 = vpow2.f32 %v5103_v22  ;;  %v5646_v22 = vld [vmem:[%s7923_s11 + $0xc0] ss:$16 sps:$4 sm:$0xff]  }
 0x810   :  { %5878 = vtanh.f32 %v2779_v13  ;;  %v5651_v13 = vld [vmem:[%s7923_s11 + $0xcc] ss:$16 sps:$4 sm:$0xff]  }
 0x819   :  { %v5873_v55 = vpop.eup %5872 }
 0x81a   :  { %v2789_v24 = vadd.f32 1.0, %v5873_v55  ;;  %v5654_v55 = vld [vmem:[%s7923_s11 + $0xa4] ss:$16 sps:$4 sm:$0xff]  }
 0x81b   :  { %v5875_v28 = vpop.eup %5874 }
 0x81c   :  { %5880 = vrcp.f32 %v2789_v24  ;;  %v2790_v33 = vadd.f32 1.0, %v5875_v28  ;;  %v5877_v29 = vpop.eup %5876  ;;  %v5657_v24 = vld [vmem:[%s7923_s11 + $0xac] ss:$16 sps:$4 sm:$0xff]   ;;  %v5652_v28 = vld [vmem:[%s7923_s11 + $0xa0] ss:$16 sps:$4 sm:$0xff]  }
 0x81d   :  { %v5879_v45 = vpop.eup %5878  ;;  %v2791_v41 = vadd.f32 1.0, %v5877_v29  ;;  %v5660_v29 = vld [vmem:[%s7923_s11 + $0x84] ss:$16 sps:$4 sm:$0xff]  }
 0x81e   :  { %5882 = vrcp.f32 %v2790_v33  ;;  %v5655_v33 = vld [vmem:[%s7923_s11 + $0xa8] ss:$16 sps:$4 sm:$0xff]  }
 0x81f   :  { %5884 = vrcp.f32 %v2791_v41  ;;  %v5669_v41 = vld [vmem:[%s7923_s11 + $0x6c] ss:$16 sps:$4 sm:$0xff]  }
 0x829   :  { %v5881_v49 = vpop.eup %5880 }
 0x82a   :  { %v2800_v9 = vmul.f32 %v5881_v49, %v5879_v45  ;;  %v5663_v45 = vld [vmem:[%s7923_s11 + $0x8c] ss:$16 sps:$4 sm:$0xff]   ;;  %v5658_v49 = vld [vmem:[%s7923_s11 + $0x80] ss:$16 sps:$4 sm:$0xff]  }
 0x82b   :  { %v5883_v63 = vpop.eup %5882 }
 0x82c   :  { %v2799_v36 = vmul.f32 %v5883_v63, %v7071_v10  ;;  %v5885_v37 = vpop.eup %5884  ;;  %v5666_v63 = vld [vmem:[%s7923_s11 + $0x64] ss:$16 sps:$4 sm:$0xff]  }
 0x82e   :  { %v7117_v48 = vadd.f32 %v2800_v9, %v2799_v36  ;;  %v5661_v9 = vld [vmem:[%s7923_s11 + $0x88] ss:$16 sps:$4 sm:$0xff]   ;;  %v5664_v36 = vld [vmem:[%s7923_s11 + $0x60] ss:$16 sps:$4 sm:$0xff]  }
 0x830   :  { %5886 = vtanh.f32 %v7117_v48 }
 0x83d   :  { %v5887_v15 = vpop.eup %5886 }
 0x83e   :  { %v7120_v0 = vmul.f32 %v5887_v15, %v5885_v37  ;;  %v5670_v37 = vld [vmem:[%s7923_s11 + $0x40] ss:$16 sps:$4 sm:$0xff]   ;;  %v5672_v15 = vld [vmem:[%s7923_s11 + $0x44] ss:$16 sps:$4 sm:$0xff]  }
 0x840   :  { %v2822_v50 = vpack.c.bf16 %v7120_v0, %v7120_v0 }
 0x842   :  { %2856 = vmatmul.mubr.bf16.vlgmr.msra.gmra.mxu0 %v2822_v50  ;;  %2897 = vmatmul.mubr.bf16.vlgmr.msra.gmra.mxu1 %v2822_v50  ;;  %v5673_v50 = vld [vmem:[%s7923_s11 + $0x48] ss:$16 sps:$4 sm:$0xff]  }
 0x843   :  { %2953 = vmatpush1.bf16.msra.mxu0 %v6926_v62  ;;  %2994 = vmatpush1.bf16.msra.mxu1 %v6929_v34  ;;  %v5642_v62 = vld [vmem:[%s7923_s11 + $0xe4] ss:$16 sps:$4 sm:$0xff]   ;;  %v5645_v34 = vld [vmem:[%s7923_s11 + $0xec] ss:$16 sps:$4 sm:$0xff]  }
 0x844   :  { %2954 = vmatprep.subr.bf16.mxu0 %v6932_v58  ;;  %2995 = vmatprep.subr.bf16.mxu1 %v6935_v2 }
 0x845   :  { %2984 = vmatprep.mubr.bf16.mxu0 %v8030_v51  ;;  %3025 = vmatprep.mubr.bf16.mxu1 %v8030_v51 }
 0x847   :  { %2955 = vmatpush1.bf16.msra.mxu0 %v6940_v4  ;;  %2996 = vmatpush1.bf16.msra.mxu1 %v6943_v3  ;;  %v8063_v4 = vld [vmem:[#allocation52_spill] sm:$0xff] }
 0x848   :  { %2956 = vmatprep.subr.bf16.mxu0 %v6946_v1  ;;  %2997 = vmatprep.subr.bf16.mxu1 %v6949_v21 }
 0x84b   :  { %2957 = vmatpush1.bf16.msra.mxu0 %v6952_v42  ;;  %2998 = vmatpush1.bf16.msra.mxu1 %v7001_v46  ;;  %v8064_v46 = vld [vmem:[#allocation54_spill] sm:$0xff] }
 0x84c   :  { %2958 = vmatprep.subr.bf16.mxu0 %v7004_v57  ;;  %2999 = vmatprep.subr.bf16.mxu1 %v7007_v47 }
 0x84f   :  { %2959 = vmatpush1.bf16.msra.mxu0 %v7010_v43  ;;  %3000 = vmatpush1.bf16.msra.mxu1 %v7013_v44 }
 0x850   :  { %2960 = vmatprep.subr.bf16.mxu0 %v7016_v14  ;;  %3001 = vmatprep.subr.bf16.mxu1 %v7019_v17 }
 0x853   :  { %2961 = vmatpush1.bf16.msra.mxu0 %v7022_v18  ;;  %3002 = vmatpush1.bf16.msra.mxu1 %v7025_v16  ;;  %v8065_v18 = vld [vmem:[#allocation53_spill] sm:$0xff] }
 0x854   :  { %2962 = vmatprep.subr.bf16.mxu0 %v7028_v19  ;;  %3003 = vmatprep.subr.bf16.mxu1 %v7031_v20  ;;  %v8066_v20 = vld [vmem:[#allocation55_spill] sm:$0xff] }
 0x857   :  { %2963 = vmatpush1.bf16.msra.mxu0 %v7034_v60  ;;  %3004 = vmatpush1.bf16.msra.mxu1 %v7037_v31 }
 0x858   :  { %2964 = vmatprep.subr.bf16.mxu0 %v7040_v39  ;;  %3005 = vmatprep.subr.bf16.mxu1 %v7043_v7 }
 0x85b   :  { %2965 = vmatpush1.bf16.msra.mxu0 %v7046_v30  ;;  %3006 = vmatpush1.bf16.msra.mxu1 %v7049_v40 }
 0x85c   :  { %2966 = vmatprep.subr.bf16.mxu0 %v7052_v61  ;;  %3007 = vmatprep.subr.bf16.mxu1 %v7055_v6 }
 0x85f   :  { %2967 = vmatpush1.bf16.msra.mxu0 %v7058_v26  ;;  %3008 = vmatpush1.bf16.msra.mxu1 %v7061_v23 }
 0x860   :  { %3494 = vmatprep.subr.bf16.mxu0 %v5642_v62  ;;  %3567 = vmatprep.subr.bf16.mxu1 %v5645_v34  ;;  %v5675_v62 = vld [vmem:[%s7923_s11 + $0x4c] ss:$16 sps:$4 sm:$0xff]   ;;  %v5678_v34 = vld [vmem:[%s7923_s11 + $0x24] ss:$16 sps:$4 sm:$0xff]  }
 0x902   :  { %v2857_v58 = vpop.f32.mrf.mxu0  ;;  %v2898_v2 = vpop.f32.mrf.mxu1 }
 0x903   :  { %v2905_v3 = vadd.f32 %v2857_v58, %v8063_v4  ;;  %v2907_v16 = vadd.f32 %v2898_v2, %v8065_v18  ;;  %v5681_v58 = vld [vmem:[%s7923_s11 + $0x2c] ss:$16 sps:$4 sm:$0xff]   ;;  %v5676_v2 = vld [vmem:[%s7923_s11 + $0x20] ss:$16 sps:$4 sm:$0xff]   ;;  %v5679_v4 = vld [vmem:[%s7923_s11 + $0x28] ss:$16 sps:$4 sm:$0xff]  }
 0x904   :  { %v2859_v1 = vpop.f32.mrf.mxu0  ;;  %v2900_v21 = vpop.f32.mrf.mxu1  ;;  %v5697_v18 = vld [vmem:[%s7923_s11 + $0x1c8] ss:$16 sps:$4 sm:$0xff]  }
 0x905   :  { %v5104_v42 = vmul.f32 -1.442695, %v2905_v3  ;;  %v2906_v57 = vadd.f32 %v2859_v1, %v8064_v46  ;;  %v5106_v19 = vmul.f32 -1.442695, %v2907_v16  ;;  %v2908_v60 = vadd.f32 %v2900_v21, %v8066_v20  ;;  %v5684_v3 = vld [vmem:[%s7923_s11 + $0x4] ss:$16 sps:$4 sm:$0xff]  }
 0x906   :  { %v2861_v47 = vpop.f32.mrf.mxu0  ;;  %v2902_v43 = vpop.f32.mrf.mxu1  ;;  %v5687_v1 = vld [vmem:[%s7923_s11 + $0xc] ss:$16 sps:$4 sm:$0xff]   ;;  %v5682_v21 = vld [vmem:[%s7923_s11] ss:$16 sps:$4 sm:$0xff]   ;;  %v5690_v46 = vld [vmem:[%s7923_s11 + $0x1e4] ss:$16 sps:$4 sm:$0xff]  }
 0x907   :  { %5888 = vpow2.f32 %v5104_v42  ;;  %v5105_v44 = vmul.f32 -1.442695, %v2906_v57  ;;  %v5685_v42 = vld [vmem:[%s7923_s11 + $0x8] ss:$16 sps:$4 sm:$0xff]   ;;  %v5693_v57 = vld [vmem:[%s7923_s11 + $0x1ec] ss:$16 sps:$4 sm:$0xff]  }
 0x908   :  { %v2862_v14 = vpop.f32.mrf.mxu0  ;;  %v2903_v17 = vpop.f32.mrf.mxu1  ;;  %v5688_v47 = vld [vmem:[%s7923_s11 + $0x1e0] ss:$16 sps:$4 sm:$0xff]   ;;  %v5691_v43 = vld [vmem:[%s7923_s11 + $0x1e8] ss:$16 sps:$4 sm:$0xff]   ;;  %v5702_v16 = vld [vmem:[%s7923_s11 + $0x1a4] ss:$16 sps:$4 sm:$0xff]  }
 0x909   :  { %5890 = vpow2.f32 %v5105_v44  ;;  %v5696_v44 = vld [vmem:[%s7923_s11 + $0x1c4] ss:$16 sps:$4 sm:$0xff]   ;;  %v5699_v14 = vld [vmem:[%s7923_s11 + $0x1cc] ss:$16 sps:$4 sm:$0xff]   ;;  %v5694_v17 = vld [vmem:[%s7923_s11 + $0x1c0] ss:$16 sps:$4 sm:$0xff]  }
 0x90a   :  { %5892 = vpow2.f32 %v5106_v19  ;;  %v5705_v19 = vld [vmem:[%s7923_s11 + $0x1ac] ss:$16 sps:$4 sm:$0xff]   ;;  %v5700_v20 = vld [vmem:[%s7923_s11 + $0x1a0] ss:$16 sps:$4 sm:$0xff]  }
 0x90b   :  { %5894 = vtanh.f32 %v2908_v60  ;;  %v5703_v60 = vld [vmem:[%s7923_s11 + $0x1a8] ss:$16 sps:$4 sm:$0xff]  }
 0x914   :  { %v5889_v31 = vpop.eup %5888 }
 0x915   :  { %v2918_v39 = vadd.f32 1.0, %v5889_v31  ;;  %v5708_v31 = vld [vmem:[%s7923_s11 + $0x184] ss:$16 sps:$4 sm:$0xff]  }
 0x916   :  { %v5891_v7 = vpop.eup %5890 }
 0x917   :  { %5896 = vrcp.f32 %v2918_v39  ;;  %v2919_v30 = vadd.f32 1.0, %v5891_v7  ;;  %v5893_v40 = vpop.eup %5892  ;;  %v5711_v39 = vld [vmem:[%s7923_s11 + $0x18c] ss:$16 sps:$4 sm:$0xff]   ;;  %v5706_v7 = vld [vmem:[%s7923_s11 + $0x180] ss:$16 sps:$4 sm:$0xff]  }
 0x918   :  { %v5895_v61 = vpop.eup %5894  ;;  %v2920_v10 = vadd.f32 1.0, %v5893_v40  ;;  %v5714_v40 = vld [vmem:[%s7923_s11 + $0x164] ss:$16 sps:$4 sm:$0xff]  }
 0x919   :  { %5898 = vrcp.f32 %v2919_v30  ;;  %v5709_v30 = vld [vmem:[%s7923_s11 + $0x188] ss:$16 sps:$4 sm:$0xff]  }
 0x91a   :  { %5900 = vrcp.f32 %v2920_v10  ;;  %v5723_v10 = vld [vmem:[%s7923_s11 + $0x14c] ss:$16 sps:$4 sm:$0xff]  }
 0x924   :  { %v5897_v6 = vpop.eup %5896 }
 0x925   :  { %v2929_v26 = vmul.f32 %v5897_v6, %v5895_v61  ;;  %v5717_v61 = vld [vmem:[%s7923_s11 + $0x16c] ss:$16 sps:$4 sm:$0xff]   ;;  %v5712_v6 = vld [vmem:[%s7923_s11 + $0x160] ss:$16 sps:$4 sm:$0xff]  }
 0x926   :  { %v5899_v23 = vpop.eup %5898 }
 0x927   :  { %v2928_v25 = vmul.f32 %v5899_v23, %v7117_v48  ;;  %v5901_v53 = vpop.eup %5900  ;;  %v5667_v48 = vld [vmem:[%s7923_s11 + $0x68] ss:$16 sps:$4 sm:$0xff]   ;;  %v5720_v23 = vld [vmem:[%s7923_s11 + $0x144] ss:$16 sps:$4 sm:$0xff]  }
 0x929   :  { %v7167_v38 = vadd.f32 %v2929_v26, %v2928_v25  ;;  %v5715_v26 = vld [vmem:[%s7923_s11 + $0x168] ss:$16 sps:$4 sm:$0xff]   ;;  %v5718_v25 = vld [vmem:[%s7923_s11 + $0x140] ss:$16 sps:$4 sm:$0xff]  }
 0x92b   :  { %5902 = vtanh.f32 %v7167_v38 }
 0x938   :  { %v5903_v56 = vpop.eup %5902 }
 0x939   :  { %v7170_v52 = vmul.f32 %v5903_v56, %v5901_v53  ;;  %v5721_v53 = vld [vmem:[%s7923_s11 + $0x148] ss:$16 sps:$4 sm:$0xff]   ;;  %v5726_v56 = vld [vmem:[%s7923_s11 + $0x124] ss:$16 sps:$4 sm:$0xff]  }
 0x93b   :  { %v2951_v8 = vpack.c.bf16 %v7170_v52, %v7170_v52 }
 0x93d   :  { %2985 = vmatmul.mubr.bf16.vlgmr.msra.gmra.mxu0 %v2951_v8  ;;  %3026 = vmatmul.mubr.bf16.vlgmr.msra.gmra.mxu1 %v2951_v8  ;;  %v5727_v8 = vld [vmem:[%s7923_s11 + $0x128] ss:$16 sps:$4 sm:$0xff]  }
 0x93e   :  { %3495 = vmatpush1.bf16.msra.mxu0 %v5640_v32  ;;  %3568 = vmatpush1.bf16.msra.mxu1 %v5643_v59  ;;  %v5729_v32 = vld [vmem:[%s7923_s11 + $0x12c] ss:$16 sps:$4 sm:$0xff]   ;;  %v5724_v59 = vld [vmem:[%s7923_s11 + $0x120] ss:$16 sps:$4 sm:$0xff]  }
 0x93f   :  { %3496 = vmatprep.subr.bf16.mxu0 %v5648_v11  ;;  %3569 = vmatprep.subr.bf16.mxu1 %v5651_v13  ;;  %v5732_v11 = vld [vmem:[%s7923_s11 + $0x104] ss:$16 sps:$4 sm:$0xff]   ;;  %v5733_v13 = vld [vmem:[%s7923_s11 + $0x108] ss:$16 sps:$4 sm:$0xff]  }
 0x942   :  { %3497 = vmatpush1.bf16.msra.mxu0 %v5646_v22  ;;  %3570 = vmatpush1.bf16.msra.mxu1 %v5649_v12  ;;  %v5735_v22 = vld [vmem:[%s7923_s11 + $0x10c] ss:$16 sps:$4 sm:$0xff]   ;;  %v5730_v12 = vld [vmem:[%s7923_s11 + $0x100] ss:$16 sps:$4 sm:$0xff]  }
 0x943   :  { %3498 = vmatprep.subr.bf16.mxu0 %v5654_v55  ;;  %3571 = vmatprep.subr.bf16.mxu1 %v5657_v24  ;;  %v7360_v55 = vld [vmem:[#allocation10 + $0xe4] ss:$16 sps:$4 sm:$0xff]   ;;  %v7362_v24 = vld [vmem:[#allocation10 + $0xec] ss:$16 sps:$4 sm:$0xff]  }
 0x946   :  { %3499 = vmatpush1.bf16.msra.mxu0 %v5652_v28  ;;  %3572 = vmatpush1.bf16.msra.mxu1 %v5655_v33 }
 0x947   :  { %3500 = vmatprep.subr.bf16.mxu0 %v5660_v29  ;;  %3573 = vmatprep.subr.bf16.mxu1 %v5663_v45  ;;  %v8067_v29 = vld [vmem:[#allocation56_spill] sm:$0xff] }
 0x94a   :  { %3501 = vmatpush1.bf16.msra.mxu0 %v5658_v49  ;;  %3574 = vmatpush1.bf16.msra.mxu1 %v5661_v9 }
 0x94b   :  { %3502 = vmatprep.subr.bf16.mxu0 %v5666_v63  ;;  %3575 = vmatprep.subr.bf16.mxu1 %v5669_v41  ;;  %v8068_v41 = vld [vmem:[#allocation58_spill] sm:$0xff] }
 0x94e   :  { %3503 = vmatpush1.bf16.msra.mxu0 %v5664_v36  ;;  %3576 = vmatpush1.bf16.msra.mxu1 %v5667_v48 }
 0x94f   :  { %3504 = vmatprep.subr.bf16.mxu0 %v5672_v15  ;;  %3577 = vmatprep.subr.bf16.mxu1 %v5675_v62 }
 0x952   :  { %3505 = vmatpush1.bf16.msra.mxu0 %v5670_v37  ;;  %3578 = vmatpush1.bf16.msra.mxu1 %v5673_v50 }
 0x953   :  { %3506 = vmatprep.subr.bf16.mxu0 %v5678_v34  ;;  %3579 = vmatprep.subr.bf16.mxu1 %v5681_v58  ;;  %v8069_v34 = vld [vmem:[#allocation57_spill] sm:$0xff] }
 0x956   :  { %3507 = vmatpush1.bf16.msra.mxu0 %v5676_v2  ;;  %3580 = vmatpush1.bf16.msra.mxu1 %v5679_v4  ;;  %v8070_v4 = vld [vmem:[#allocation59_spill] sm:$0xff] }
 0x957   :  { %3508 = vmatprep.subr.bf16.mxu0 %v5684_v3  ;;  %3581 = vmatprep.subr.bf16.mxu1 %v5687_v1 }
 0x95a   :  { %3509 = vmatpush1.bf16.msra.mxu0 %v5682_v21  ;;  %3582 = vmatpush1.bf16.msra.mxu1 %v5685_v42 }
 0x95b   :  { %3510 = vmatprep.subr.bf16.mxu0 %v5690_v46  ;;  %3583 = vmatprep.subr.bf16.mxu1 %v5693_v57 }
 0x95e   :  { %3511 = vmatpush2.bf16.msra.mxu0 %v5688_v47  ;;  %3584 = vmatpush2.bf16.msra.mxu1 %v5691_v43 }
 0x95f   :  { %3512 = vmatprep.subr.bf16.mxu0 %v5696_v44  ;;  %3585 = vmatprep.subr.bf16.mxu1 %v5699_v14 }
 0x962   :  { %3513 = vmatpush2.bf16.msra.mxu0 %v5694_v17  ;;  %3586 = vmatpush2.bf16.msra.mxu1 %v5697_v18 }
 0x963   :  { %3514 = vmatprep.subr.bf16.mxu0 %v5702_v16  ;;  %3587 = vmatprep.subr.bf16.mxu1 %v5705_v19 }
 0x966   :  { %3515 = vmatpush2.bf16.msra.mxu0 %v5700_v20  ;;  %3588 = vmatpush2.bf16.msra.mxu1 %v5703_v60 }
 0x967   :  { %3516 = vmatprep.subr.bf16.mxu0 %v5708_v31  ;;  %3589 = vmatprep.subr.bf16.mxu1 %v5711_v39  ;;  %v7375_v39 = vld [vmem:[#allocation10 + $0xe0] ss:$16 sps:$4 sm:$0xff]  }
 0x96a   :  { %3517 = vmatpush2.bf16.msra.mxu0 %v5706_v7  ;;  %3590 = vmatpush2.bf16.msra.mxu1 %v5709_v30  ;;  %v8071_v7 = vld [vmem:[#allocation60_spill] sm:$0xff] }
 0x96b   :  { %3518 = vmatprep.subr.bf16.mxu0 %v5714_v40  ;;  %3591 = vmatprep.subr.bf16.mxu1 %v5717_v61  ;;  %v3080_v30 = vpack.c.bf16 %v6872_v54, %v8071_v7  ;;  %v7379_v40 = vld [vmem:[#allocation10 + $0xe8] ss:$16 sps:$4 sm:$0xff]   ;;  %v7383_v61 = vld [vmem:[#allocation10 + $0xc4] ss:$16 sps:$4 sm:$0xff]  }
 0x96e   :  { %3519 = vmatpush2.bf16.msra.mxu0 %v5712_v6  ;;  %3592 = vmatpush2.bf16.msra.mxu1 %v5715_v26  ;;  %v7385_v6 = vld [vmem:[#allocation10 + $0xcc] ss:$16 sps:$4 sm:$0xff]   ;;  %v7388_v26 = vld [vmem:[#allocation10 + $0xc0] ss:$16 sps:$4 sm:$0xff]  }
 0x96f   :  { %3520 = vmatprep.subr.bf16.mxu0 %v5720_v23  ;;  %3593 = vmatprep.subr.bf16.mxu1 %v5723_v10  ;;  %v7391_v23 = vld [vmem:[#allocation10 + $0xc8] ss:$16 sps:$4 sm:$0xff]   ;;  %v7393_v10 = vld [vmem:[#allocation10 + $0xa4] ss:$16 sps:$4 sm:$0xff]  }
 0x972   :  { %3521 = vmatpush2.bf16.msra.mxu0 %v5718_v25  ;;  %3594 = vmatpush2.bf16.msra.mxu1 %v5721_v53  ;;  %v7397_v25 = vld [vmem:[#allocation10 + $0xac] ss:$16 sps:$4 sm:$0xff]   ;;  %v7400_v53 = vld [vmem:[#allocation10 + $0xa0] ss:$16 sps:$4 sm:$0xff]  }
 0x973   :  { %3522 = vmatprep.subr.bf16.mxu0 %v5726_v56  ;;  %3595 = vmatprep.subr.bf16.mxu1 %v5729_v32  ;;  %v3082_v56 = vpack.c.bf16 %v6986_v27, %v6922_v35  ;;  %v7406_v32 = vld [vmem:[#allocation10 + $0xa8] ss:$16 sps:$4 sm:$0xff]  }
 0x976   :  { %3523 = vmatpush2.bf16.msra.mxu0 %v5724_v59  ;;  %3596 = vmatpush2.bf16.msra.mxu1 %v5727_v8  ;;  %v3085_v59 = vpack.c.bf16 %v6922_v35, %v6986_v27  ;;  %v7411_v8 = vld [vmem:[#allocation10 + $0x84] ss:$16 sps:$4 sm:$0xff]   ;;  %v7425_v35 = vld [vmem:[#allocation10 + $0x6c] ss:$16 sps:$4 sm:$0xff]   ;;  %v7428_v27 = vld [vmem:[#allocation10 + $0x60] ss:$16 sps:$4 sm:$0xff]  }
 0x977   :  { %3524 = vmatprep.subr.bf16.mxu0 %v5732_v11  ;;  %3597 = vmatprep.subr.bf16.mxu1 %v5735_v22  ;;  %v7413_v11 = vld [vmem:[#allocation10 + $0x8c] ss:$16 sps:$4 sm:$0xff]   ;;  %v7416_v22 = vld [vmem:[#allocation10 + $0x80] ss:$16 sps:$4 sm:$0xff]  }
 0x97a   :  { %3525 = vmatpush2.bf16.msra.mxu0 %v5730_v12  ;;  %3598 = vmatpush2.bf16.msra.mxu1 %v5733_v13  ;;  %v7419_v12 = vld [vmem:[#allocation10 + $0x88] ss:$16 sps:$4 sm:$0xff]   ;;  %v7421_v13 = vld [vmem:[#allocation10 + $0x64] ss:$16 sps:$4 sm:$0xff]  }
 0x97b   :  { %3832 = vmatprep.subr.bf16.mxu0 %v7360_v55  ;;  %3873 = vmatprep.subr.bf16.mxu1 %v7362_v24 }
 0x9fd   :  { %v2986_v28 = vpop.f32.mrf.mxu0  ;;  %v3027_v33 = vpop.f32.mrf.mxu1 }
 0x9fe   :  { %v3034_v45 = vadd.f32 %v2986_v28, %v8067_v29  ;;  %v3036_v58 = vadd.f32 %v3027_v33, %v8069_v34  ;;  %v3084_v28 = vpack.c.bf16 %v7120_v0, %v7074_v5  ;;  %v7434_v33 = vld [vmem:[#allocation10 + $0x68] ss:$16 sps:$4 sm:$0xff]   ;;  %v3087_v29 = vpack.c.bf16 %v8071_v7, %v6872_v54  ;;  %v7453_v54 = vld [vmem:[#allocation10 + $0x2c] ss:$16 sps:$4 sm:$0xff]  }
 0x9ff   :  { %v2988_v49 = vpop.f32.mrf.mxu0  ;;  %v3029_v9 = vpop.f32.mrf.mxu1 }
 0xa00   :  { %v5107_v63 = vmul.f32 -1.442695, %v3034_v45  ;;  %v3035_v36 = vadd.f32 %v2988_v49, %v8068_v41  ;;  %v5109_v2 = vmul.f32 -1.442695, %v3036_v58  ;;  %v3037_v3 = vadd.f32 %v3029_v9, %v8070_v4  ;;  %v7439_v45 = vld [vmem:[#allocation10 + $0x44] ss:$16 sps:$4 sm:$0xff]  }
 0xa01   :  { %v2990_v48 = vpop.f32.mrf.mxu0  ;;  %v3031_v37 = vpop.f32.mrf.mxu1  ;;  %v7441_v49 = vld [vmem:[#allocation10 + $0x4c] ss:$16 sps:$4 sm:$0xff]   ;;  %v7444_v9 = vld [vmem:[#allocation10 + $0x40] ss:$16 sps:$4 sm:$0xff]  }
 0xa02   :  { %5904 = vpow2.f32 %v5107_v63  ;;  %v5108_v15 = vmul.f32 -1.442695, %v3035_v36  ;;  %v7456_v63 = vld [vmem:[#allocation10 + $0x20] ss:$16 sps:$4 sm:$0xff]   ;;  %v7462_v36 = vld [vmem:[#allocation10 + $0x28] ss:$16 sps:$4 sm:$0xff]  }
 0xa03   :  { %v2991_v50 = vpop.f32.mrf.mxu0  ;;  %v3032_v62 = vpop.f32.mrf.mxu1  ;;  %v7464_v48 = vld [vmem:[#allocation10 + $0x4] ss:$16 sps:$4 sm:$0xff]   ;;  %v7467_v37 = vld [vmem:[#allocation10 + $0xc] ss:$16 sps:$4 sm:$0xff]  }
 0xa04   :  { %5906 = vpow2.f32 %v5108_v15  ;;  %v7470_v15 = vld [vmem:[#allocation10] ss:$16 sps:$4 sm:$0xff]   ;;  %v8072_v4 = vld [vmem:[#allocation17_spill] sm:$0xff] }
 0xa05   :  { %5908 = vpow2.f32 %v5109_v2  ;;  %v3152_v50 = vld [vmem:[%s7924_s12] sm:$0xf] }
 0xa06   :  { %5910 = vtanh.f32 %v3037_v3  ;;  %v3157_v3 = vrot.slane %v3152_v50, %v8072_v4 }
 0xa0f   :  { %v5905_v1 = vpop.eup %5904 }
 0xa10   :  { %v3047_v21 = vadd.f32 1.0, %v5905_v1  ;;  %v8073_v1 = vld [vmem:[#allocation20_spill] sm:$0xff] }
 0xa11   :  { %v5907_v42 = vpop.eup %5906 }
 0xa12   :  { %5912 = vrcp.f32 %v3047_v21  ;;  %v3048_v46 = vadd.f32 1.0, %v5907_v42  ;;  %v5909_v57 = vpop.eup %5908  ;;  %v7530_v21 = vrot.slane %v3152_v50, %v8073_v1 }
 0xa13   :  { %v5911_v47 = vpop.eup %5910  ;;  %v3049_v17 = vadd.f32 1.0, %v5909_v57  ;;  %v8074_v57 = vld [vmem:[#allocation19_spill] sm:$0xff] }
 0xa14   :  { %5914 = vrcp.f32 %v3048_v46 }
 0xa15   :  { %5916 = vrcp.f32 %v3049_v17 }
 0xa1f   :  { %v5913_v43 = vpop.eup %5912 }
 0xa20   :  { %v3058_v44 = vmul.f32 %v5913_v43, %v5911_v47  ;;  %v3161_v47 = vrot.slane %v3152_v50, %v8074_v57  ;;  %v8075_v43 = vld [vmem:[#allocation21_spill] sm:$0xff] }
 0xa21   :  { %v5915_v14 = vpop.eup %5914 }
 0xa22   :  { %v3057_v18 = vmul.f32 %v5915_v14, %v7167_v38  ;;  %v5917_v19 = vpop.eup %5916  ;;  %v3083_v38 = vpack.c.bf16 %v7074_v5, %v7120_v0  ;;  %v7447_v5 = vld [vmem:[#allocation10 + $0x48] ss:$16 sps:$4 sm:$0xff]   ;;  %v7449_v0 = vld [vmem:[#allocation10 + $0x24] ss:$16 sps:$4 sm:$0xff]  }
 0xa24   :  { %v3059_v16 = vadd.f32 %v3058_v44, %v3057_v18  ;;  %v7534_v44 = vrot.slane %v3152_v50, %v8075_v43 }
 0xa26   :  { %5918 = vtanh.f32 %v3059_v16 }
 0xa33   :  { %v5919_v20 = vpop.eup %5918 }
 0xa34   :  { %v7371_v60 = vmul.f32 %v5919_v20, %v5917_v19 }
 0xa36   :  { %v3081_v31 = vpack.c.bf16 %v7170_v52, %v7371_v60  ;;  %v3086_v41 = vpack.c.bf16 %v7371_v60, %v7170_v52  ;;  %v7475_v52 = vld [vmem:[#allocation10 + $0x8] ss:$16 sps:$4 sm:$0xff]  }
 0xa38   :  { %3526 = vmatprep.mubr.bf16.mxu0 %v3081_v31  ;;  %3599 = vmatprep.mubr.bf16.mxu1 %v3081_v31 }
 0xa39   :  { %3527 = vmatmul.mubr.bf16.vlgmr.msra.gmra.mxu0 %v3080_v30  ;;  %3600 = vmatmul.mubr.bf16.vlgmr.msra.gmra.mxu1 %v3080_v30 }
 0xa3a   :  { %3833 = vmatpush1.bf16.msra.mxu0 %v7375_v39  ;;  %3536 = vmatprep.mubr.bf16.mxu0 %v3083_v38 }
 0xa3b   :  { %3609 = vmatprep.mubr.bf16.mxu1 %v3083_v38  ;;  %3874 = vmatpush1.bf16.msra.mxu1 %v7379_v40 }
 0xa3c   :  { %3834 = vmatprep.subr.bf16.mxu0 %v7383_v61  ;;  %3875 = vmatprep.subr.bf16.mxu1 %v7385_v6 }
 0xa3e   :  { %3835 = vmatpush1.bf16.msra.mxu0 %v7388_v26 }
 0xa3f   :  { %3876 = vmatpush1.bf16.msra.mxu1 %v7391_v23  ;;  %3836 = vmatprep.subr.bf16.mxu0 %v7393_v10 }
 0xa40   :  { %3877 = vmatprep.subr.bf16.mxu1 %v7397_v25 }
 0xa41   :  { %3537 = vmatmul.mubr.bf16.gmra.mxu0 %v3082_v56  ;;  %3610 = vmatmul.mubr.bf16.gmra.mxu1 %v3082_v56 }
 0xa42   :  { %3837 = vmatpush1.bf16.msra.mxu0 %v7400_v53  ;;  %3546 = vmatprep.mubr.bf16.mxu0 %v3085_v59 }
 0xa43   :  { %3619 = vmatprep.mubr.bf16.mxu1 %v3085_v59  ;;  %3878 = vmatpush1.bf16.msra.mxu1 %v7406_v32 }
 0xa44   :  { %3838 = vmatprep.subr.bf16.mxu0 %v7411_v8  ;;  %3879 = vmatprep.subr.bf16.mxu1 %v7413_v11 }
 0xa46   :  { %3839 = vmatpush1.bf16.msra.mxu0 %v7416_v22 }
 0xa47   :  { %3880 = vmatpush1.bf16.msra.mxu1 %v7419_v12  ;;  %3840 = vmatprep.subr.bf16.mxu0 %v7421_v13 }
 0xa48   :  { %3881 = vmatprep.subr.bf16.mxu1 %v7425_v35 }
 0xa49   :  { %3547 = vmatmul.mubr.bf16.gmra.mxu0 %v3084_v28  ;;  %3620 = vmatmul.mubr.bf16.gmra.mxu1 %v3084_v28 }
 0xa4a   :  { %3841 = vmatpush1.bf16.msra.mxu0 %v7428_v27  ;;  %3556 = vmatprep.mubr.bf16.mxu0 %v3087_v29 }
 0xa4b   :  { %3629 = vmatprep.mubr.bf16.mxu1 %v3087_v29  ;;  %3882 = vmatpush1.bf16.msra.mxu1 %v7434_v33 }
 0xa4c   :  { %3842 = vmatprep.subr.bf16.mxu0 %v7439_v45  ;;  %3883 = vmatprep.subr.bf16.mxu1 %v7441_v49 }
 0xa4e   :  { %3843 = vmatpush1.bf16.msra.mxu0 %v7444_v9 }
 0xa4f   :  { %3884 = vmatpush1.bf16.msra.mxu1 %v7447_v5  ;;  %3844 = vmatprep.subr.bf16.mxu0 %v7449_v0 }
 0xa50   :  { %3885 = vmatprep.subr.bf16.mxu1 %v7453_v54 }
 0xa51   :  { %3557 = vmatmul.mubr.bf16.gmra.mxu0 %v3086_v41  ;;  %3630 = vmatmul.mubr.bf16.gmra.mxu1 %v3086_v41 }
 0xa52   :  { %3845 = vmatpush1.bf16.msra.mxu0 %v7456_v63  ;;  %3864 = vmatprep.mubr.bf16.mxu0 %v8030_v51 }
 0xa53   :  { %3886 = vmatpush1.bf16.msra.mxu1 %v7462_v36  ;;  %3846 = vmatprep.subr.bf16.mxu0 %v7464_v48 }
 0xa54   :  { %3887 = vmatprep.subr.bf16.mxu1 %v7467_v37  ;;  %3905 = vmatprep.mubr.bf16.mxu1 %v8030_v51 }
 0xa56   :  { %3847 = vmatpush1.bf16.msra.mxu0 %v7470_v15 }
 0xa57   :  { %3888 = vmatpush1.bf16.msra.mxu1 %v7475_v52  ;;  %3943 = vmatprep.subr.bf16.mxu0 %v7360_v55 }
 0xa58   :  { %3984 = vmatprep.subr.bf16.mxu1 %v7362_v24 }
 0xa59   :  { %3865 = vmatmul.mubr.bf16.vlgmr.msra.gmra.mxu0 %v8030_v51 }
 0xa5a   :  { %3906 = vmatmul.mubr.bf16.vlgmr.msra.gmra.mxu1 %v8030_v51  ;;  %3944 = vmatpush1.bf16.msra.mxu0 %v7375_v39 }
 0xa5b   :  { %3985 = vmatpush1.bf16.msra.mxu1 %v7379_v40  ;;  %3945 = vmatprep.subr.bf16.mxu0 %v7383_v61 }
 0xa5c   :  { %3986 = vmatprep.subr.bf16.mxu1 %v7385_v6  ;;  %3975 = vmatprep.mubr.bf16.mxu0 %v8030_v51 }
 0xa5d   :  { %4016 = vmatprep.mubr.bf16.mxu1 %v8030_v51 }
 0xa5e   :  { %3946 = vmatpush1.bf16.msra.mxu0 %v7388_v26 }
 0xa5f   :  { %3987 = vmatpush1.bf16.msra.mxu1 %v7391_v23  ;;  %3947 = vmatprep.subr.bf16.mxu0 %v7393_v10 }
 0xa60   :  { %3988 = vmatprep.subr.bf16.mxu1 %v7397_v25 }
 0xa62   :  { %3948 = vmatpush1.bf16.msra.mxu0 %v7400_v53 }
 0xa63   :  { %3989 = vmatpush1.bf16.msra.mxu1 %v7406_v32  ;;  %3949 = vmatprep.subr.bf16.mxu0 %v7411_v8 }
 0xa64   :  { %3990 = vmatprep.subr.bf16.mxu1 %v7413_v11 }
 0xa66   :  { %3950 = vmatpush1.bf16.msra.mxu0 %v7416_v22 }
 0xa67   :  { %3991 = vmatpush1.bf16.msra.mxu1 %v7419_v12  ;;  %3951 = vmatprep.subr.bf16.mxu0 %v7421_v13 }
 0xa68   :  { %3992 = vmatprep.subr.bf16.mxu1 %v7425_v35 }
 0xa6a   :  { %3952 = vmatpush1.bf16.msra.mxu0 %v7428_v27 }
 0xa6b   :  { %3993 = vmatpush1.bf16.msra.mxu1 %v7434_v33  ;;  %3953 = vmatprep.subr.bf16.mxu0 %v7439_v45 }
 0xa6c   :  { %3994 = vmatprep.subr.bf16.mxu1 %v7441_v49 }
 0xa6e   :  { %3954 = vmatpush1.bf16.msra.mxu0 %v7444_v9 }
 0xa6f   :  { %3995 = vmatpush1.bf16.msra.mxu1 %v7447_v5  ;;  %3955 = vmatprep.subr.bf16.mxu0 %v7449_v0 }
 0xa70   :  { %3996 = vmatprep.subr.bf16.mxu1 %v7453_v54 }
 0xa72   :  { %3956 = vmatpush1.bf16.msra.mxu0 %v7456_v63 }
 0xa73   :  { %3997 = vmatpush1.bf16.msra.mxu1 %v7462_v36  ;;  %3957 = vmatprep.subr.bf16.mxu0 %v7464_v48 }
 0xa74   :  { %3998 = vmatprep.subr.bf16.mxu1 %v7467_v37 }
 0xa76   :  { %3958 = vmatpush1.bf16.msra.mxu0 %v7470_v15 }
 0xa77   :  { %3999 = vmatpush1.bf16.msra.mxu1 %v7475_v52  ;;  %4054 = vmatprep.subr.bf16.mxu0 %v7360_v55 }
 0xa78   :  { %4095 = vmatprep.subr.bf16.mxu1 %v7362_v24 }
 0xaf9   :  { %v3528_v62 = vpop.f32.mrf.mxu0  ;;  %v7522_v34 = vpop.f32.mrf.mxu1 }
 0xafb   :  { %v7524_v58 = vpop.f32.mrf.mxu0  ;;  %v7526_v2 = vpop.f32.mrf.mxu1 }
 0xafd   :  { %v3532_v42 = vpop.f32.mrf.mxu0  ;;  %v3605_v46 = vpop.f32.mrf.mxu1 }
 0xafe   :  { %v7536_v14 = vadd.f32 %v3532_v42, %v3157_v3  ;;  %v7539_v17 = vadd.f32 %v3605_v46, %v7530_v21 }
 0xaff   :  { %v3534_v18 = vpop.f32.mrf.mxu0  ;;  %v3607_v16 = vpop.f32.mrf.mxu1 }
 0xb00   :  { %v7541_v19 = vadd.f32 %v3534_v18, %v3161_v47  ;;  %v7544_v20 = vadd.f32 %v3607_v16, %v7534_v44 }
 0xb01   :  { %v3538_v60 = vpop.f32.mrf.mxu0  ;;  %v3611_v31 = vpop.f32.mrf.mxu1 }
 0xb02   :  { %v7546_v7 = vadd.f32 %v3538_v60, %v3157_v3  ;;  %v7549_v30 = vadd.f32 %v3611_v31, %v7530_v21 }
 0xb03   :  { %v3540_v38 = vpop.f32.mrf.mxu0  ;;  %v3613_v56 = vpop.f32.mrf.mxu1 }
 0xb04   :  { %8076 = vst [vmem:[#allocation22_spill] sm:$0xff] %v7549_v30  ;;  %v7551_v59 = vadd.f32 %v3540_v38, %v3161_v47  ;;  %v7554_v28 = vadd.f32 %v3613_v56, %v7534_v44 }
 0xb05   :  { %v3542_v29 = vpop.f32.mrf.mxu0  ;;  %v3615_v41 = vpop.f32.mrf.mxu1 }
 0xb06   :  { %8077 = vst [vmem:[#allocation23_spill] sm:$0xff] %v7554_v28  ;;  %v7556_v50 = vadd.f32 %v3542_v29, %v3157_v3  ;;  %v7559_v4 = vadd.f32 %v3615_v41, %v7530_v21 }
 0xb07   :  { %v3544_v1 = vpop.f32.mrf.mxu0  ;;  %v3617_v42 = vpop.f32.mrf.mxu1 }
 0xb08   :  { %8078 = vst [vmem:[#allocation24_spill] sm:$0xff] %v7556_v50  ;;  %8079 = vst [vmem:[#allocation25_spill] sm:$0xff] %v7559_v4  ;;  %v7561_v46 = vadd.f32 %v3544_v1, %v3161_v47  ;;  %v7564_v57 = vadd.f32 %v3617_v42, %v7534_v44 }
 0xb09   :  { %v3548_v43 = vpop.f32.mrf.mxu0  ;;  %v3621_v18 = vpop.f32.mrf.mxu1 }
 0xb0a   :  { %8080 = vst [vmem:[#allocation26_spill] sm:$0xff] %v7561_v46  ;;  %8081 = vst [vmem:[#allocation27_spill] sm:$0xff] %v7564_v57  ;;  %v7566_v16 = vadd.f32 %v3548_v43, %v3157_v3  ;;  %v7569_v60 = vadd.f32 %v3621_v18, %v7530_v21 }
 0xb0b   :  { %v3550_v31 = vpop.f32.mrf.mxu0  ;;  %v3623_v38 = vpop.f32.mrf.mxu1 }
 0xb0c   :  { %8082 = vst [vmem:[#allocation28_spill] sm:$0xff] %v7566_v16  ;;  %8083 = vst [vmem:[#allocation29_spill] sm:$0xff] %v7569_v60  ;;  %v7571_v56 = vadd.f32 %v3550_v31, %v3161_v47  ;;  %v7574_v29 = vadd.f32 %v3623_v38, %v7534_v44 }
 0xb0d   :  { %v3552_v41 = vpop.f32.mrf.mxu0  ;;  %v3625_v1 = vpop.f32.mrf.mxu1 }
 0xb0e   :  { %8084 = vst [vmem:[#allocation30_spill] sm:$0xff] %v7571_v56  ;;  %8085 = vst [vmem:[#allocation31_spill] sm:$0xff] %v7574_v29  ;;  %v7576_v4 = vadd.f32 %v3552_v41, %v3157_v3  ;;  %v7579_v42 = vadd.f32 %v3625_v1, %v7530_v21 }
 0xb0f   :  { %v3554_v57 = vpop.f32.mrf.mxu0  ;;  %v3627_v43 = vpop.f32.mrf.mxu1 }
 0xb10   :  { %8086 = vst [vmem:[#allocation32_spill] sm:$0xff] %v7576_v4  ;;  %8087 = vst [vmem:[#allocation33_spill] sm:$0xff] %v7579_v42  ;;  %v7581_v16 = vadd.f32 %v3554_v57, %v3161_v47  ;;  %v7584_v18 = vadd.f32 %v3627_v43, %v7534_v44 }
 0xb11   :  { %v3558_v60 = vpop.f32.mrf.mxu0  ;;  %v3631_v31 = vpop.f32.mrf.mxu1 }
 0xb12   :  { %8088 = vst [vmem:[#allocation34_spill] sm:$0xff] %v7581_v16  ;;  %8089 = vst [vmem:[#allocation35_spill] sm:$0xff] %v7584_v18  ;;  %v7586_v56 = vadd.f32 %v3558_v60, %v3157_v3  ;;  %v7589_v38 = vadd.f32 %v3631_v31, %v7530_v21 }
 0xb13   :  { %v3560_v29 = vpop.f32.mrf.mxu0  ;;  %v3633_v41 = vpop.f32.mrf.mxu1 }
 0xb14   :  { %8090 = vst [vmem:[#allocation36_spill] sm:$0xff] %v7586_v56  ;;  %8091 = vst [vmem:[#allocation37_spill] sm:$0xff] %v7589_v38  ;;  %v7591_v4 = vadd.f32 %v3560_v29, %v3161_v47  ;;  %v7594_v1 = vadd.f32 %v3633_v41, %v7534_v44  ;;  %v3529_v56 = vadd.f32 %v3528_v62, %v3157_v3 }
 0xb15   :  { %v3562_v42 = vpop.f32.mrf.mxu0  ;;  %v3635_v57 = vpop.f32.mrf.mxu1  ;;  %v3531_v38 = vadd.f32 %v7524_v58, %v3161_v47  ;;  %v3604_v58 = vadd.f32 %v7526_v2, %v7534_v44 }
 0xb16   :  { %8092 = vst [vmem:[#allocation38_spill] sm:$0xff] %v7591_v4  ;;  %8093 = vst [vmem:[#allocation39_spill] sm:$0xff] %v7594_v1  ;;  %v7596_v16 = vadd.f32 %v3562_v42, %v3157_v3  ;;  %v7599_v43 = vadd.f32 %v3635_v57, %v7530_v21  ;;  %v3602_v3 = vadd.f32 %v7522_v34, %v7530_v21 }
 0xb17   :  { %v3564_v18 = vpop.f32.mrf.mxu0  ;;  %v3637_v60 = vpop.f32.mrf.mxu1 }
 0xb18   :  { %8094 = vst [vmem:[#allocation40_spill] sm:$0xff] %v7596_v16  ;;  %8095 = vst [vmem:[#allocation41_spill] sm:$0xff] %v7599_v43  ;;  %v7601_v46 = vadd.f32 %v3564_v18, %v3161_v47  ;;  %v7604_v31 = vadd.f32 %v3637_v60, %v7534_v44 }
 0xb19   :  { %v3866_v29 = vpop.f32.mrf.mxu0 }
 0xb1a   :  { %v3914_v41 = vadd.f32 %v3866_v29, %v3529_v56  ;;  %v3907_v1 = vpop.f32.mrf.mxu1 }
 0xb1b   :  { %v3868_v4 = vpop.f32.mrf.mxu0  ;;  %v3916_v18 = vadd.f32 %v3907_v1, %v3602_v3 }
 0xb1c   :  { %v5206_v50 = vmul.f32 -1.442695, %v3914_v41  ;;  %v3915_v42 = vadd.f32 %v3868_v4, %v3531_v38  ;;  %v3909_v16 = vpop.f32.mrf.mxu1 }
 0xb1d   :  { %v3870_v28 = vpop.f32.mrf.mxu0  ;;  %v5208_v47 = vmul.f32 -1.442695, %v3916_v18  ;;  %v3917_v60 = vadd.f32 %v3909_v16, %v3604_v58 }
 0xb1e   :  { %5920 = vpow2.f32 %v5206_v50  ;;  %v5207_v57 = vmul.f32 -1.442695, %v3915_v42  ;;  %v3911_v43 = vpop.f32.mrf.mxu1 }
 0xb1f   :  { %v3871_v30 = vpop.f32.mrf.mxu0 }
 0xb20   :  { %5922 = vpow2.f32 %v5207_v57  ;;  %v3912_v62 = vpop.f32.mrf.mxu1 }
 0xb21   :  { %5924 = vpow2.f32 %v5208_v47 }
 0xb2b   :  { %v5921_v56 = vpop.eup %5920 }
 0xb2c   :  { %v3927_v29 = vadd.f32 1.0, %v5921_v56 }
 0xb2d   :  { %v5923_v4 = vpop.eup %5922 }
 0xb2e   :  { %5926 = vrcp.f32 %v3927_v29  ;;  %v3928_v28 = vadd.f32 1.0, %v5923_v4  ;;  %v5925_v30 = vpop.eup %5924 }
 0xb2f   :  { %5928 = vtanh.f32 %v3917_v60  ;;  %v3929_v41 = vadd.f32 1.0, %v5925_v30 }
 0xb30   :  { %5930 = vrcp.f32 %v3928_v28 }
 0xb31   :  { %5932 = vrcp.f32 %v3929_v41 }
 0xb3b   :  { %v5927_v50 = vpop.eup %5926 }
 0xb3c   :  { %v5929_v38 = vpop.eup %5928 }
 0xb3d   :  { %v5931_v43 = vpop.eup %5930  ;;  %v3938_v21 = vmul.f32 %v5929_v38, %v5927_v50 }
 0xb3e   :  { %v3937_v34 = vmul.f32 0.0, %v5931_v43  ;;  %v5933_v2 = vpop.eup %5932 }
 0xb40   :  { %v7611_v1 = vadd.f32 %v3938_v21, %v3937_v34 }
 0xb42   :  { %5934 = vtanh.f32 %v7611_v1 }
 0xb4f   :  { %v5935_v44 = vpop.eup %5934 }
 0xb50   :  { %v3941_v16 = vmul.f32 %v5935_v44, %v5933_v2 }
 0xb52   :  { %v3942_v42 = vpack.c.bf16 %v3941_v16, %v3941_v16 }
 0xb54   :  { %3976 = vmatmul.mubr.bf16.vlgmr.msra.gmra.mxu0 %v3942_v42  ;;  %4017 = vmatmul.mubr.bf16.vlgmr.msra.gmra.mxu1 %v3942_v42 }
 0xb55   :  { %4055 = vmatpush1.bf16.msra.mxu0 %v7375_v39  ;;  %4096 = vmatpush1.bf16.msra.mxu1 %v7379_v40 }
 0xb56   :  { %4056 = vmatprep.subr.bf16.mxu0 %v7383_v61  ;;  %4097 = vmatprep.subr.bf16.mxu1 %v7385_v6 }
 0xb57   :  { %4086 = vmatprep.mubr.bf16.mxu0 %v8030_v51  ;;  %4127 = vmatprep.mubr.bf16.mxu1 %v8030_v51 }
 0xb59   :  { %4057 = vmatpush1.bf16.msra.mxu0 %v7388_v26  ;;  %4098 = vmatpush1.bf16.msra.mxu1 %v7391_v23 }
 0xb5a   :  { %4058 = vmatprep.subr.bf16.mxu0 %v7393_v10  ;;  %4099 = vmatprep.subr.bf16.mxu1 %v7397_v25 }
 0xb5d   :  { %4059 = vmatpush1.bf16.msra.mxu0 %v7400_v53  ;;  %4100 = vmatpush1.bf16.msra.mxu1 %v7406_v32 }
 0xb5e   :  { %4060 = vmatprep.subr.bf16.mxu0 %v7411_v8  ;;  %4101 = vmatprep.subr.bf16.mxu1 %v7413_v11 }
 0xb61   :  { %4061 = vmatpush1.bf16.msra.mxu0 %v7416_v22  ;;  %4102 = vmatpush1.bf16.msra.mxu1 %v7419_v12 }
 0xb62   :  { %4062 = vmatprep.subr.bf16.mxu0 %v7421_v13  ;;  %4103 = vmatprep.subr.bf16.mxu1 %v7425_v35 }
 0xb65   :  { %4063 = vmatpush1.bf16.msra.mxu0 %v7428_v27  ;;  %4104 = vmatpush1.bf16.msra.mxu1 %v7434_v33 }
 0xb66   :  { %4064 = vmatprep.subr.bf16.mxu0 %v7439_v45  ;;  %4105 = vmatprep.subr.bf16.mxu1 %v7441_v49 }
 0xb69   :  { %4065 = vmatpush1.bf16.msra.mxu0 %v7444_v9  ;;  %4106 = vmatpush1.bf16.msra.mxu1 %v7447_v5 }
 0xb6a   :  { %4066 = vmatprep.subr.bf16.mxu0 %v7449_v0  ;;  %4107 = vmatprep.subr.bf16.mxu1 %v7453_v54 }
 0xb6d   :  { %4067 = vmatpush1.bf16.msra.mxu0 %v7456_v63  ;;  %4108 = vmatpush1.bf16.msra.mxu1 %v7462_v36 }
 0xb6e   :  { %4068 = vmatprep.subr.bf16.mxu0 %v7464_v48  ;;  %4109 = vmatprep.subr.bf16.mxu1 %v7467_v37 }
 0xb71   :  { %4069 = vmatpush1.bf16.msra.mxu0 %v7470_v15  ;;  %4110 = vmatpush1.bf16.msra.mxu1 %v7475_v52 }
 0xb72   :  { %4165 = vmatprep.subr.bf16.mxu0 %v7360_v55  ;;  %4206 = vmatprep.subr.bf16.mxu1 %v7362_v24 }
 0xc14   :  { %v3977_v57 = vpop.f32.mrf.mxu0  ;;  %v4018_v62 = vpop.f32.mrf.mxu1 }
 0xc15   :  { %v4025_v3 = vadd.f32 %v3977_v57, %v7536_v14  ;;  %v4027_v50 = vadd.f32 %v4018_v62, %v7539_v17 }
 0xc16   :  { %v3979_v18 = vpop.f32.mrf.mxu0  ;;  %v4020_v58 = vpop.f32.mrf.mxu1 }
 0xc17   :  { %v5209_v47 = vmul.f32 -1.442695, %v4025_v3  ;;  %v4026_v56 = vadd.f32 %v3979_v18, %v7541_v19  ;;  %v5211_v38 = vmul.f32 -1.442695, %v4027_v50  ;;  %v4028_v43 = vadd.f32 %v4020_v58, %v7544_v20 }
 0xc18   :  { %v3981_v60 = vpop.f32.mrf.mxu0  ;;  %v4022_v29 = vpop.f32.mrf.mxu1 }
 0xc19   :  { %5936 = vpow2.f32 %v5209_v47  ;;  %v5210_v4 = vmul.f32 -1.442695, %v4026_v56 }
 0xc1a   :  { %v3982_v28 = vpop.f32.mrf.mxu0  ;;  %v4023_v30 = vpop.f32.mrf.mxu1 }
 0xc1b   :  { %5938 = vpow2.f32 %v5210_v4 }
 0xc1c   :  { %5940 = vpow2.f32 %v5211_v38 }
 0xc1d   :  { %5942 = vtanh.f32 %v4028_v43 }
 0xc26   :  { %v5937_v41 = vpop.eup %5936 }
 0xc27   :  { %v4038_v34 = vadd.f32 1.0, %v5937_v41 }
 0xc28   :  { %v5939_v14 = vpop.eup %5938 }
 0xc29   :  { %5944 = vrcp.f32 %v4038_v34  ;;  %v4039_v21 = vadd.f32 1.0, %v5939_v14  ;;  %v5941_v19 = vpop.eup %5940  ;;  %v8096_v34 = vld [vmem:[#allocation22_spill] sm:$0xff] }
 0xc2a   :  { %v5943_v2 = vpop.eup %5942  ;;  %v4040_v57 = vadd.f32 1.0, %v5941_v19  ;;  %v8097_v19 = vld [vmem:[#allocation23_spill] sm:$0xff] }
 0xc2b   :  { %5946 = vrcp.f32 %v4039_v21 }
 0xc2c   :  { %5948 = vrcp.f32 %v4040_v57 }
 0xc36   :  { %v5945_v44 = vpop.eup %5944 }
 0xc37   :  { %v4049_v16 = vmul.f32 %v5945_v44, %v5943_v2 }
 0xc38   :  { %v5947_v42 = vpop.eup %5946 }
 0xc39   :  { %v4048_v3 = vmul.f32 %v5947_v42, %v7611_v1  ;;  %v5949_v20 = vpop.eup %5948 }
 0xc3b   :  { %v7653_v17 = vadd.f32 %v4049_v16, %v4048_v3 }
 0xc3d   :  { %5950 = vtanh.f32 %v7653_v17 }
 0xc4a   :  { %v5951_v62 = vpop.eup %5950 }
 0xc4b   :  { %v4052_v18 = vmul.f32 %v5951_v62, %v5949_v20 }
 0xc4d   :  { %v4053_v58 = vpack.c.bf16 %v4052_v18, %v4052_v18 }
 0xc4f   :  { %4087 = vmatmul.mubr.bf16.vlgmr.msra.gmra.mxu0 %v4053_v58  ;;  %4128 = vmatmul.mubr.bf16.vlgmr.msra.gmra.mxu1 %v4053_v58 }
 0xc50   :  { %4166 = vmatpush1.bf16.msra.mxu0 %v7375_v39  ;;  %4207 = vmatpush1.bf16.msra.mxu1 %v7379_v40 }
 0xc51   :  { %4167 = vmatprep.subr.bf16.mxu0 %v7383_v61  ;;  %4208 = vmatprep.subr.bf16.mxu1 %v7385_v6 }
 0xc52   :  { %4197 = vmatprep.mubr.bf16.mxu0 %v8030_v51  ;;  %4238 = vmatprep.mubr.bf16.mxu1 %v8030_v51 }
 0xc54   :  { %4168 = vmatpush1.bf16.msra.mxu0 %v7388_v26  ;;  %4209 = vmatpush1.bf16.msra.mxu1 %v7391_v23 }
 0xc55   :  { %4169 = vmatprep.subr.bf16.mxu0 %v7393_v10  ;;  %4210 = vmatprep.subr.bf16.mxu1 %v7397_v25 }
 0xc58   :  { %4170 = vmatpush1.bf16.msra.mxu0 %v7400_v53  ;;  %4211 = vmatpush1.bf16.msra.mxu1 %v7406_v32 }
 0xc59   :  { %4171 = vmatprep.subr.bf16.mxu0 %v7411_v8  ;;  %4212 = vmatprep.subr.bf16.mxu1 %v7413_v11 }
 0xc5c   :  { %4172 = vmatpush1.bf16.msra.mxu0 %v7416_v22  ;;  %4213 = vmatpush1.bf16.msra.mxu1 %v7419_v12 }
 0xc5d   :  { %4173 = vmatprep.subr.bf16.mxu0 %v7421_v13  ;;  %4214 = vmatprep.subr.bf16.mxu1 %v7425_v35 }
 0xc60   :  { %4174 = vmatpush1.bf16.msra.mxu0 %v7428_v27  ;;  %4215 = vmatpush1.bf16.msra.mxu1 %v7434_v33 }
 0xc61   :  { %4175 = vmatprep.subr.bf16.mxu0 %v7439_v45  ;;  %4216 = vmatprep.subr.bf16.mxu1 %v7441_v49 }
 0xc64   :  { %4176 = vmatpush1.bf16.msra.mxu0 %v7444_v9  ;;  %4217 = vmatpush1.bf16.msra.mxu1 %v7447_v5 }
 0xc65   :  { %4177 = vmatprep.subr.bf16.mxu0 %v7449_v0  ;;  %4218 = vmatprep.subr.bf16.mxu1 %v7453_v54 }
 0xc68   :  { %4178 = vmatpush1.bf16.msra.mxu0 %v7456_v63  ;;  %4219 = vmatpush1.bf16.msra.mxu1 %v7462_v36 }
 0xc69   :  { %4179 = vmatprep.subr.bf16.mxu0 %v7464_v48  ;;  %4220 = vmatprep.subr.bf16.mxu1 %v7467_v37 }
 0xc6c   :  { %4180 = vmatpush1.bf16.msra.mxu0 %v7470_v15  ;;  %4221 = vmatpush1.bf16.msra.mxu1 %v7475_v52 }
 0xc6d   :  { %4276 = vmatprep.subr.bf16.mxu0 %v7360_v55  ;;  %4317 = vmatprep.subr.bf16.mxu1 %v7362_v24 }
 0xd0f   :  { %v4088_v1 = vpop.f32.mrf.mxu0  ;;  %v4129_v47 = vpop.f32.mrf.mxu1 }
 0xd10   :  { %v4136_v56 = vadd.f32 %v4088_v1, %v7546_v7  ;;  %v4138_v14 = vadd.f32 %v4129_v47, %v8096_v34 }
 0xd11   :  { %v4090_v60 = vpop.f32.mrf.mxu0  ;;  %v4131_v29 = vpop.f32.mrf.mxu1 }
 0xd12   :  { %v5212_v4 = vmul.f32 -1.442695, %v4136_v56  ;;  %v4137_v28 = vadd.f32 %v4090_v60, %v7551_v59  ;;  %v5214_v21 = vmul.f32 -1.442695, %v4138_v14  ;;  %v4139_v2 = vadd.f32 %v4131_v29, %v8097_v19 }
 0xd13   :  { %v4092_v30 = vpop.f32.mrf.mxu0  ;;  %v4133_v50 = vpop.f32.mrf.mxu1 }
 0xd14   :  { %5952 = vpow2.f32 %v5212_v4  ;;  %v5213_v38 = vmul.f32 -1.442695, %v4137_v28  ;;  %v8098_v28 = vld [vmem:[#allocation24_spill] sm:$0xff] }
 0xd15   :  { %v4093_v43 = vpop.f32.mrf.mxu0  ;;  %v4134_v41 = vpop.f32.mrf.mxu1 }
 0xd16   :  { %5954 = vpow2.f32 %v5213_v38  ;;  %v8099_v41 = vld [vmem:[#allocation26_spill] sm:$0xff] }
 0xd17   :  { %5956 = vpow2.f32 %v5214_v21 }
 0xd18   :  { %5958 = vtanh.f32 %v4139_v2 }
 0xd21   :  { %v5953_v44 = vpop.eup %5952 }
 0xd22   :  { %v4149_v16 = vadd.f32 1.0, %v5953_v44 }
 0xd23   :  { %v5955_v7 = vpop.eup %5954 }
 0xd24   :  { %5960 = vrcp.f32 %v4149_v16  ;;  %v4150_v42 = vadd.f32 1.0, %v5955_v7  ;;  %v5957_v59 = vpop.eup %5956  ;;  %v8100_v16 = vld [vmem:[#allocation25_spill] sm:$0xff] }
 0xd25   :  { %v5959_v57 = vpop.eup %5958  ;;  %v4151_v18 = vadd.f32 1.0, %v5957_v59 }
 0xd26   :  { %5962 = vrcp.f32 %v4150_v42 }
 0xd27   :  { %5964 = vrcp.f32 %v4151_v18 }
 0xd31   :  { %v5961_v3 = vpop.eup %5960 }
 0xd32   :  { %v4160_v20 = vmul.f32 %v5961_v3, %v5959_v57 }
 0xd33   :  { %v5963_v62 = vpop.eup %5962 }
 0xd34   :  { %v4159_v58 = vmul.f32 %v5963_v62, %v7653_v17  ;;  %v5965_v47 = vpop.eup %5964 }
 0xd36   :  { %v7695_v1 = vadd.f32 %v4160_v20, %v4159_v58 }
 0xd38   :  { %5966 = vtanh.f32 %v7695_v1 }
 0xd45   :  { %v5967_v56 = vpop.eup %5966 }
 0xd46   :  { %v4163_v60 = vmul.f32 %v5967_v56, %v5965_v47 }
 0xd48   :  { %v4164_v29 = vpack.c.bf16 %v4163_v60, %v4163_v60 }
 0xd4a   :  { %4198 = vmatmul.mubr.bf16.vlgmr.msra.gmra.mxu0 %v4164_v29  ;;  %4239 = vmatmul.mubr.bf16.vlgmr.msra.gmra.mxu1 %v4164_v29 }
 0xd4b   :  { %4277 = vmatpush1.bf16.msra.mxu0 %v7375_v39  ;;  %4318 = vmatpush1.bf16.msra.mxu1 %v7379_v40 }
 0xd4c   :  { %4278 = vmatprep.subr.bf16.mxu0 %v7383_v61  ;;  %4319 = vmatprep.subr.bf16.mxu1 %v7385_v6 }
 0xd4d   :  { %4308 = vmatprep.mubr.bf16.mxu0 %v8030_v51  ;;  %4349 = vmatprep.mubr.bf16.mxu1 %v8030_v51 }
 0xd4f   :  { %4279 = vmatpush1.bf16.msra.mxu0 %v7388_v26  ;;  %4320 = vmatpush1.bf16.msra.mxu1 %v7391_v23 }
 0xd50   :  { %4280 = vmatprep.subr.bf16.mxu0 %v7393_v10  ;;  %4321 = vmatprep.subr.bf16.mxu1 %v7397_v25 }
 0xd53   :  { %4281 = vmatpush1.bf16.msra.mxu0 %v7400_v53  ;;  %4322 = vmatpush1.bf16.msra.mxu1 %v7406_v32 }
 0xd54   :  { %4282 = vmatprep.subr.bf16.mxu0 %v7411_v8  ;;  %4323 = vmatprep.subr.bf16.mxu1 %v7413_v11 }
 0xd57   :  { %4283 = vmatpush1.bf16.msra.mxu0 %v7416_v22  ;;  %4324 = vmatpush1.bf16.msra.mxu1 %v7419_v12 }
 0xd58   :  { %4284 = vmatprep.subr.bf16.mxu0 %v7421_v13  ;;  %4325 = vmatprep.subr.bf16.mxu1 %v7425_v35 }
 0xd5b   :  { %4285 = vmatpush1.bf16.msra.mxu0 %v7428_v27  ;;  %4326 = vmatpush1.bf16.msra.mxu1 %v7434_v33 }
 0xd5c   :  { %4286 = vmatprep.subr.bf16.mxu0 %v7439_v45  ;;  %4327 = vmatprep.subr.bf16.mxu1 %v7441_v49 }
 0xd5f   :  { %4287 = vmatpush1.bf16.msra.mxu0 %v7444_v9  ;;  %4328 = vmatpush1.bf16.msra.mxu1 %v7447_v5 }
 0xd60   :  { %4288 = vmatprep.subr.bf16.mxu0 %v7449_v0  ;;  %4329 = vmatprep.subr.bf16.mxu1 %v7453_v54 }
 0xd63   :  { %4289 = vmatpush1.bf16.msra.mxu0 %v7456_v63  ;;  %4330 = vmatpush1.bf16.msra.mxu1 %v7462_v36 }
 0xd64   :  { %4290 = vmatprep.subr.bf16.mxu0 %v7464_v48  ;;  %4331 = vmatprep.subr.bf16.mxu1 %v7467_v37 }
 0xd67   :  { %4291 = vmatpush1.bf16.msra.mxu0 %v7470_v15  ;;  %4332 = vmatpush1.bf16.msra.mxu1 %v7475_v52 }
 0xd68   :  { %4387 = vmatprep.subr.bf16.mxu0 %v7360_v55  ;;  %4428 = vmatprep.subr.bf16.mxu1 %v7362_v24  ;;  %v8101_v24 = vld [vmem:[#allocation27_spill] sm:$0xff] }
 0xe0a   :  { %v4199_v17 = vpop.f32.mrf.mxu0  ;;  %v4240_v4 = vpop.f32.mrf.mxu1 }
 0xe0b   :  { %v4247_v30 = vadd.f32 %v4199_v17, %v8098_v28  ;;  %v4249_v55 = vadd.f32 %v4240_v4, %v8100_v16 }
 0xe0c   :  { %v4201_v50 = vpop.f32.mrf.mxu0  ;;  %v4242_v38 = vpop.f32.mrf.mxu1 }
 0xe0d   :  { %v5215_v43 = vmul.f32 -1.442695, %v4247_v30  ;;  %v4248_v34 = vadd.f32 %v4201_v50, %v8099_v41  ;;  %v5217_v7 = vmul.f32 -1.442695, %v4249_v55  ;;  %v4250_v42 = vadd.f32 %v4242_v38, %v8101_v24  ;;  %v8104_v41 = vld [vmem:[#allocation29_spill] sm:$0xff] }
 0xe0e   :  { %v4203_v14 = vpop.f32.mrf.mxu0  ;;  %v4244_v21 = vpop.f32.mrf.mxu1 }
 0xe0f   :  { %5968 = vpow2.f32 %v5215_v43  ;;  %v5216_v19 = vmul.f32 -1.442695, %v4248_v34  ;;  %v8105_v21 = vld [vmem:[#allocation31_spill] sm:$0xff] }
 0xe10   :  { %v4204_v2 = vpop.f32.mrf.mxu0  ;;  %v4245_v44 = vpop.f32.mrf.mxu1 }
 0xe11   :  { %5970 = vpow2.f32 %v5216_v19 }
 0xe12   :  { %5972 = vpow2.f32 %v5217_v7 }
 0xe13   :  { %5974 = vtanh.f32 %v4250_v42 }
 0xe1c   :  { %v5969_v59 = vpop.eup %5968 }
 0xe1d   :  { %v4260_v57 = vadd.f32 1.0, %v5969_v59 }
 0xe1e   :  { %v5971_v3 = vpop.eup %5970 }
 0xe1f   :  { %5976 = vrcp.f32 %v4260_v57  ;;  %v4261_v20 = vadd.f32 1.0, %v5971_v3  ;;  %v5973_v62 = vpop.eup %5972 }
 0xe20   :  { %v5975_v18 = vpop.eup %5974  ;;  %v4262_v60 = vadd.f32 1.0, %v5973_v62 }
 0xe21   :  { %5978 = vrcp.f32 %v4261_v20 }
 0xe22   :  { %5980 = vrcp.f32 %v4262_v60  ;;  %v7786_v60 = vld [vmem:[#allocation10 + $0xe0] ss:$16 sps:$4 sm:$0xff]  }
 0xe2c   :  { %v5977_v58 = vpop.eup %5976 }
 0xe2d   :  { %v4271_v47 = vmul.f32 %v5977_v58, %v5975_v18 }
 0xe2e   :  { %v5979_v56 = vpop.eup %5978 }
 0xe2f   :  { %v4270_v29 = vmul.f32 %v5979_v56, %v7695_v1  ;;  %v5981_v4 = vpop.eup %5980 }
 0xe31   :  { %v7737_v17 = vadd.f32 %v4271_v47, %v4270_v29  ;;  %v7789_v29 = vld [vmem:[#allocation10 + $0xe8] ss:$16 sps:$4 sm:$0xff]  }
 0xe33   :  { %5982 = vtanh.f32 %v7737_v17 }
 0xe40   :  { %v5983_v28 = vpop.eup %5982 }
 0xe41   :  { %v4274_v30 = vmul.f32 %v5983_v28, %v5981_v4  ;;  %v7795_v4 = vld [vmem:[#allocation10 + $0xcc] ss:$16 sps:$4 sm:$0xff]   ;;  %v7800_v28 = vld [vmem:[#allocation10 + $0xc0] ss:$16 sps:$4 sm:$0xff]  }
 0xe43   :  { %v4275_v50 = vpack.c.bf16 %v4274_v30, %v4274_v30  ;;  %v7803_v30 = vld [vmem:[#allocation10 + $0xc8] ss:$16 sps:$4 sm:$0xff]  }
 0xe45   :  { %4309 = vmatmul.mubr.bf16.vlgmr.msra.gmra.mxu0 %v4275_v50  ;;  %4350 = vmatmul.mubr.bf16.vlgmr.msra.gmra.mxu1 %v4275_v50  ;;  %v7806_v50 = vld [vmem:[#allocation10 + $0xa4] ss:$16 sps:$4 sm:$0xff]  }
 0xe46   :  { %4388 = vmatpush1.bf16.msra.mxu0 %v7375_v39  ;;  %4429 = vmatpush1.bf16.msra.mxu1 %v7379_v40  ;;  %v7772_v39 = vld [vmem:[#allocation10 + $0xe4] ss:$16 sps:$4 sm:$0xff]   ;;  %v7775_v40 = vld [vmem:[#allocation10 + $0xec] ss:$16 sps:$4 sm:$0xff]  }
 0xe47   :  { %4389 = vmatprep.subr.bf16.mxu0 %v7383_v61  ;;  %4430 = vmatprep.subr.bf16.mxu1 %v7385_v6 }
 0xe48   :  { %4419 = vmatprep.mubr.bf16.mxu0 %v8030_v51  ;;  %4460 = vmatprep.mubr.bf16.mxu1 %v8030_v51 }
 0xe4a   :  { %4390 = vmatpush1.bf16.msra.mxu0 %v7388_v26  ;;  %4431 = vmatpush1.bf16.msra.mxu1 %v7391_v23  ;;  %v8102_v26 = vld [vmem:[#allocation28_spill] sm:$0xff] }
 0xe4b   :  { %4391 = vmatprep.subr.bf16.mxu0 %v7393_v10  ;;  %4432 = vmatprep.subr.bf16.mxu1 %v7397_v25 }
 0xe4e   :  { %4392 = vmatpush1.bf16.msra.mxu0 %v7400_v53  ;;  %4433 = vmatpush1.bf16.msra.mxu1 %v7406_v32  ;;  %v8103_v32 = vld [vmem:[#allocation30_spill] sm:$0xff] }
 0xe4f   :  { %4393 = vmatprep.subr.bf16.mxu0 %v7411_v8  ;;  %4434 = vmatprep.subr.bf16.mxu1 %v7413_v11 }
 0xe52   :  { %4394 = vmatpush1.bf16.msra.mxu0 %v7416_v22  ;;  %4435 = vmatpush1.bf16.msra.mxu1 %v7419_v12 }
 0xe53   :  { %4395 = vmatprep.subr.bf16.mxu0 %v7421_v13  ;;  %4436 = vmatprep.subr.bf16.mxu1 %v7425_v35 }
 0xe56   :  { %4396 = vmatpush1.bf16.msra.mxu0 %v7428_v27  ;;  %4437 = vmatpush1.bf16.msra.mxu1 %v7434_v33 }
 0xe57   :  { %4397 = vmatprep.subr.bf16.mxu0 %v7439_v45  ;;  %4438 = vmatprep.subr.bf16.mxu1 %v7441_v49 }
 0xe5a   :  { %4398 = vmatpush1.bf16.msra.mxu0 %v7444_v9  ;;  %4439 = vmatpush1.bf16.msra.mxu1 %v7447_v5 }
 0xe5b   :  { %4399 = vmatprep.subr.bf16.mxu0 %v7449_v0  ;;  %4440 = vmatprep.subr.bf16.mxu1 %v7453_v54 }
 0xe5e   :  { %4400 = vmatpush1.bf16.msra.mxu0 %v7456_v63  ;;  %4441 = vmatpush1.bf16.msra.mxu1 %v7462_v36 }
 0xe5f   :  { %4401 = vmatprep.subr.bf16.mxu0 %v7464_v48  ;;  %4442 = vmatprep.subr.bf16.mxu1 %v7467_v37 }
 0xe62   :  { %4402 = vmatpush1.bf16.msra.mxu0 %v7470_v15  ;;  %4443 = vmatpush1.bf16.msra.mxu1 %v7475_v52 }
 0xe63   :  { %4498 = vmatprep.subr.bf16.mxu0 %v7772_v39  ;;  %4539 = vmatprep.subr.bf16.mxu1 %v7775_v40 }
 0xf05   :  { %v4310_v61 = vpop.f32.mrf.mxu0  ;;  %v4351_v6 = vpop.f32.mrf.mxu1 }
 0xf06   :  { %v4358_v23 = vadd.f32 %v4310_v61, %v8102_v26  ;;  %v4360_v34 = vadd.f32 %v4351_v6, %v8104_v41  ;;  %v7809_v61 = vld [vmem:[#allocation10 + $0xac] ss:$16 sps:$4 sm:$0xff]   ;;  %v7812_v6 = vld [vmem:[#allocation10 + $0xa0] ss:$16 sps:$4 sm:$0xff]   ;;  %v7815_v26 = vld [vmem:[#allocation10 + $0xa8] ss:$16 sps:$4 sm:$0xff]  }
 0xf07   :  { %v4312_v10 = vpop.f32.mrf.mxu0  ;;  %v4353_v25 = vpop.f32.mrf.mxu1 }
 0xf08   :  { %v5218_v53 = vmul.f32 -1.442695, %v4358_v23  ;;  %v4359_v8 = vadd.f32 %v4312_v10, %v8103_v32  ;;  %v5220_v14 = vmul.f32 -1.442695, %v4360_v34  ;;  %v4361_v19 = vadd.f32 %v4353_v25, %v8105_v21  ;;  %v7818_v23 = vld [vmem:[#allocation10 + $0x84] ss:$16 sps:$4 sm:$0xff]  }
 0xf09   :  { %v4314_v11 = vpop.f32.mrf.mxu0  ;;  %v4355_v22 = vpop.f32.mrf.mxu1  ;;  %v7821_v10 = vld [vmem:[#allocation10 + $0x8c] ss:$16 sps:$4 sm:$0xff]   ;;  %v7824_v25 = vld [vmem:[#allocation10 + $0x80] ss:$16 sps:$4 sm:$0xff]  }
 0xf0a   :  { %5984 = vpow2.f32 %v5218_v53  ;;  %v5219_v1 = vmul.f32 -1.442695, %v4359_v8 }
 0xf0b   :  { %v4315_v38 = vpop.f32.mrf.mxu0  ;;  %v4356_v43 = vpop.f32.mrf.mxu1 }
 0xf0c   :  { %5986 = vpow2.f32 %v5219_v1 }
 0xf0d   :  { %5988 = vpow2.f32 %v5220_v14 }
 0xf0e   :  { %5990 = vtanh.f32 %v4361_v19 }
 0xf17   :  { %v5985_v2 = vpop.eup %5984 }
 0xf18   :  { %v4371_v44 = vadd.f32 1.0, %v5985_v2 }
 0xf19   :  { %v5987_v16 = vpop.eup %5986 }
 0xf1a   :  { %5992 = vrcp.f32 %v4371_v44  ;;  %v4372_v55 = vadd.f32 1.0, %v5987_v16  ;;  %v5989_v7 = vpop.eup %5988 }
 0xf1b   :  { %v5991_v24 = vpop.eup %5990  ;;  %v4373_v3 = vadd.f32 1.0, %v5989_v7  ;;  %v6097_v7 = vld [vmem:[#allocation10 + $0x6c] ss:$16 sps:$4 sm:$0xff]  }
 0xf1c   :  { %5994 = vrcp.f32 %v4372_v55  ;;  %v6095_v55 = vld [vmem:[#allocation10 + $0x88] ss:$16 sps:$4 sm:$0xff]  }
 0xf1d   :  { %5996 = vrcp.f32 %v4373_v3  ;;  %v6102_v3 = vld [vmem:[#allocation10 + $0x40] ss:$16 sps:$4 sm:$0xff]  }
 0xf27   :  { %v5993_v42 = vpop.eup %5992 }
 0xf28   :  { %v4382_v59 = vmul.f32 %v5993_v42, %v5991_v24  ;;  %v6098_v24 = vld [vmem:[#allocation10 + $0x60] ss:$16 sps:$4 sm:$0xff]   ;;  %v6099_v42 = vld [vmem:[#allocation10 + $0x68] ss:$16 sps:$4 sm:$0xff]  }
 0xf29   :  { %v5995_v57 = vpop.eup %5994 }
 0xf2a   :  { %v4381_v20 = vmul.f32 %v5995_v57, %v7737_v17  ;;  %v5997_v18 = vpop.eup %5996  ;;  %v7792_v17 = vld [vmem:[#allocation10 + $0xc4] ss:$16 sps:$4 sm:$0xff]   ;;  %v6101_v57 = vld [vmem:[#allocation10 + $0x4c] ss:$16 sps:$4 sm:$0xff]  }
 0xf2c   :  { %v7783_v62 = vadd.f32 %v4382_v59, %v4381_v20  ;;  %v6100_v59 = vld [vmem:[#allocation10 + $0x44] ss:$16 sps:$4 sm:$0xff]   ;;  %v6103_v20 = vld [vmem:[#allocation10 + $0x48] ss:$16 sps:$4 sm:$0xff]  }
 0xf2e   :  { %5998 = vtanh.f32 %v7783_v62 }
 0xf3b   :  { %v5999_v58 = vpop.eup %5998 }
 0xf3c   :  { %v4385_v47 = vmul.f32 %v5999_v58, %v5997_v18  ;;  %v6105_v18 = vld [vmem:[#allocation10 + $0x2c] ss:$16 sps:$4 sm:$0xff]   ;;  %v6106_v58 = vld [vmem:[#allocation10 + $0x20] ss:$16 sps:$4 sm:$0xff]  }
 0xf3e   :  { %v4386_v56 = vpack.c.bf16 %v4385_v47, %v4385_v47  ;;  %v6107_v47 = vld [vmem:[#allocation10 + $0x28] ss:$16 sps:$4 sm:$0xff]  }
 0xf40   :  { %4420 = vmatmul.mubr.bf16.vlgmr.msra.gmra.mxu0 %v4386_v56  ;;  %4461 = vmatmul.mubr.bf16.vlgmr.msra.gmra.mxu1 %v4386_v56  ;;  %v6108_v56 = vld [vmem:[#allocation10 + $0x4] ss:$16 sps:$4 sm:$0xff]  }
 0xf41   :  { %4499 = vmatpush1.bf16.msra.mxu0 %v7786_v60  ;;  %4540 = vmatpush1.bf16.msra.mxu1 %v7789_v29 }
 0xf42   :  { %4500 = vmatprep.subr.bf16.mxu0 %v7792_v17  ;;  %4541 = vmatprep.subr.bf16.mxu1 %v7795_v4 }
 0xf43   :  { %4530 = vmatprep.mubr.bf16.mxu0 %v8030_v51  ;;  %4571 = vmatprep.mubr.bf16.mxu1 %v8030_v51 }
 0xf45   :  { %4501 = vmatpush1.bf16.msra.mxu0 %v7800_v28  ;;  %4542 = vmatpush1.bf16.msra.mxu1 %v7803_v30 }
 0xf46   :  { %4502 = vmatprep.subr.bf16.mxu0 %v7806_v50  ;;  %4543 = vmatprep.subr.bf16.mxu1 %v7809_v61 }
 0xf49   :  { %4503 = vmatpush1.bf16.msra.mxu0 %v7812_v6  ;;  %4544 = vmatpush1.bf16.msra.mxu1 %v7815_v26 }
 0xf4a   :  { %4504 = vmatprep.subr.bf16.mxu0 %v7818_v23  ;;  %4545 = vmatprep.subr.bf16.mxu1 %v7821_v10 }
 0xf4d   :  { %4505 = vmatpush1.bf16.msra.mxu0 %v7824_v25  ;;  %4546 = vmatpush1.bf16.msra.mxu1 %v7419_v12 }
 0xf4e   :  { %4506 = vmatprep.subr.bf16.mxu0 %v7421_v13  ;;  %4547 = vmatprep.subr.bf16.mxu1 %v7425_v35  ;;  %v8106_v35 = vld [vmem:[#allocation32_spill] sm:$0xff] }
 0xf51   :  { %4507 = vmatpush1.bf16.msra.mxu0 %v7428_v27  ;;  %4548 = vmatpush1.bf16.msra.mxu1 %v7434_v33 }
 0xf52   :  { %4508 = vmatprep.subr.bf16.mxu0 %v7439_v45  ;;  %4549 = vmatprep.subr.bf16.mxu1 %v7441_v49 }
 0xf55   :  { %4509 = vmatpush1.bf16.msra.mxu0 %v7444_v9  ;;  %4550 = vmatpush1.bf16.msra.mxu1 %v7447_v5  ;;  %v8107_v9 = vld [vmem:[#allocation34_spill] sm:$0xff] }
 0xf56   :  { %4510 = vmatprep.subr.bf16.mxu0 %v7449_v0  ;;  %4551 = vmatprep.subr.bf16.mxu1 %v7453_v54 }
 0xf59   :  { %4511 = vmatpush1.bf16.msra.mxu0 %v7456_v63  ;;  %4552 = vmatpush1.bf16.msra.mxu1 %v7462_v36 }
 0xf5a   :  { %4512 = vmatprep.subr.bf16.mxu0 %v7464_v48  ;;  %4553 = vmatprep.subr.bf16.mxu1 %v7467_v37  ;;  %v8108_v37 = vld [vmem:[#allocation33_spill] sm:$0xff] }
 0xf5d   :  { %4513 = vmatpush1.bf16.msra.mxu0 %v7470_v15  ;;  %4554 = vmatpush1.bf16.msra.mxu1 %v7475_v52 }
 0xf5e   :  { %4609 = vmatprep.subr.bf16.mxu0 %v7772_v39  ;;  %4650 = vmatprep.subr.bf16.mxu1 %v7775_v40  ;;  %v8109_v39 = vld [vmem:[#allocation35_spill] sm:$0xff] }
0x1000   :  { %v4421_v12 = vpop.f32.mrf.mxu0  ;;  %v4462_v13 = vpop.f32.mrf.mxu1 }
0x1001   :  { %v4469_v27 = vadd.f32 %v4421_v12, %v8106_v35  ;;  %v4471_v15 = vadd.f32 %v4462_v13, %v8108_v37 }
0x1002   :  { %v4423_v33 = vpop.f32.mrf.mxu0  ;;  %v4464_v45 = vpop.f32.mrf.mxu1 }
0x1003   :  { %v5221_v49 = vmul.f32 -1.442695, %v4469_v27  ;;  %v4470_v5 = vadd.f32 %v4423_v33, %v8107_v9  ;;  %v5223_v52 = vmul.f32 -1.442695, %v4471_v15  ;;  %v4472_v40 = vadd.f32 %v4464_v45, %v8109_v39  ;;  %v8112_v33 = vld [vmem:[#allocation37_spill] sm:$0xff]  ;;  %v8113_v9 = vld [vmem:[#allocation39_spill] sm:$0xff] }
0x1004   :  { %v4425_v0 = vpop.f32.mrf.mxu0  ;;  %v4466_v54 = vpop.f32.mrf.mxu1 }
0x1005   :  { %6000 = vpow2.f32 %v5221_v49  ;;  %v5222_v63 = vmul.f32 -1.442695, %v4470_v5 }
0x1006   :  { %v4426_v36 = vpop.f32.mrf.mxu0  ;;  %v4467_v48 = vpop.f32.mrf.mxu1 }
0x1007   :  { %6002 = vpow2.f32 %v5222_v63 }
0x1008   :  { %6004 = vpow2.f32 %v5223_v52 }
0x1009   :  { %6006 = vtanh.f32 %v4472_v40 }
0x1012   :  { %v6001_v53 = vpop.eup %6000 }
0x1013   :  { %v4482_v32 = vadd.f32 1.0, %v6001_v53 }
0x1014   :  { %v6003_v8 = vpop.eup %6002 }
0x1015   :  { %6008 = vrcp.f32 %v4482_v32  ;;  %v4483_v11 = vadd.f32 1.0, %v6003_v8  ;;  %v6005_v22 = vpop.eup %6004 }
0x1016   :  { %v6007_v1 = vpop.eup %6006  ;;  %v4484_v34 = vadd.f32 1.0, %v6005_v22 }
0x1017   :  { %6010 = vrcp.f32 %v4483_v11 }
0x1018   :  { %6012 = vrcp.f32 %v4484_v34  ;;  %v5786_v34 = vld [vmem:[%s7926_s14 + $0x28] sm:$0xff]  }
0x1022   :  { %v6009_v38 = vpop.eup %6008 }
0x1023   :  { %v4493_v43 = vmul.f32 %v6009_v38, %v6007_v1  ;;  %v5784_v38 = vld [vmem:[%s7926_s14 + $0x38] sm:$0xff]  }
0x1024   :  { %v6011_v41 = vpop.eup %6010 }
0x1025   :  { %v4492_v14 = vmul.f32 %v6011_v41, %v7783_v62  ;;  %v6013_v19 = vpop.eup %6012  ;;  %v6104_v62 = vld [vmem:[#allocation10 + $0x24] ss:$16 sps:$4 sm:$0xff]  }
0x1026   :  { %v5785_v41 = vld [vmem:[%s7926_s14 + $0x30] sm:$0xff]  }
0x1027   :  { %v7851_v21 = vadd.f32 %v4493_v43, %v4492_v14  ;;  %v6227_v43 = vmov 0.0   ;;  %v5787_v14 = vld [vmem:[%s7926_s14 + $0x20] sm:$0xff]  }
0x1029   :  { %6014 = vtanh.f32 %v7851_v21 }
0x1036   :  { %v6015_v2 = vpop.eup %6014 }
0x1037   :  { %v4496_v44 = vmul.f32 %v6015_v2, %v6013_v19  ;;  %v5789_v19 = vld [vmem:[%s7926_s14 + $0x10] sm:$0xff]   ;;  %v5790_v2 = vld [vmem:[%s7926_s14 + $0x8] sm:$0xff]  }
0x1039   :  { %v4497_v16 = vpack.c.bf16 %v4496_v44, %v4496_v44  ;;  %v5791_v44 = vld [vmem:[%s7926_s14] sm:$0xff]  }
0x103b   :  { %4531 = vmatmul.mubr.bf16.vlgmr.msra.gmra.mxu0 %v4497_v16  ;;  %4572 = vmatmul.mubr.bf16.vlgmr.msra.gmra.mxu1 %v4497_v16 }
0x103c   :  { %4610 = vmatpush1.bf16.msra.mxu0 %v7786_v60  ;;  %4651 = vmatpush1.bf16.msra.mxu1 %v7789_v29  ;;  %v6109_v60 = vld [vmem:[#allocation10 + $0xc] ss:$16 sps:$4 sm:$0xff]   ;;  %v6110_v29 = vld [vmem:[#allocation10] ss:$16 sps:$4 sm:$0xff]  }
0x103d   :  { %4611 = vmatprep.subr.bf16.mxu0 %v7792_v17  ;;  %4652 = vmatprep.subr.bf16.mxu1 %v7795_v4  ;;  %v6111_v17 = vld [vmem:[#allocation10 + $0x8] ss:$16 sps:$4 sm:$0xff]  }
0x103e   :  { %4641 = vmatprep.mubr.bf16.mxu0 %v8030_v51  ;;  %4682 = vmatprep.mubr.bf16.mxu1 %v8030_v51  ;;  %v6096_v51 = vld [vmem:[#allocation10 + $0x64] ss:$16 sps:$4 sm:$0xff]  }
0x1040   :  { %4612 = vmatpush1.bf16.msra.mxu0 %v7800_v28  ;;  %4653 = vmatpush1.bf16.msra.mxu1 %v7803_v30  ;;  %v8110_v30 = vld [vmem:[#allocation36_spill] sm:$0xff] }
0x1041   :  { %4613 = vmatprep.subr.bf16.mxu0 %v7806_v50  ;;  %4654 = vmatprep.subr.bf16.mxu1 %v7809_v61 }
0x1044   :  { %4614 = vmatpush1.bf16.msra.mxu0 %v7812_v6  ;;  %4655 = vmatpush1.bf16.msra.mxu1 %v7815_v26 }
0x1045   :  { %4615 = vmatprep.subr.bf16.mxu0 %v7818_v23  ;;  %4656 = vmatprep.subr.bf16.mxu1 %v7821_v10  ;;  %v8111_v23 = vld [vmem:[#allocation38_spill] sm:$0xff] }
0x1048   :  { %4616 = vmatpush1.bf16.msra.mxu0 %v7824_v25  ;;  %4657 = vmatpush1.bf16.msra.mxu1 %v6095_v55 }
0x1049   :  { %4617 = vmatprep.subr.bf16.mxu0 %v6096_v51  ;;  %4658 = vmatprep.subr.bf16.mxu1 %v6097_v7  ;;  %v8114_v51 = vld [vmem:[#allocation40_spill] sm:$0xff] }
0x104c   :  { %4618 = vmatpush1.bf16.msra.mxu0 %v6098_v24  ;;  %4659 = vmatpush1.bf16.msra.mxu1 %v6099_v42 }
0x104d   :  { %4619 = vmatprep.subr.bf16.mxu0 %v6100_v59  ;;  %4660 = vmatprep.subr.bf16.mxu1 %v6101_v57 }
0x1050   :  { %4620 = vmatpush1.bf16.msra.mxu0 %v6102_v3  ;;  %4661 = vmatpush1.bf16.msra.mxu1 %v6103_v20 }
0x1051   :  { %4621 = vmatprep.subr.bf16.mxu0 %v6104_v62  ;;  %4662 = vmatprep.subr.bf16.mxu1 %v6105_v18 }
0x1054   :  { %4622 = vmatpush1.bf16.msra.mxu0 %v6106_v58  ;;  %4663 = vmatpush1.bf16.msra.mxu1 %v6107_v47  ;;  %v8115_v47 = vld [vmem:[#allocation41_spill] sm:$0xff] }
0x1055   :  { %4623 = vmatprep.subr.bf16.mxu0 %v6108_v56  ;;  %4664 = vmatprep.subr.bf16.mxu1 %v6109_v60 }
0x1058   :  { %4624 = vmatpush1.bf16.msra.mxu0 %v6110_v29  ;;  %4665 = vmatpush1.bf16.msra.mxu1 %v6111_v17 }
0x1059   :  { %5248 = vmatprep.subr.bf16.mxu0 %v6227_v43 }
0x10fb   :  { %v4532_v4 = vpop.f32.mrf.mxu0  ;;  %v4573_v28 = vpop.f32.mrf.mxu1 }
0x10fc   :  { %v4580_v50 = vadd.f32 %v4532_v4, %v8110_v30  ;;  %v4582_v45 = vadd.f32 %v4573_v28, %v8112_v33 }
0x10fd   :  { %v4534_v61 = vpop.f32.mrf.mxu0  ;;  %v4575_v6 = vpop.f32.mrf.mxu1 }
0x10fe   :  { %v5224_v26 = vmul.f32 -1.442695, %v4580_v50  ;;  %v4581_v10 = vadd.f32 %v4534_v61, %v8111_v23  ;;  %v5226_v49 = vmul.f32 -1.442695, %v4582_v45  ;;  %v4583_v5 = vadd.f32 %v4575_v6, %v8113_v9 }
0x10ff   :  { %v4536_v25 = vpop.f32.mrf.mxu0  ;;  %v4577_v12 = vpop.f32.mrf.mxu1 }
0x1100   :  { %6016 = vpow2.f32 %v5224_v26  ;;  %v5225_v13 = vmul.f32 -1.442695, %v4581_v10 }
0x1101   :  { %v4537_v35 = vpop.f32.mrf.mxu0  ;;  %v4578_v27 = vpop.f32.mrf.mxu1 }
0x1102   :  { %6018 = vpow2.f32 %v5225_v13  ;;  %v5230_v27 = vld [vmem:[%s7927_s15] ss:$0 sm:$0xff] }
0x1103   :  { %6020 = vpow2.f32 %v5226_v49 }
0x1104   :  { %6022 = vtanh.f32 %v4583_v5 }
0x110d   :  { %v6017_v0 = vpop.eup %6016 }
0x110e   :  { %v4593_v54 = vadd.f32 1.0, %v6017_v0 }
0x110f   :  { %v6019_v63 = vpop.eup %6018 }
0x1110   :  { %6024 = vrcp.f32 %v4593_v54  ;;  %v4594_v36 = vadd.f32 1.0, %v6019_v63  ;;  %v6021_v48 = vpop.eup %6020 }
0x1111   :  { %v6023_v37 = vpop.eup %6022  ;;  %v4595_v40 = vadd.f32 1.0, %v6021_v48 }
0x1112   :  { %6026 = vrcp.f32 %v4594_v36 }
0x1113   :  { %6028 = vrcp.f32 %v4595_v40 }
0x111d   :  { %v6025_v15 = vpop.eup %6024 }
0x111e   :  { %v4604_v52 = vmul.f32 %v6025_v15, %v6023_v37 }
0x111f   :  { %v6027_v39 = vpop.eup %6026 }
0x1120   :  { %v4603_v53 = vmul.f32 %v6027_v39, %v7851_v21  ;;  %v6029_v8 = vpop.eup %6028  ;;  %v5788_v21 = vld [vmem:[%s7926_s14 + $0x18] sm:$0xff]  }
0x1122   :  { %v7874_v32 = vadd.f32 %v4604_v52, %v4603_v53 }
0x1124   :  { %6030 = vtanh.f32 %v7874_v32 }
0x1131   :  { %v6031_v11 = vpop.eup %6030 }
0x1132   :  { %v4607_v22 = vmul.f32 %v6031_v11, %v6029_v8 }
0x1134   :  { %v4608_v1 = vpack.c.bf16 %v4607_v22, %v4607_v22 }
0x1136   :  { %4642 = vmatmul.mubr.bf16.vlgmr.msra.gmra.mxu0 %v4608_v1  ;;  %4683 = vmatmul.mubr.bf16.vlgmr.msra.gmra.mxu1 %v4608_v1 }
0x1137   :  { %5264 = vmatprep.mubr.msk.bf16.mxu0 %vm6228_vm6, %v6227_v43  ;;  %5249 = vmatpush3.bf16.msra.mxu0 %v5784_v38 }
0x1138   :  { %5250 = vmatprep.subr.bf16.mxu0 %v6227_v43 }
0x113b   :  { %5251 = vmatpush3.bf16.msra.mxu0 %v5785_v41 }
0x113c   :  { %5252 = vmatprep.subr.bf16.mxu0 %v6227_v43 }
0x113f   :  { %5253 = vmatpush3.bf16.msra.mxu0 %v5786_v34 }
0x1140   :  { %5254 = vmatprep.subr.bf16.mxu0 %v6227_v43 }
0x1143   :  { %5255 = vmatpush3.bf16.msra.mxu0 %v5787_v14 }
0x1144   :  { %5256 = vmatprep.subr.bf16.mxu0 %v6227_v43 }
0x1147   :  { %5257 = vmatpush3.bf16.msra.mxu0 %v5788_v21 }
0x1148   :  { %5258 = vmatprep.subr.bf16.mxu0 %v6227_v43 }
0x114b   :  { %5259 = vmatpush3.bf16.msra.mxu0 %v5789_v19 }
0x114c   :  { %5260 = vmatprep.subr.bf16.mxu0 %v6227_v43 }
0x114f   :  { %5261 = vmatpush3.bf16.msra.mxu0 %v5790_v2 }
0x1150   :  { %5262 = vmatprep.subr.bf16.mxu0 %v6227_v43 }
0x1153   :  { %5263 = vmatpush3.bf16.msra.mxu0 %v5791_v44 }
0x11f6   :  { %v4643_v16 = vpop.f32.mrf.mxu0  ;;  %v4684_v55 = vpop.f32.mrf.mxu1 }
0x11f7   :  { %v4691_v7 = vadd.f32 %v4643_v16, %v8114_v51  ;;  %v4693_v56 = vadd.f32 %v4684_v55, %v8115_v47 }
0x11f8   :  { %v4645_v24 = vpop.f32.mrf.mxu0  ;;  %v4686_v42 = vpop.f32.mrf.mxu1 }
0x11f9   :  { %v5227_v59 = vmul.f32 -1.442695, %v4691_v7  ;;  %v4692_v57 = vadd.f32 %v4645_v24, %v7601_v46  ;;  %v5229_v60 = vmul.f32 -1.442695, %v4693_v56  ;;  %v4694_v29 = vadd.f32 %v4686_v42, %v7604_v31 }
0x11fa   :  { %v4647_v3 = vpop.f32.mrf.mxu0  ;;  %v4688_v20 = vpop.f32.mrf.mxu1 }
0x11fb   :  { %6032 = vpow2.f32 %v5227_v59  ;;  %v5228_v62 = vmul.f32 -1.442695, %v4692_v57 }
0x11fc   :  { %v4648_v18 = vpop.f32.mrf.mxu0  ;;  %v4689_v58 = vpop.f32.mrf.mxu1 }
0x11fd   :  { %6034 = vpow2.f32 %v5228_v62 }
0x11fe   :  { %6036 = vpow2.f32 %v5229_v60 }
0x11ff   :  { %6038 = vtanh.f32 %v4694_v29 }
0x1208   :  { %v6033_v17 = vpop.eup %6032 }
0x1209   :  { %v4704_v4 = vadd.f32 1.0, %v6033_v17 }
0x120a   :  { %v6035_v28 = vpop.eup %6034 }
0x120b   :  { %6040 = vrcp.f32 %v4704_v4  ;;  %v4705_v30 = vadd.f32 1.0, %v6035_v28  ;;  %v6037_v46 = vpop.eup %6036 }
0x120c   :  { %v6039_v50 = vpop.eup %6038  ;;  %v4706_v23 = vadd.f32 1.0, %v6037_v46 }
0x120d   :  { %6042 = vrcp.f32 %v4705_v30 }
0x120e   :  { %6044 = vrcp.f32 %v4706_v23 }
0x1218   :  { %v6041_v61 = vpop.eup %6040 }
0x1219   :  { %v4715_v6 = vmul.f32 %v6041_v61, %v6039_v50 }
0x121a   :  { %v6043_v26 = vpop.eup %6042 }
0x121b   :  { %v4714_v10 = vmul.f32 %v6043_v26, %v7874_v32  ;;  %v6045_v31 = vpop.eup %6044 }
0x121d   :  { %v4716_v25 = vadd.f32 %v4715_v6, %v4714_v10 }
0x121f   :  { %6046 = vtanh.f32 %v4716_v25 }
0x122c   :  { %v6047_v12 = vpop.eup %6046 }
0x122d   :  { %v4718_v13 = vmul.f32 %v6047_v12, %v6045_v31 }
0x122f   :  { %v4719_v35 = vpack.c.bf16 %v4718_v13, %v4718_v13 }
0x1231   :  { %5265 = vmatmul.mubr.bf16.vlgmr.msra.gmra.mxu0 %v4719_v35 }
0x12f1   :  { %v4825_v33 = vpop.f32.mrf.mxu0 }
0x12f2   :  { %v4826_v45 = vadd.f32 %v5230_v27, %v4825_v33 }
0x12f3   :  { %v5266_v49 = vpop.f32.mrf.mxu0 }
0x12f4   :  { %4832 = vst.msk [vmem:[%s7928_s16] sm:$0xff] %vm4831_vm7, %v4826_v45 }
0x12f5   :  { %v4828_v9 = vpop.f32.mrf.mxu0 }
0x12f7   :  { %v5267_v5 = vpop.f32.mrf.mxu0 }
0x12f8   :  { %4837 = vsyncpa [#allocation4], 1 }
0x12f9   :  { %4838 = vsyncpa [#allocation8], 1 }
0x12fa   :  { %4839 = vsyncpa [#allocation11], 1 }
0x12fb   :  { %4840 = vsyncpa [#allocation5], 1 }

</bundles_post_ra>
